<compile_context>
chip_gen: v5e
topology: v5e:2x2
jax: 0.10.0
libtpu: 0.0.40
codegen_flags: <defaults>
</compile_context>

<pallas_src>
import functools
import math

import numpy as np
import jax
import jax.numpy as jnp
from jax.experimental import pallas as pl
from jax.experimental.pallas import tpu as pltpu

FEAT = 128          # scaled-down CLIP embed dim (stands in for 1024 of RN50x64)
NUM_LABELS = 2
LANE = 128          # TPU lane width; all matmul K/N dims are padded to this


def _round_up(x, m):
    return (x + m - 1) // m * m


# ---------------------------------------------------------------------------
# Pallas kernels
# ---------------------------------------------------------------------------

def _matmul_kernel(a_ref, w_ref, b_ref, o_ref, *, relu):
    """o = (relu)(a @ w + b); bf16 operands, f32 accumulation on the MXU."""
    acc = jnp.dot(a_ref[...], w_ref[...], preferred_element_type=jnp.float32)
    acc = acc + b_ref[...]
    if relu:
        acc = jnp.maximum(acc, 0.0)
    o_ref[...] = acc.astype(o_ref.dtype)


def _matmul_residual_relu_kernel(a_ref, w_ref, b_ref, r_ref, o_ref):
    """o = relu(a @ w + b + r) — residual merge fused into the matmul epilogue."""
    acc = jnp.dot(a_ref[...], w_ref[...], preferred_element_type=jnp.float32)
    acc = acc + b_ref[...] + r_ref[...].astype(jnp.float32)
    o_ref[...] = jnp.maximum(acc, 0.0).astype(o_ref.dtype)


def _head_kernel(p_ref, h_ref, wa_ref, ba_ref, w2_ref, b2_ref, w3_ref, b3_ref,
                 o_ref):
    """Fused head: mean-pool (as matmul) -> attn-proj -> fc2+ReLU -> fc3."""
    # Spatial mean-pool expressed as (1/HW)*indicator matmul: feat[b] = mean_s h[b,s].
    feat = jnp.dot(p_ref[...], h_ref[...], preferred_element_type=jnp.float32)
    # TODO(synk): CLIP's multi-head AttentionPool2d approximated by mean-pool + linear.
    img = jnp.dot(feat.astype(jnp.bfloat16), wa_ref[...],
                  preferred_element_type=jnp.float32) + ba_ref[...]
    # NOTE: original forward computes relu(fc1(image_features)) and discards it;
    # that dead matmul is intentionally not executed here (output-identical).
    x = jnp.dot(img.astype(jnp.bfloat16), w2_ref[...],
                preferred_element_type=jnp.float32) + b2_ref[...]
    x = jnp.maximum(x, 0.0)
    o_ref[...] = jnp.dot(x.astype(jnp.bfloat16), w3_ref[...],
                         preferred_element_type=jnp.float32) + b3_ref[...]


# ---------------------------------------------------------------------------
# pallas_call wrappers
# ---------------------------------------------------------------------------

def conv_matmul(a, w, b, *, relu=False, residual=None, tm=128):
    """a: [M, K] bf16 (K multiple of 128), w: [K, N] bf16, b: [1, N] f32.

    Returns bf16 [M, N]. tm=128 gives grid=4 on the 512-row stem matmuls, which
    shards evenly across v7x's 2 TensorCores via dimension_semantics=("parallel",).
    """
    M, K = a.shape
    K2, N = w.shape
    assert K == K2 and K % LANE == 0 and N % LANE == 0
    Mp = _round_up(M, tm)
    if Mp != M:  # not hit at the shapes used here; kept for generality
        a = jnp.pad(a, ((0, Mp - M), (0, 0)))
        if residual is not None:
            residual = jnp.pad(residual, ((0, Mp - M), (0, 0)))

    in_specs = [
        pl.BlockSpec((tm, K), lambda i: (i, 0)),
        pl.BlockSpec((K, N), lambda i: (0, 0)),
        pl.BlockSpec((1, N), lambda i: (0, 0)),
    ]
    args = [a, w, b]
    if residual is not None:
        in_specs.append(pl.BlockSpec((tm, N), lambda i: (i, 0)))
        args.append(residual)
        kernel = _matmul_residual_relu_kernel
    else:
        kernel = functools.partial(_matmul_kernel, relu=relu)

    out = pl.pallas_call(
        kernel,
        out_shape=jax.ShapeDtypeStruct((Mp, N), jnp.bfloat16),
        grid=(Mp // tm,),
        in_specs=in_specs,
        out_specs=pl.BlockSpec((tm, N), lambda i: (i, 0)),
        compiler_params=pltpu.CompilerParams(dimension_semantics=("parallel",)),
    )(*args)
    if Mp != M:
        out = out[:M]
    return out


def head_pallas(h2d, pool, attn, fc2, fc3):
    """h2d: [B*HW, Cp] bf16; pool: [Mh, B*HW] bf16; weights packed/padded."""
    mh = pool.shape[0]
    n_out = fc3[0].shape[1]
    return pl.pallas_call(
        _head_kernel,
        out_shape=jax.ShapeDtypeStruct((mh, n_out), jnp.float32),
    )(pool, h2d, attn[0], attn[1], fc2[0], fc2[1], fc3[0], fc3[1])


# ---------------------------------------------------------------------------
# Wrapper-side glue (pure data movement): im2col, pooling matrix
# ---------------------------------------------------------------------------

def _im2col(x, k, stride, pad):
    """x: [B,H,W,C] NHWC -> patches [B*Ho*Wo, k*k*C] with (kh, kw, Cin) ordering."""
    if pad:
        x = jnp.pad(x, ((0, 0), (pad, pad), (pad, pad), (0, 0)))
    B, H, W, C = x.shape
    Ho = (H - k) // stride + 1
    Wo = (W - k) // stride + 1
    cols = [x[:, i:i + stride * Ho:stride, j:j + stride * Wo:stride, :]
            for i in range(k) for j in range(k)]
    cols = jnp.concatenate(cols, axis=-1)          # [B, Ho, Wo, k*k*C]
    return cols.reshape(B * Ho * Wo, k * k * C), (B, Ho, Wo)


def _pool_matrix(B, HW, mrows):
    """Constant [mrows, B*HW] matrix implementing per-image spatial mean-pool."""
    P = np.zeros((mrows, B * HW), np.float32)
    for b in range(B):
        P[b, b * HW:(b + 1) * HW] = 1.0 / HW
    return jnp.asarray(P, dtype=jnp.bfloat16)


# ---------------------------------------------------------------------------
# Deterministic parameter initialization (synthetic — no checkpoint load)
# ---------------------------------------------------------------------------

def _init_linear(key, fan_in, fan_out):
    kw, kb = jax.random.split(key)
    bound = 1.0 / math.sqrt(fan_in)
    w = jax.random.uniform(kw, (fan_in, fan_out), jnp.float32, -bound, bound)
    b = jax.random.uniform(kb, (fan_out,), jnp.float32, -bound, bound)
    return w, b


def _init_conv(key, cout, cin, k):
    kw, kb = jax.random.split(key)
    bound = 1.0 / math.sqrt(cin * k * k)
    w = jax.random.uniform(kw, (cout, cin, k, k), jnp.float32, -bound, bound)
    b = jax.random.uniform(kb, (cout,), jnp.float32, -bound, bound)
    return w, b


def init_params(key):
    keys = jax.random.split(key, 10)
    p = {}
    # scaled-down CLIP ModifiedResNet stem (conv1 s2, conv2, conv3, avgpool)
    p["conv1"] = _init_conv(keys[0], 16, 3, 3)
    p["conv2"] = _init_conv(keys[1], 16, 16, 3)
    p["conv3"] = _init_conv(keys[2], 32, 16, 3)
    # one bottleneck residual block (1x1 -> 3x3 -> 1x1 + identity)
    p["bneck1"] = _init_conv(keys[3], 8, 32, 1)
    p["bneck2"] = _init_conv(keys[4], 8, 8, 3)
    p["bneck3"] = _init_conv(keys[5], 32, 8, 1)
    # attention-pool projection to the embed dim
    p["attn_proj"] = _init_linear(keys[6], 32, FEAT)
    # classifier head (mirrors fc1/fc2/fc3 of OpenAICLIPModel, scaled down)
    p["fc1"] = _init_linear(keys[7], FEAT, FEAT)   # dead in forward (quirk)
    p["fc2"] = _init_linear(keys[8], FEAT, 64)
    p["fc3"] = _init_linear(keys[9], 64, NUM_LABELS)
    return p


def pack_params(p):
    """One-time repack into the padded, lane-dense, bf16 form the kernels consume."""

    def conv(wb, cin_pad=None, cout_pad=LANE):
        w, b = wb
        cout, cin, kh, kw = w.shape
        wt = jnp.transpose(w, (2, 3, 1, 0))                       # [kh, kw, cin, cout]
        cin_p = cin if cin_pad is None else cin_pad
        wp = jnp.zeros((kh, kw, cin_p, cout_pad), jnp.float32)
        wp = wp.at[:, :, :cin, :cout].set(wt)
        wp = wp.reshape(kh * kw * cin_p, cout_pad)
        kp = _round_up(wp.shape[0], LANE)
        if kp != wp.shape[0]:
            wp = jnp.pad(wp, ((0, kp - wp.shape[0]), (0, 0)))
        bp = jnp.zeros((1, cout_pad), jnp.float32).at[0, :cout].set(b)
        return wp.astype(jnp.bfloat16), bp

    def lin(wb, in_pad, out_pad):
        w, b = wb
        fin, fout = w.shape
        wp = jnp.zeros((in_pad, out_pad), jnp.float32).at[:fin, :fout].set(w)
        bp = jnp.zeros((1, out_pad), jnp.float32).at[0, :fout].set(b)
        return wp.astype(jnp.bfloat16), bp

    pp = {}
    pp["conv1"] = conv(p["conv1"])                    # image input: natural Cin=3, K 27->128
    pp["conv2"] = conv(p["conv2"], cin_pad=LANE)      # downstream activations are 128-padded
    pp["conv3"] = conv(p["conv3"], cin_pad=LANE)
    pp["bneck1"] = conv(p["bneck1"], cin_pad=LANE)
    pp["bneck2"] = conv(p["bneck2"], cin_pad=LANE)
    pp["bneck3"] = conv(p["bneck3"], cin_pad=LANE)
    pp["attn_proj"] = lin(p["attn_proj"], LANE, _round_up(FEAT, LANE))
    pp["fc2"] = lin(p["fc2"], _round_up(FEAT, LANE), LANE)
    pp["fc3"] = lin(p["fc3"], LANE, LANE)
    # fc1 is initialized for parity with the PyTorch module but its output is
    # discarded in the original forward, so it is not packed / not executed.
    return pp


# ---------------------------------------------------------------------------
# Forward pass
# ---------------------------------------------------------------------------

def openai_clip_forward(pp, x_nchw):
    # PyTorch NCHW -> NHWC, bf16 MXU operands (f32 accumulation inside kernels).
    x = jnp.transpose(x_nchw, (0, 2, 3, 1)).astype(jnp.bfloat16)

    # --- self.model.encode_image(inputs): scaled-down CLIP ModifiedResNet ---
    # TODO(synk): BatchNorm layers of the CLIP stem/blocks are treated as identity.
    cols, (B, H, W) = _im2col(x, 3, 2, 1)                          # [512, 27]
    cols = jnp.pad(cols, ((0, 0), (0, pp["conv1"][0].shape[0] - cols.shape[1])))
    h = conv_matmul(cols, *pp["conv1"], relu=True).reshape(B, H, W, LANE)

    cols, _ = _im2col(h, 3, 1, 1)                                  # [512, 1152]
    h = conv_matmul(cols, *pp["conv2"], relu=True).reshape(B, H, W, LANE)

    cols, _ = _im2col(h, 3, 1, 1)
    h = conv_matmul(cols, *pp["conv3"], relu=True).reshape(B, H, W, LANE)

    # avgpool(2) — tiny wrapper-side reduce on the lane-padded slab.
    h = h.reshape(B, H // 2, 2, W // 2, 2, LANE).mean(axis=(2, 4))
    Hh, Wh = H // 2, W // 2
    h2d = h.reshape(B * Hh * Wh, LANE)                             # [128, 128] bf16

    # bottleneck residual block (1x1 -> 3x3 -> 1x1 + identity), add+ReLU fused
    # into the bneck3 matmul epilogue.
    r = conv_matmul(h2d, *pp["bneck1"], relu=True)
    cols, _ = _im2col(r.reshape(B, Hh, Wh, LANE), 3, 1, 1)
    r = conv_matmul(cols, *pp["bneck2"], relu=True)
    h2d = conv_matmul(r, *pp["bneck3"], residual=h2d)

    # Fused head: mean-pool + attn-proj (+ fc1 quirk dropped as dead compute)
    # + fc2 + fc3 in a single pallas_call on VMEM-resident tiles.
    pool = _pool_matrix(B, Hh * Wh, _round_up(B, 8))
    out = head_pallas(h2d, pool, pp["attn_proj"], pp["fc2"], pp["fc3"])
    return out[:B, :NUM_LABELS]                                    # only slice at the end


if __name__ == "__main__":
    key = jax.random.PRNGKey(0)
    kp, kx = jax.random.split(key)
    raw_params = init_params(kp)
    packed = pack_params(raw_params)      # one-time weight repack (not in forward)

    # Small CLIP-style image batch: NCHW, 3 channels, 32x32.
    x = jax.random.normal(kx, (2, 3, 32, 32), dtype=jnp.float32)

    fwd = jax.jit(openai_clip_forward)
    out = fwd(packed, x)
    out = jax.block_until_ready(out)
    assert out.shape == (2, NUM_LABELS) and out.dtype == jnp.float32
    print("KERNEL_OK")
</pallas_src>

<mosaic_0001>
module attributes {stable_mosaic.version = 11 : i64} {
  func.func @_matmul_kernel(%arg0: i32, %arg1: memref<128x128xbf16, #tpu.memory_space<vmem>>, %arg2: memref<128x128xbf16, #tpu.memory_space<vmem>>, %arg3: memref<1x128xf32, #tpu.memory_space<vmem>>, %arg4: memref<128x128xbf16, #tpu.memory_space<vmem>>) attributes {dimension_semantics = [#tpu.dimension_semantics<parallel>], iteration_bounds = array<i64: 4>, scalar_prefetch = 0 : i64, scratch_operands = 0 : i64, tpu.core_type = #tpu.core_type<tc>, window_params = [{transform_indices = @transform_0, window_bounds = array<i64: 128, 128>}, {pipeline_mode = #tpu.pipeline_mode<synchronous>, transform_indices = @transform_1, window_bounds = array<i64: 128, 128>}, {pipeline_mode = #tpu.pipeline_mode<synchronous>, transform_indices = @transform_2, window_bounds = array<i64: 1, 128>}, {transform_indices = @transform_3, window_bounds = array<i64: 128, 128>}]} {
    %c0 = arith.constant 0 : index
    %c0_0 = arith.constant 0 : index
    %0 = vector.load %arg1[%c0, %c0_0] : memref<128x128xbf16, #tpu.memory_space<vmem>>, vector<128x128xbf16>
    %c0_1 = arith.constant 0 : index
    %c0_2 = arith.constant 0 : index
    %1 = vector.load %arg2[%c0_1, %c0_2] : memref<128x128xbf16, #tpu.memory_space<vmem>>, vector<128x128xbf16>
    %cst = arith.constant dense<0.000000e+00> : vector<128x128xf32>
    %2 = tpu.matmul %0, %1, %cst {dimension_numbers = #tpu.dot_dimension_numbers<[1], [0], [0], [1], [0, 0, 1, 1], [], []>} : vector<128x128xbf16>, vector<128x128xbf16>, vector<128x128xf32> -> vector<128x128xf32>
    %c0_3 = arith.constant 0 : index
    %c0_4 = arith.constant 0 : index
    %3 = vector.load %arg3[%c0_3, %c0_4] : memref<1x128xf32, #tpu.memory_space<vmem>>, vector<1x128xf32>
    %4 = vector.broadcast %3 : vector<1x128xf32> to vector<128x128xf32>
    %5 = arith.addf %2, %4 : vector<128x128xf32>
    %cst_5 = arith.constant 0.000000e+00 : f32
    %6 = vector.broadcast %cst_5 : f32 to vector<128x128xf32>
    %7 = arith.maximumf %5, %6 : vector<128x128xf32>
    %8 = arith.truncf %7 : vector<128x128xf32> to vector<128x128xbf16>
    %c0_6 = arith.constant 0 : index
    %c0_7 = arith.constant 0 : index
    %9 = vector.load %arg4[%c0_6, %c0_7] : memref<128x128xbf16, #tpu.memory_space<vmem>>, vector<128x128xbf16>
    tpu.vector_store %arg4[%c0_6, %c0_7], %8 {strides = array<i32>} : memref<128x128xbf16, #tpu.memory_space<vmem>>, vector<128x128xbf16>,
    return
  }
  func.func @transform_0(%arg0: i32) -> (i32, i32) {
    %c0_i32 = arith.constant 0 : i32
    %c0_i32_0 = arith.constant 0 : i32
    return %arg0, %c0_i32 : i32, i32
  }
  func.func @transform_1(%arg0: i32) -> (i32, i32) {
    %c0_i32 = arith.constant 0 : i32
    %c0_i32_0 = arith.constant 0 : i32
    %c0_i32_1 = arith.constant 0 : i32
    return %c0_i32, %c0_i32_0 : i32, i32
  }
  func.func @transform_2(%arg0: i32) -> (i32, i32) {
    %c0_i32 = arith.constant 0 : i32
    %c0_i32_0 = arith.constant 0 : i32
    %c0_i32_1 = arith.constant 0 : i32
    return %c0_i32, %c0_i32_0 : i32, i32
  }
  func.func @transform_3(%arg0: i32) -> (i32, i32) {
    %c0_i32 = arith.constant 0 : i32
    %c0_i32_0 = arith.constant 0 : i32
    return %arg0, %c0_i32 : i32, i32
  }
}

module attributes {stable_mosaic.version = 11 : i64} {
  func.func @_matmul_kernel(%arg0: i32, %arg1: memref<128x128xbf16, #tpu.memory_space<vmem>>, %arg2: memref<128x128xbf16, #tpu.memory_space<vmem>>, %arg3: memref<1x128xf32, #tpu.memory_space<vmem>>, %arg4: memref<128x128xbf16, #tpu.memory_space<vmem>>) attributes {dimension_semantics = [#tpu.dimension_semantics<parallel>], iteration_bounds = array<i64: 1>, scalar_prefetch = 0 : i64, scratch_operands = 0 : i64, tpu.core_type = #tpu.core_type<tc>, window_params = [{transform_indices = @transform_0, window_bounds = array<i64: 128, 128>}, {pipeline_mode = #tpu.pipeline_mode<synchronous>, transform_indices = @transform_1, window_bounds = array<i64: 128, 128>}, {pipeline_mode = #tpu.pipeline_mode<synchronous>, transform_indices = @transform_2, window_bounds = array<i64: 1, 128>}, {transform_indices = @transform_3, window_bounds = array<i64: 128, 128>}]} {
    %c0 = arith.constant 0 : index
    %c0_0 = arith.constant 0 : index
    %0 = vector.load %arg1[%c0, %c0_0] : memref<128x128xbf16, #tpu.memory_space<vmem>>, vector<128x128xbf16>
    %c0_1 = arith.constant 0 : index
    %c0_2 = arith.constant 0 : index
    %1 = vector.load %arg2[%c0_1, %c0_2] : memref<128x128xbf16, #tpu.memory_space<vmem>>, vector<128x128xbf16>
    %cst = arith.constant dense<0.000000e+00> : vector<128x128xf32>
    %2 = tpu.matmul %0, %1, %cst {dimension_numbers = #tpu.dot_dimension_numbers<[1], [0], [0], [1], [0, 0, 1, 1], [], []>} : vector<128x128xbf16>, vector<128x128xbf16>, vector<128x128xf32> -> vector<128x128xf32>
    %c0_3 = arith.constant 0 : index
    %c0_4 = arith.constant 0 : index
    %3 = vector.load %arg3[%c0_3, %c0_4] : memref<1x128xf32, #tpu.memory_space<vmem>>, vector<1x128xf32>
    %4 = vector.broadcast %3 : vector<1x128xf32> to vector<128x128xf32>
    %5 = arith.addf %2, %4 : vector<128x128xf32>
    %cst_5 = arith.constant 0.000000e+00 : f32
    %6 = vector.broadcast %cst_5 : f32 to vector<128x128xf32>
    %7 = arith.maximumf %5, %6 : vector<128x128xf32>
    %8 = arith.truncf %7 : vector<128x128xf32> to vector<128x128xbf16>
    %c0_6 = arith.constant 0 : index
    %c0_7 = arith.constant 0 : index
    %9 = vector.load %arg4[%c0_6, %c0_7] : memref<128x128xbf16, #tpu.memory_space<vmem>>, vector<128x128xbf16>
    tpu.vector_store %arg4[%c0_6, %c0_7], %8 {strides = array<i32>} : memref<128x128xbf16, #tpu.memory_space<vmem>>, vector<128x128xbf16>,
    return
  }
  func.func @transform_0(%arg0: i32) -> (i32, i32) {
    %c0_i32 = arith.constant 0 : i32
    %c0_i32_0 = arith.constant 0 : i32
    return %arg0, %c0_i32 : i32, i32
  }
  func.func @transform_1(%arg0: i32) -> (i32, i32) {
    %c0_i32 = arith.constant 0 : i32
    %c0_i32_0 = arith.constant 0 : i32
    %c0_i32_1 = arith.constant 0 : i32
    return %c0_i32, %c0_i32_0 : i32, i32
  }
  func.func @transform_2(%arg0: i32) -> (i32, i32) {
    %c0_i32 = arith.constant 0 : i32
    %c0_i32_0 = arith.constant 0 : i32
    %c0_i32_1 = arith.constant 0 : i32
    return %c0_i32, %c0_i32_0 : i32, i32
  }
  func.func @transform_3(%arg0: i32) -> (i32, i32) {
    %c0_i32 = arith.constant 0 : i32
    %c0_i32_0 = arith.constant 0 : i32
    return %arg0, %c0_i32 : i32, i32
  }
}

module attributes {stable_mosaic.version = 11 : i64} {
  func.func @_matmul_kernel(%arg0: i32, %arg1: memref<128x1152xbf16, #tpu.memory_space<vmem>>, %arg2: memref<1152x128xbf16, #tpu.memory_space<vmem>>, %arg3: memref<1x128xf32, #tpu.memory_space<vmem>>, %arg4: memref<128x128xbf16, #tpu.memory_space<vmem>>) attributes {dimension_semantics = [#tpu.dimension_semantics<parallel>], iteration_bounds = array<i64: 4>, scalar_prefetch = 0 : i64, scratch_operands = 0 : i64, tpu.core_type = #tpu.core_type<tc>, window_params = [{transform_indices = @transform_0, window_bounds = array<i64: 128, 1152>}, {pipeline_mode = #tpu.pipeline_mode<synchronous>, transform_indices = @transform_1, window_bounds = array<i64: 1152, 128>}, {pipeline_mode = #tpu.pipeline_mode<synchronous>, transform_indices = @transform_2, window_bounds = array<i64: 1, 128>}, {transform_indices = @transform_3, window_bounds = array<i64: 128, 128>}]} {
    %c0 = arith.constant 0 : index
    %c0_0 = arith.constant 0 : index
    %0 = vector.load %arg1[%c0, %c0_0] : memref<128x1152xbf16, #tpu.memory_space<vmem>>, vector<128x1152xbf16>
    %c0_1 = arith.constant 0 : index
    %c0_2 = arith.constant 0 : index
    %1 = vector.load %arg2[%c0_1, %c0_2] : memref<1152x128xbf16, #tpu.memory_space<vmem>>, vector<1152x128xbf16>
    %cst = arith.constant dense<0.000000e+00> : vector<128x128xf32>
    %2 = tpu.matmul %0, %1, %cst {dimension_numbers = #tpu.dot_dimension_numbers<[1], [0], [0], [1], [0, 0, 1, 1], [], []>} : vector<128x1152xbf16>, vector<1152x128xbf16>, vector<128x128xf32> -> vector<128x128xf32>
    %c0_3 = arith.constant 0 : index
    %c0_4 = arith.constant 0 : index
    %3 = vector.load %arg3[%c0_3, %c0_4] : memref<1x128xf32, #tpu.memory_space<vmem>>, vector<1x128xf32>
    %4 = vector.broadcast %3 : vector<1x128xf32> to vector<128x128xf32>
    %5 = arith.addf %2, %4 : vector<128x128xf32>
    %cst_5 = arith.constant 0.000000e+00 : f32
    %6 = vector.broadcast %cst_5 : f32 to vector<128x128xf32>
    %7 = arith.maximumf %5, %6 : vector<128x128xf32>
    %8 = arith.truncf %7 : vector<128x128xf32> to vector<128x128xbf16>
    %c0_6 = arith.constant 0 : index
    %c0_7 = arith.constant 0 : index
    %9 = vector.load %arg4[%c0_6, %c0_7] : memref<128x128xbf16, #tpu.memory_space<vmem>>, vector<128x128xbf16>
    tpu.vector_store %arg4[%c0_6, %c0_7], %8 {strides = array<i32>} : memref<128x128xbf16, #tpu.memory_space<vmem>>, vector<128x128xbf16>,
    return
  }
  func.func @transform_0(%arg0: i32) -> (i32, i32) {
    %c0_i32 = arith.constant 0 : i32
    %c0_i32_0 = arith.constant 0 : i32
    return %arg0, %c0_i32 : i32, i32
  }
  func.func @transform_1(%arg0: i32) -> (i32, i32) {
    %c0_i32 = arith.constant 0 : i32
    %c0_i32_0 = arith.constant 0 : i32
    %c0_i32_1 = arith.constant 0 : i32
    return %c0_i32, %c0_i32_0 : i32, i32
  }
  func.func @transform_2(%arg0: i32) -> (i32, i32) {
    %c0_i32 = arith.constant 0 : i32
    %c0_i32_0 = arith.constant 0 : i32
    %c0_i32_1 = arith.constant 0 : i32
    return %c0_i32, %c0_i32_0 : i32, i32
  }
  func.func @transform_3(%arg0: i32) -> (i32, i32) {
    %c0_i32 = arith.constant 0 : i32
    %c0_i32_0 = arith.constant 0 : i32
    return %arg0, %c0_i32 : i32, i32
  }
}

module attributes {stable_mosaic.version = 11 : i64} {
  func.func @_head_kernel(%arg0: memref<8x128xbf16, #tpu.memory_space<vmem>>, %arg1: memref<128x128xbf16, #tpu.memory_space<vmem>>, %arg2: memref<128x128xbf16, #tpu.memory_space<vmem>>, %arg3: memref<1x128xf32, #tpu.memory_space<vmem>>, %arg4: memref<128x128xbf16, #tpu.memory_space<vmem>>, %arg5: memref<1x128xf32, #tpu.memory_space<vmem>>, %arg6: memref<128x128xbf16, #tpu.memory_space<vmem>>, %arg7: memref<1x128xf32, #tpu.memory_space<vmem>>, %arg8: memref<8x128xf32, #tpu.memory_space<vmem>>) attributes {dimension_semantics = [], scalar_prefetch = 0 : i64, scratch_operands = 0 : i64, tpu.core_type = #tpu.core_type<tc>} {
    %c0 = arith.constant 0 : index
    %c0_0 = arith.constant 0 : index
    %0 = vector.load %arg0[%c0, %c0_0] : memref<8x128xbf16, #tpu.memory_space<vmem>>, vector<8x128xbf16>
    %c0_1 = arith.constant 0 : index
    %c0_2 = arith.constant 0 : index
    %1 = vector.load %arg1[%c0_1, %c0_2] : memref<128x128xbf16, #tpu.memory_space<vmem>>, vector<128x128xbf16>
    %cst = arith.constant dense<0.000000e+00> : vector<8x128xf32>
    %2 = tpu.matmul %0, %1, %cst {dimension_numbers = #tpu.dot_dimension_numbers<[1], [0], [0], [1], [0, 0, 1, 1], [], []>} : vector<8x128xbf16>, vector<128x128xbf16>, vector<8x128xf32> -> vector<8x128xf32>
    %3 = arith.truncf %2 : vector<8x128xf32> to vector<8x128xbf16>
    %c0_3 = arith.constant 0 : index
    %c0_4 = arith.constant 0 : index
    %4 = vector.load %arg2[%c0_3, %c0_4] : memref<128x128xbf16, #tpu.memory_space<vmem>>, vector<128x128xbf16>
    %cst_5 = arith.constant dense<0.000000e+00> : vector<8x128xf32>
    %5 = tpu.matmul %3, %4, %cst_5 {dimension_numbers = #tpu.dot_dimension_numbers<[1], [0], [0], [1], [0, 0, 1, 1], [], []>} : vector<8x128xbf16>, vector<128x128xbf16>, vector<8x128xf32> -> vector<8x128xf32>
    %c0_6 = arith.constant 0 : index
    %c0_7 = arith.constant 0 : index
    %6 = vector.load %arg3[%c0_6, %c0_7] : memref<1x128xf32, #tpu.memory_space<vmem>>, vector<1x128xf32>
    %7 = vector.broadcast %6 : vector<1x128xf32> to vector<8x128xf32>
    %8 = arith.addf %5, %7 : vector<8x128xf32>
    %9 = arith.truncf %8 : vector<8x128xf32> to vector<8x128xbf16>
    %c0_8 = arith.constant 0 : index
    %c0_9 = arith.constant 0 : index
    %10 = vector.load %arg4[%c0_8, %c0_9] : memref<128x128xbf16, #tpu.memory_space<vmem>>, vector<128x128xbf16>
    %cst_10 = arith.constant dense<0.000000e+00> : vector<8x128xf32>
    %11 = tpu.matmul %9, %10, %cst_10 {dimension_numbers = #tpu.dot_dimension_numbers<[1], [0], [0], [1], [0, 0, 1, 1], [], []>} : vector<8x128xbf16>, vector<128x128xbf16>, vector<8x128xf32> -> vector<8x128xf32>
    %c0_11 = arith.constant 0 : index
    %c0_12 = arith.constant 0 : index
    %12 = vector.load %arg5[%c0_11, %c0_12] : memref<1x128xf32, #tpu.memory_space<vmem>>, vector<1x128xf32>
    %13 = vector.broadcast %12 : vector<1x128xf32> to vector<8x128xf32>
    %14 = arith.addf %11, %13 : vector<8x128xf32>
    %cst_13 = arith.constant 0.000000e+00 : f32
    %15 = vector.broadcast %cst_13 : f32 to vector<8x128xf32>
    %16 = arith.maximumf %14, %15 : vector<8x128xf32>
    %17 = arith.truncf %16 : vector<8x128xf32> to vector<8x128xbf16>
    %c0_14 = arith.constant 0 : index
    %c0_15 = arith.constant 0 : index
    %18 = vector.load %arg6[%c0_14, %c0_15] : memref<128x128xbf16, #tpu.memory_space<vmem>>, vector<128x128xbf16>
    %cst_16 = arith.constant dense<0.000000e+00> : vector<8x128xf32>
    %19 = tpu.matmul %17, %18, %cst_16 {dimension_numbers = #tpu.dot_dimension_numbers<[1], [0], [0], [1], [0, 0, 1, 1], [], []>} : vector<8x128xbf16>, vector<128x128xbf16>, vector<8x128xf32> -> vector<8x128xf32>
    %c0_17 = arith.constant 0 : index
    %c0_18 = arith.constant 0 : index
    %20 = vector.load %arg7[%c0_17, %c0_18] : memref<1x128xf32, #tpu.memory_space<vmem>>, vector<1x128xf32>
    %21 = vector.broadcast %20 : vector<1x128xf32> to vector<8x128xf32>
    %22 = arith.addf %19, %21 : vector<8x128xf32>
    %c0_19 = arith.constant 0 : index
    %c0_20 = arith.constant 0 : index
    %23 = vector.load %arg8[%c0_19, %c0_20] : memref<8x128xf32, #tpu.memory_space<vmem>>, vector<8x128xf32>
    tpu.vector_store %arg8[%c0_19, %c0_20], %22 {strides = array<i32>} : memref<8x128xf32, #tpu.memory_space<vmem>>, vector<8x128xf32>,
    return
  }
}

module attributes {stable_mosaic.version = 11 : i64} {
  func.func @_matmul_residual_relu_kernel(%arg0: i32, %arg1: memref<128x128xbf16, #tpu.memory_space<vmem>>, %arg2: memref<128x128xbf16, #tpu.memory_space<vmem>>, %arg3: memref<1x128xf32, #tpu.memory_space<vmem>>, %arg4: memref<128x128xbf16, #tpu.memory_space<vmem>>, %arg5: memref<128x128xbf16, #tpu.memory_space<vmem>>) attributes {dimension_semantics = [#tpu.dimension_semantics<parallel>], iteration_bounds = array<i64: 1>, scalar_prefetch = 0 : i64, scratch_operands = 0 : i64, tpu.core_type = #tpu.core_type<tc>, window_params = [{transform_indices = @transform_0, window_bounds = array<i64: 128, 128>}, {pipeline_mode = #tpu.pipeline_mode<synchronous>, transform_indices = @transform_1, window_bounds = array<i64: 128, 128>}, {pipeline_mode = #tpu.pipeline_mode<synchronous>, transform_indices = @transform_2, window_bounds = array<i64: 1, 128>}, {transform_indices = @transform_3, window_bounds = array<i64: 128, 128>}, {transform_indices = @transform_4, window_bounds = array<i64: 128, 128>}]} {
    %c0 = arith.constant 0 : index
    %c0_0 = arith.constant 0 : index
    %0 = vector.load %arg1[%c0, %c0_0] : memref<128x128xbf16, #tpu.memory_space<vmem>>, vector<128x128xbf16>
    %c0_1 = arith.constant 0 : index
    %c0_2 = arith.constant 0 : index
    %1 = vector.load %arg2[%c0_1, %c0_2] : memref<128x128xbf16, #tpu.memory_space<vmem>>, vector<128x128xbf16>
    %cst = arith.constant dense<0.000000e+00> : vector<128x128xf32>
    %2 = tpu.matmul %0, %1, %cst {dimension_numbers = #tpu.dot_dimension_numbers<[1], [0], [0], [1], [0, 0, 1, 1], [], []>} : vector<128x128xbf16>, vector<128x128xbf16>, vector<128x128xf32> -> vector<128x128xf32>
    %c0_3 = arith.constant 0 : index
    %c0_4 = arith.constant 0 : index
    %3 = vector.load %arg3[%c0_3, %c0_4] : memref<1x128xf32, #tpu.memory_space<vmem>>, vector<1x128xf32>
    %4 = vector.broadcast %3 : vector<1x128xf32> to vector<128x128xf32>
    %5 = arith.addf %2, %4 : vector<128x128xf32>
    %c0_5 = arith.constant 0 : index
    %c0_6 = arith.constant 0 : index
    %6 = vector.load %arg4[%c0_5, %c0_6] : memref<128x128xbf16, #tpu.memory_space<vmem>>, vector<128x128xbf16>
    %7 = arith.extf %6 : vector<128x128xbf16> to vector<128x128xf32>
    %8 = arith.addf %5, %7 : vector<128x128xf32>
    %cst_7 = arith.constant 0.000000e+00 : f32
    %9 = vector.broadcast %cst_7 : f32 to vector<128x128xf32>
    %10 = arith.maximumf %8, %9 : vector<128x128xf32>
    %11 = arith.truncf %10 : vector<128x128xf32> to vector<128x128xbf16>
    %c0_8 = arith.constant 0 : index
    %c0_9 = arith.constant 0 : index
    %12 = vector.load %arg5[%c0_8, %c0_9] : memref<128x128xbf16, #tpu.memory_space<vmem>>, vector<128x128xbf16>
    tpu.vector_store %arg5[%c0_8, %c0_9], %11 {strides = array<i32>} : memref<128x128xbf16, #tpu.memory_space<vmem>>, vector<128x128xbf16>,
    return
  }
  func.func @transform_0(%arg0: i32) -> (i32, i32) {
    %c0_i32 = arith.constant 0 : i32
    %c0_i32_0 = arith.constant 0 : i32
    return %arg0, %c0_i32 : i32, i32
  }
  func.func @transform_1(%arg0: i32) -> (i32, i32) {
    %c0_i32 = arith.constant 0 : i32
    %c0_i32_0 = arith.constant 0 : i32
    %c0_i32_1 = arith.constant 0 : i32
    return %c0_i32, %c0_i32_0 : i32, i32
  }
  func.func @transform_2(%arg0: i32) -> (i32, i32) {
    %c0_i32 = arith.constant 0 : i32
    %c0_i32_0 = arith.constant 0 : i32
    %c0_i32_1 = arith.constant 0 : i32
    return %c0_i32, %c0_i32_0 : i32, i32
  }
  func.func @transform_3(%arg0: i32) -> (i32, i32) {
    %c0_i32 = arith.constant 0 : i32
    %c0_i32_0 = arith.constant 0 : i32
    return %arg0, %c0_i32 : i32, i32
  }
  func.func @transform_4(%arg0: i32) -> (i32, i32) {
    %c0_i32 = arith.constant 0 : i32
    %c0_i32_0 = arith.constant 0 : i32
    return %arg0, %c0_i32 : i32, i32
  }
}

module attributes {stable_mosaic.version = 11 : i64} {
  func.func @_matmul_kernel(%arg0: i32, %arg1: memref<128x1152xbf16, #tpu.memory_space<vmem>>, %arg2: memref<1152x128xbf16, #tpu.memory_space<vmem>>, %arg3: memref<1x128xf32, #tpu.memory_space<vmem>>, %arg4: memref<128x128xbf16, #tpu.memory_space<vmem>>) attributes {dimension_semantics = [#tpu.dimension_semantics<parallel>], iteration_bounds = array<i64: 1>, scalar_prefetch = 0 : i64, scratch_operands = 0 : i64, tpu.core_type = #tpu.core_type<tc>, window_params = [{transform_indices = @transform_0, window_bounds = array<i64: 128, 1152>}, {pipeline_mode = #tpu.pipeline_mode<synchronous>, transform_indices = @transform_1, window_bounds = array<i64: 1152, 128>}, {pipeline_mode = #tpu.pipeline_mode<synchronous>, transform_indices = @transform_2, window_bounds = array<i64: 1, 128>}, {transform_indices = @transform_3, window_bounds = array<i64: 128, 128>}]} {
    %c0 = arith.constant 0 : index
    %c0_0 = arith.constant 0 : index
    %0 = vector.load %arg1[%c0, %c0_0] : memref<128x1152xbf16, #tpu.memory_space<vmem>>, vector<128x1152xbf16>
    %c0_1 = arith.constant 0 : index
    %c0_2 = arith.constant 0 : index
    %1 = vector.load %arg2[%c0_1, %c0_2] : memref<1152x128xbf16, #tpu.memory_space<vmem>>, vector<1152x128xbf16>
    %cst = arith.constant dense<0.000000e+00> : vector<128x128xf32>
    %2 = tpu.matmul %0, %1, %cst {dimension_numbers = #tpu.dot_dimension_numbers<[1], [0], [0], [1], [0, 0, 1, 1], [], []>} : vector<128x1152xbf16>, vector<1152x128xbf16>, vector<128x128xf32> -> vector<128x128xf32>
    %c0_3 = arith.constant 0 : index
    %c0_4 = arith.constant 0 : index
    %3 = vector.load %arg3[%c0_3, %c0_4] : memref<1x128xf32, #tpu.memory_space<vmem>>, vector<1x128xf32>
    %4 = vector.broadcast %3 : vector<1x128xf32> to vector<128x128xf32>
    %5 = arith.addf %2, %4 : vector<128x128xf32>
    %cst_5 = arith.constant 0.000000e+00 : f32
    %6 = vector.broadcast %cst_5 : f32 to vector<128x128xf32>
    %7 = arith.maximumf %5, %6 : vector<128x128xf32>
    %8 = arith.truncf %7 : vector<128x128xf32> to vector<128x128xbf16>
    %c0_6 = arith.constant 0 : index
    %c0_7 = arith.constant 0 : index
    %9 = vector.load %arg4[%c0_6, %c0_7] : memref<128x128xbf16, #tpu.memory_space<vmem>>, vector<128x128xbf16>
    tpu.vector_store %arg4[%c0_6, %c0_7], %8 {strides = array<i32>} : memref<128x128xbf16, #tpu.memory_space<vmem>>, vector<128x128xbf16>,
    return
  }
  func.func @transform_0(%arg0: i32) -> (i32, i32) {
    %c0_i32 = arith.constant 0 : i32
    %c0_i32_0 = arith.constant 0 : i32
    return %arg0, %c0_i32 : i32, i32
  }
  func.func @transform_1(%arg0: i32) -> (i32, i32) {
    %c0_i32 = arith.constant 0 : i32
    %c0_i32_0 = arith.constant 0 : i32
    %c0_i32_1 = arith.constant 0 : i32
    return %c0_i32, %c0_i32_0 : i32, i32
  }
  func.func @transform_2(%arg0: i32) -> (i32, i32) {
    %c0_i32 = arith.constant 0 : i32
    %c0_i32_0 = arith.constant 0 : i32
    %c0_i32_1 = arith.constant 0 : i32
    return %c0_i32, %c0_i32_0 : i32, i32
  }
  func.func @transform_3(%arg0: i32) -> (i32, i32) {
    %c0_i32 = arith.constant 0 : i32
    %c0_i32_0 = arith.constant 0 : i32
    return %arg0, %c0_i32 : i32, i32
  }
}

</mosaic_0001>

<bundles_post_ra>
// kernel: openai_clip_forward.7
= control target key start
LH: loop header
LB: loop body
LE: loop exit
PB: predicated region body
PF: predicated region fallthrough
CT: control target
= control target key end

     0   :  { %s658_s12 = smov 0   ;;  %s719_s0 = inlined_call_operand.vmem [shape: bf16[512,128], index: 0, kind: input, shape index: {}]   ;;  %s720_s1 = inlined_call_operand.vmem [shape: bf16[128,128], index: 1, kind: input, shape index: {}]   ;;  %s721_s2 = inlined_call_operand.vmem [shape: f32[1,128], index: 2, kind: input, shape index: {}]   ;;  %s722_s3 = inlined_call_operand.vmem [shape: bf16[512,128], index: 3, kind: output, shape index: {}]  }
   0x1 LB: > { %s459_s13 = sadd.s32 4294967295, %s636_s12   ;;  %p463_p0 = scmp.ge.s32.totalorder %s636_s12, 1  ;;  %s636_s12 = sphi %s658_s12, %s13_s12  }
   0x2   : > { %p138_p1 = scmp.lt.s32.totalorder %s636_s12, 5 }
   0x4   : > { %p139_p2 = pnand %p463_p0, %p138_p1 }
   0x5   : > { %s464_s22 = sshll.u32 (!%p139_p2), %s459_s13, 4 }
   0x6   : > { %142 = sbr.rel (%p139_p2) target bundleno = 208 (0xd0), region = 32  ;;  %p163_p3 = scmp.lt.s32.totalorder (!%p139_p2), %s464_s22, 63 }
   0xb   : > { %v549_v0 = vld [vmem:[%s720_s1 + $0x38] sm:$0xff]  ;;  %v548_v1 = vld [vmem:[%s720_s1 + $0x30] sm:$0xff]  ;;  %v547_v2 = vld [vmem:[%s720_s1 + $0x28] sm:$0xff]  ;;  %s724_s22 = smov (!%p163_p3, %s464_s22), 63 }
   0xc   : > { %306 = vmatpush.bf16.msra.mxu0 %v549_v0  ;;  %597 = vmatpush.bf16.msra.mxu1 %v549_v0  ;;  %v546_v3 = vld [vmem:[%s720_s1 + $0x20] sm:$0xff]  ;;  %v545_v4 = vld [vmem:[%s720_s1 + $0x18] sm:$0xff]  ;;  %v544_v5 = vld [vmem:[%s720_s1 + $0x10] sm:$0xff]  ;;  %s465_s29 = sshll.u32 %s724_s22, 2 }
   0xd   : > { %598 = vmatpush.bf16.msra.mxu2 %v549_v0  ;;  %599 = vmatpush.bf16.msra.mxu3 %v549_v0  ;;  %v543_v6 = vld [vmem:[%s720_s1 + $0x8] sm:$0xff]  ;;  %v542_v7 = vld [vmem:[%s720_s1] sm:$0xff]  ;;  %s166_s7 = scalar_lea.vmem %s719_s0, %s465_s29  ;;  %s706_s13 = scalar_lea.vmem %s722_s3, %s465_s29 }
   0xe   : > { %v534_v8 = vld [vmem:[%s166_s7] sm:$0xff]  ;;  %v536_v9 = vld [vmem:[%s166_s7 + $0x10] sm:$0xff]  ;;  %v535_v12 = vld [vmem:[%s166_s7 + $0x8] sm:$0xff] }
   0xf   : > { %v538_v10 = vld [vmem:[%s166_s7 + $0x20] sm:$0xff]  ;;  %v540_v11 = vld [vmem:[%s166_s7 + $0x30] sm:$0xff]  ;;  %v537_v13 = vld [vmem:[%s166_s7 + $0x18] sm:$0xff] }
  0x10   : > { %307 = vmatpush.bf16.msra.mxu0 %v548_v1  ;;  %600 = vmatpush.bf16.msra.mxu1 %v548_v1  ;;  %v539_v14 = vld [vmem:[%s166_s7 + $0x28] sm:$0xff]  ;;  %v541_v15 = vld [vmem:[%s166_s7 + $0x38] sm:$0xff]  ;;  %v629_v18 = vld [vmem:[%s721_s2] ss:$0 sm:$0xff] }
  0x11   : > { %601 = vmatpush.bf16.msra.mxu2 %v548_v1  ;;  %602 = vmatpush.bf16.msra.mxu3 %v548_v1 }
  0x14   : > { %308 = vmatpush.bf16.msra.mxu0 %v547_v2  ;;  %603 = vmatpush.bf16.msra.mxu1 %v547_v2 }
  0x15   : > { %604 = vmatpush.bf16.msra.mxu2 %v547_v2  ;;  %605 = vmatpush.bf16.msra.mxu3 %v547_v2 }
  0x18   : > { %309 = vmatpush.bf16.msra.mxu0 %v546_v3  ;;  %606 = vmatpush.bf16.msra.mxu1 %v546_v3 }
  0x19   : > { %607 = vmatpush.bf16.msra.mxu2 %v546_v3  ;;  %608 = vmatpush.bf16.msra.mxu3 %v546_v3 }
  0x1c   : > { %310 = vmatpush.bf16.msra.mxu0 %v545_v4  ;;  %609 = vmatpush.bf16.msra.mxu1 %v545_v4 }
  0x1d   : > { %610 = vmatpush.bf16.msra.mxu2 %v545_v4  ;;  %611 = vmatpush.bf16.msra.mxu3 %v545_v4 }
  0x20   : > { %311 = vmatpush.bf16.msra.mxu0 %v544_v5  ;;  %612 = vmatpush.bf16.msra.mxu1 %v544_v5 }
  0x21   : > { %613 = vmatpush.bf16.msra.mxu2 %v544_v5  ;;  %614 = vmatpush.bf16.msra.mxu3 %v544_v5 }
  0x24   : > { %312 = vmatpush.bf16.msra.mxu0 %v543_v6  ;;  %615 = vmatpush.bf16.msra.mxu1 %v543_v6 }
  0x25   : > { %616 = vmatpush.bf16.msra.mxu2 %v543_v6  ;;  %617 = vmatpush.bf16.msra.mxu3 %v543_v6 }
  0x28   : > { %313 = vmatpush.bf16.msra.mxu0 %v542_v7  ;;  %618 = vmatpush.bf16.msra.mxu1 %v542_v7 }
  0x29   : > { %619 = vmatpush.bf16.msra.mxu2 %v542_v7  ;;  %620 = vmatpush.bf16.msra.mxu3 %v542_v7 }
  0x2b   : > { %314 = vmatmul.bf16.vlgmr.msra.gmra.mxu0 %v534_v8  ;;  %324 = vmatmul.bf16.vlgmr.msra.gmra.mxu1 %v536_v9 }
  0x2c   : > { %334 = vmatmul.bf16.vlgmr.msra.gmra.mxu2 %v538_v10  ;;  %344 = vmatmul.bf16.vlgmr.msra.gmra.mxu3 %v540_v11 }
  0x3b   : > { %319 = vmatmul.bf16.gmra.mxu0 %v535_v12  ;;  %329 = vmatmul.bf16.gmra.mxu1 %v537_v13 }
  0x3c   : > { %339 = vmatmul.bf16.gmra.mxu2 %v539_v14  ;;  %349 = vmatmul.bf16.gmra.mxu3 %v541_v15 }
  0xa8   : > { %v315_v16 = vpop.f32.mrf.mxu0  ;;  %v325_v17 = vpop.f32.mrf.mxu1 }
  0xa9   : > { %v316_v19 = vadd.f32 %v629_v18, %v315_v16  ;;  %v326_v20 = vadd.f32 %v629_v18, %v325_v17 }
  0xab   : > { %v355_v27 = vmax.f32 %v316_v19, 0.0  ;;  %v359_v28 = vmax.f32 %v326_v20, 0.0 }
  0xaf   : > { %v335_v21 = vpop.f32.mrf.mxu2  ;;  %v345_v22 = vpop.f32.mrf.mxu3 }
  0xb0   : > { %v317_v23 = vpop.f32.mrf.mxu0  ;;  %v327_v24 = vpop.f32.mrf.mxu1  ;;  %v336_v33 = vadd.f32 %v629_v18, %v335_v21  ;;  %v346_v34 = vadd.f32 %v629_v18, %v345_v22 }
  0xb1   : > { %v318_v25 = vadd.f32 %v629_v18, %v317_v23  ;;  %v328_v26 = vadd.f32 %v629_v18, %v327_v24 }
  0xb2   : > { %v363_v41 = vmax.f32 %v336_v33, 0.0  ;;  %v367_v42 = vmax.f32 %v346_v34, 0.0 }
  0xb3   : > { %v356_v29 = vmax.f32 %v318_v25, 0.0  ;;  %v360_v30 = vmax.f32 %v328_v26, 0.0 }
  0xb5   : > { %v553_v31 = vpack.c.bf16 %v356_v29, %v355_v27  ;;  %v563_v32 = vpack.c.bf16 %v360_v30, %v359_v28 }
  0xb7   : > { %554 = vst [vmem:[%s706_s13] sm:$0xff] %v553_v31   ;;  %v337_v35 = vpop.f32.mrf.mxu2  ;;  %v347_v36 = vpop.f32.mrf.mxu3 }
  0xb8   : > { %591 = vst [vmem:[%s706_s13 + $0x10] sm:$0xff] %v563_v32   ;;  %v338_v37 = vadd.f32 %v629_v18, %v337_v35  ;;  %v348_v38 = vadd.f32 %v629_v18, %v347_v36  ;;  %v320_v39 = vpop.f32.mrf.mxu0  ;;  %v330_v40 = vpop.f32.mrf.mxu1 }
  0xb9   : > { %v321_v47 = vadd.f32 %v629_v18, %v320_v39  ;;  %v331_v48 = vadd.f32 %v629_v18, %v330_v40 }
  0xba   : > { %v364_v43 = vmax.f32 %v338_v37, 0.0  ;;  %v368_v44 = vmax.f32 %v348_v38, 0.0 }
  0xbb   : > { %v357_v55 = vmax.f32 %v321_v47, 0.0  ;;  %v361_v56 = vmax.f32 %v331_v48, 0.0 }
  0xbc   : > { %v573_v45 = vpack.c.bf16 %v364_v43, %v363_v41  ;;  %v583_v46 = vpack.c.bf16 %v368_v44, %v367_v42 }
  0xbe   : > { %593 = vst [vmem:[%s706_s13 + $0x20] sm:$0xff] %v573_v45  }
  0xbf   : > { %595 = vst [vmem:[%s706_s13 + $0x30] sm:$0xff] %v583_v46   ;;  %v340_v49 = vpop.f32.mrf.mxu2  ;;  %v350_v50 = vpop.f32.mrf.mxu3 }
  0xc0   : > { %v322_v51 = vpop.f32.mrf.mxu0  ;;  %v332_v52 = vpop.f32.mrf.mxu1  ;;  %v341_v61 = vadd.f32 %v629_v18, %v340_v49  ;;  %v351_v62 = vadd.f32 %v629_v18, %v350_v50 }
  0xc1   : > { %v323_v53 = vadd.f32 %v629_v18, %v322_v51  ;;  %v333_v54 = vadd.f32 %v629_v18, %v332_v52 }
  0xc2   : > { %v365_v3 = vmax.f32 %v341_v61, 0.0  ;;  %v369_v4 = vmax.f32 %v351_v62, 0.0 }
  0xc3   : > { %v358_v57 = vmax.f32 %v323_v53, 0.0  ;;  %v362_v58 = vmax.f32 %v333_v54, 0.0 }
  0xc5   : > { %v558_v59 = vpack.c.bf16 %v358_v57, %v357_v55  ;;  %v568_v60 = vpack.c.bf16 %v362_v58, %v361_v56 }
  0xc7   : > { %590 = vst [vmem:[%s706_s13 + $0x8] sm:$0xff] %v558_v59   ;;  %v342_v63 = vpop.f32.mrf.mxu2  ;;  %v352_v0 = vpop.f32.mrf.mxu3 }
  0xc8   : > { %592 = vst [vmem:[%s706_s13 + $0x18] sm:$0xff] %v568_v60   ;;  %v343_v1 = vadd.f32 %v629_v18, %v342_v63  ;;  %v353_v2 = vadd.f32 %v629_v18, %v352_v0 }
  0xca   : > { %v366_v5 = vmax.f32 %v343_v1, 0.0  ;;  %v370_v6 = vmax.f32 %v353_v2, 0.0 }
  0xcc   : > { %v578_v7 = vpack.c.bf16 %v366_v5, %v365_v3  ;;  %v588_v8 = vpack.c.bf16 %v370_v6, %v369_v4 }
  0xce   : > { %594 = vst [vmem:[%s706_s13 + $0x28] sm:$0xff] %v578_v7  }
  0xcf   : > { %596 = vst [vmem:[%s706_s13 + $0x38] sm:$0xff] %v588_v8  }
  0xd0 PF: > { %s13_s12 = sadd.s32 1, %s636_s12  }
  0xd1   : > { %p10_p4 = scmp.ge.s32.totalorder %s13_s12, 6  }
  0xd3   :  { %12 = sbr.rel (!%p10_p4) target bundleno = 1 (0x1), region = 62 }

// kernel: openai_clip_forward.10
= control target key start
LH: loop header
LB: loop body
LE: loop exit
PB: predicated region body
PF: predicated region fallthrough
CT: control target
= control target key end

     0   :  { %s494_s1 = inlined_call_operand.vmem [shape: bf16[128,128], index: 1, kind: input, shape index: {}]   ;;  %s495_s2 = inlined_call_operand.vmem [shape: f32[1,128], index: 2, kind: input, shape index: {}]   ;;  %s496_s0 = inlined_call_operand.vmem [shape: bf16[128,128], index: 0, kind: input, shape index: {}]   ;;  %s497_s3 = inlined_call_operand.vmem [shape: bf16[128,128], index: 3, kind: output, shape index: {}]  }
   0x1   :  { %v326_v0 = vld [vmem:[%s494_s1 + $0x38] sm:$0xff]  ;;  %v325_v1 = vld [vmem:[%s494_s1 + $0x30] sm:$0xff]  ;;  %v324_v2 = vld [vmem:[%s494_s1 + $0x28] sm:$0xff] }
   0x2   :  { %146 = vmatpush.bf16.msra.mxu0 %v326_v0  ;;  %374 = vmatpush.bf16.msra.mxu1 %v326_v0  ;;  %v323_v3 = vld [vmem:[%s494_s1 + $0x20] sm:$0xff]  ;;  %v322_v4 = vld [vmem:[%s494_s1 + $0x18] sm:$0xff]  ;;  %v321_v5 = vld [vmem:[%s494_s1 + $0x10] sm:$0xff] }
   0x3   :  { %375 = vmatpush.bf16.msra.mxu2 %v326_v0  ;;  %376 = vmatpush.bf16.msra.mxu3 %v326_v0  ;;  %v320_v6 = vld [vmem:[%s494_s1 + $0x8] sm:$0xff]  ;;  %v319_v7 = vld [vmem:[%s494_s1] sm:$0xff]  ;;  %v313_v9 = vld [vmem:[%s496_s0 + $0x10] sm:$0xff] }
   0x4   :  { %v311_v8 = vld [vmem:[%s496_s0] sm:$0xff]  ;;  %v317_v11 = vld [vmem:[%s496_s0 + $0x30] sm:$0xff]  ;;  %v312_v12 = vld [vmem:[%s496_s0 + $0x8] sm:$0xff] }
   0x5   :  { %v315_v10 = vld [vmem:[%s496_s0 + $0x20] sm:$0xff]  ;;  %v314_v13 = vld [vmem:[%s496_s0 + $0x18] sm:$0xff]  ;;  %v316_v14 = vld [vmem:[%s496_s0 + $0x28] sm:$0xff] }
   0x6   :  { %147 = vmatpush.bf16.msra.mxu0 %v325_v1  ;;  %377 = vmatpush.bf16.msra.mxu1 %v325_v1  ;;  %v318_v15 = vld [vmem:[%s496_s0 + $0x38] sm:$0xff]  ;;  %v398_v18 = vld [vmem:[%s495_s2] ss:$0 sm:$0xff] }
   0x7   :  { %378 = vmatpush.bf16.msra.mxu2 %v325_v1  ;;  %379 = vmatpush.bf16.msra.mxu3 %v325_v1 }
   0xa   :  { %148 = vmatpush.bf16.msra.mxu0 %v324_v2  ;;  %380 = vmatpush.bf16.msra.mxu1 %v324_v2 }
   0xb   :  { %381 = vmatpush.bf16.msra.mxu2 %v324_v2  ;;  %382 = vmatpush.bf16.msra.mxu3 %v324_v2 }
   0xe   :  { %149 = vmatpush.bf16.msra.mxu0 %v323_v3  ;;  %383 = vmatpush.bf16.msra.mxu1 %v323_v3 }
   0xf   :  { %384 = vmatpush.bf16.msra.mxu2 %v323_v3  ;;  %385 = vmatpush.bf16.msra.mxu3 %v323_v3 }
  0x12   :  { %150 = vmatpush.bf16.msra.mxu0 %v322_v4  ;;  %386 = vmatpush.bf16.msra.mxu1 %v322_v4 }
  0x13   :  { %387 = vmatpush.bf16.msra.mxu2 %v322_v4  ;;  %388 = vmatpush.bf16.msra.mxu3 %v322_v4 }
  0x16   :  { %151 = vmatpush.bf16.msra.mxu0 %v321_v5  ;;  %389 = vmatpush.bf16.msra.mxu1 %v321_v5 }
  0x17   :  { %390 = vmatpush.bf16.msra.mxu2 %v321_v5  ;;  %391 = vmatpush.bf16.msra.mxu3 %v321_v5 }
  0x1a   :  { %152 = vmatpush.bf16.msra.mxu0 %v320_v6  ;;  %392 = vmatpush.bf16.msra.mxu1 %v320_v6 }
  0x1b   :  { %393 = vmatpush.bf16.msra.mxu2 %v320_v6  ;;  %394 = vmatpush.bf16.msra.mxu3 %v320_v6 }
  0x1e   :  { %153 = vmatpush.bf16.msra.mxu0 %v319_v7  ;;  %395 = vmatpush.bf16.msra.mxu1 %v319_v7 }
  0x1f   :  { %396 = vmatpush.bf16.msra.mxu2 %v319_v7  ;;  %397 = vmatpush.bf16.msra.mxu3 %v319_v7 }
  0x21   :  { %154 = vmatmul.bf16.vlgmr.msra.gmra.mxu0 %v311_v8  ;;  %164 = vmatmul.bf16.vlgmr.msra.gmra.mxu1 %v313_v9 }
  0x22   :  { %174 = vmatmul.bf16.vlgmr.msra.gmra.mxu2 %v315_v10  ;;  %184 = vmatmul.bf16.vlgmr.msra.gmra.mxu3 %v317_v11 }
  0x31   :  { %159 = vmatmul.bf16.gmra.mxu0 %v312_v12  ;;  %169 = vmatmul.bf16.gmra.mxu1 %v314_v13 }
  0x32   :  { %179 = vmatmul.bf16.gmra.mxu2 %v316_v14  ;;  %189 = vmatmul.bf16.gmra.mxu3 %v318_v15 }
  0x9e   :  { %v155_v16 = vpop.f32.mrf.mxu0  ;;  %v165_v17 = vpop.f32.mrf.mxu1 }
  0x9f   :  { %v156_v19 = vadd.f32 %v398_v18, %v155_v16  ;;  %v166_v20 = vadd.f32 %v398_v18, %v165_v17 }
  0xa1   :  { %v195_v27 = vmax.f32 %v156_v19, 0.0  ;;  %v199_v28 = vmax.f32 %v166_v20, 0.0 }
  0xa5   :  { %v175_v21 = vpop.f32.mrf.mxu2  ;;  %v185_v22 = vpop.f32.mrf.mxu3 }
  0xa6   :  { %v157_v23 = vpop.f32.mrf.mxu0  ;;  %v167_v24 = vpop.f32.mrf.mxu1  ;;  %v176_v33 = vadd.f32 %v398_v18, %v175_v21  ;;  %v186_v34 = vadd.f32 %v398_v18, %v185_v22 }
  0xa7   :  { %v158_v25 = vadd.f32 %v398_v18, %v157_v23  ;;  %v168_v26 = vadd.f32 %v398_v18, %v167_v24 }
  0xa8   :  { %v203_v41 = vmax.f32 %v176_v33, 0.0  ;;  %v207_v42 = vmax.f32 %v186_v34, 0.0 }
  0xa9   :  { %v196_v29 = vmax.f32 %v158_v25, 0.0  ;;  %v200_v30 = vmax.f32 %v168_v26, 0.0 }
  0xab   :  { %v330_v31 = vpack.c.bf16 %v196_v29, %v195_v27  ;;  %v340_v32 = vpack.c.bf16 %v200_v30, %v199_v28 }
  0xad   :  { %331 = vst [vmem:[%s497_s3] sm:$0xff] %v330_v31   ;;  %v177_v35 = vpop.f32.mrf.mxu2  ;;  %v187_v36 = vpop.f32.mrf.mxu3 }
  0xae   :  { %368 = vst [vmem:[%s497_s3 + $0x10] sm:$0xff] %v340_v32   ;;  %v178_v37 = vadd.f32 %v398_v18, %v177_v35  ;;  %v188_v38 = vadd.f32 %v398_v18, %v187_v36  ;;  %v160_v39 = vpop.f32.mrf.mxu0  ;;  %v170_v40 = vpop.f32.mrf.mxu1 }
  0xaf   :  { %v161_v47 = vadd.f32 %v398_v18, %v160_v39  ;;  %v171_v48 = vadd.f32 %v398_v18, %v170_v40 }
  0xb0   :  { %v204_v43 = vmax.f32 %v178_v37, 0.0  ;;  %v208_v44 = vmax.f32 %v188_v38, 0.0 }
  0xb1   :  { %v197_v55 = vmax.f32 %v161_v47, 0.0  ;;  %v201_v56 = vmax.f32 %v171_v48, 0.0 }
  0xb2   :  { %v350_v45 = vpack.c.bf16 %v204_v43, %v203_v41  ;;  %v360_v46 = vpack.c.bf16 %v208_v44, %v207_v42 }
  0xb4   :  { %370 = vst [vmem:[%s497_s3 + $0x20] sm:$0xff] %v350_v45  }
  0xb5   :  { %372 = vst [vmem:[%s497_s3 + $0x30] sm:$0xff] %v360_v46   ;;  %v180_v49 = vpop.f32.mrf.mxu2  ;;  %v190_v50 = vpop.f32.mrf.mxu3 }
  0xb6   :  { %v162_v51 = vpop.f32.mrf.mxu0  ;;  %v172_v52 = vpop.f32.mrf.mxu1  ;;  %v181_v61 = vadd.f32 %v398_v18, %v180_v49  ;;  %v191_v62 = vadd.f32 %v398_v18, %v190_v50 }
  0xb7   :  { %v163_v53 = vadd.f32 %v398_v18, %v162_v51  ;;  %v173_v54 = vadd.f32 %v398_v18, %v172_v52 }
  0xb8   :  { %v205_v3 = vmax.f32 %v181_v61, 0.0  ;;  %v209_v4 = vmax.f32 %v191_v62, 0.0 }
  0xb9   :  { %v198_v57 = vmax.f32 %v163_v53, 0.0  ;;  %v202_v58 = vmax.f32 %v173_v54, 0.0 }
  0xbb   :  { %v335_v59 = vpack.c.bf16 %v198_v57, %v197_v55  ;;  %v345_v60 = vpack.c.bf16 %v202_v58, %v201_v56 }
  0xbd   :  { %367 = vst [vmem:[%s497_s3 + $0x8] sm:$0xff] %v335_v59   ;;  %v182_v63 = vpop.f32.mrf.mxu2  ;;  %v192_v0 = vpop.f32.mrf.mxu3 }
  0xbe   :  { %369 = vst [vmem:[%s497_s3 + $0x18] sm:$0xff] %v345_v60   ;;  %v183_v1 = vadd.f32 %v398_v18, %v182_v63  ;;  %v193_v2 = vadd.f32 %v398_v18, %v192_v0 }
  0xc0   :  { %v206_v5 = vmax.f32 %v183_v1, 0.0  ;;  %v210_v6 = vmax.f32 %v193_v2, 0.0 }
  0xc2   :  { %v355_v7 = vpack.c.bf16 %v206_v5, %v205_v3  ;;  %v365_v8 = vpack.c.bf16 %v210_v6, %v209_v4 }
  0xc4   :  { %371 = vst [vmem:[%s497_s3 + $0x28] sm:$0xff] %v355_v7  }
  0xc5   :  { %373 = vst [vmem:[%s497_s3 + $0x38] sm:$0xff] %v365_v8  }

// kernel: openai_clip_forward.13
= control target key start
LH: loop header
LB: loop body
LE: loop exit
PB: predicated region body
PF: predicated region fallthrough
CT: control target
= control target key end

     0   :  { %s678_s1 = inlined_call_operand.vmem [shape: bf16[128,128], index: 1, kind: input, shape index: {}]   ;;  %s679_s2 = inlined_call_operand.vmem [shape: bf16[128,128], index: 2, kind: input, shape index: {}]   ;;  %s680_s0 = inlined_call_operand.vmem [shape: bf16[8,128], index: 0, kind: input, shape index: {}]   ;;  %s681_s3 = inlined_call_operand.vmem [shape: f32[1,128], index: 3, kind: input, shape index: {}]   ;;  %s682_s4 = inlined_call_operand.vmem [shape: bf16[128,128], index: 4, kind: input, shape index: {}]   ;;  %s683_s5 = inlined_call_operand.vmem [shape: f32[1,128], index: 5, kind: input, shape index: {}]   ;;  %s684_s6 = inlined_call_operand.vmem [shape: bf16[128,128], index: 6, kind: input, shape index: {}]   ;;  %s685_s7 = inlined_call_operand.vmem [shape: f32[1,128], index: 7, kind: input, shape index: {}]   ;;  %s686_s8 = inlined_call_operand.vmem [shape: f32[8,128], index: 8, kind: output, shape index: {}]  }
   0x1   :  { %v494_v0 = vld [vmem:[%s678_s1 + $0x38] sm:$0xff]  ;;  %v493_v1 = vld [vmem:[%s678_s1 + $0x30] sm:$0xff]  ;;  %v492_v4 = vld [vmem:[%s678_s1 + $0x28] sm:$0xff] }
   0x2   :  { %94 = vmatpush.bf16.msra.mxu0 %v494_v0  ;;  %v502_v2 = vld [vmem:[%s679_s2 + $0x38] sm:$0xff]  ;;  %v501_v3 = vld [vmem:[%s679_s2 + $0x30] sm:$0xff]  ;;  %v500_v5 = vld [vmem:[%s679_s2 + $0x28] sm:$0xff] }
   0x3   :  { %176 = vmatpush.bf16.msra.mxu1 %v502_v2  ;;  %v491_v6 = vld [vmem:[%s678_s1 + $0x20] sm:$0xff]  ;;  %v490_v8 = vld [vmem:[%s678_s1 + $0x18] sm:$0xff]  ;;  %v489_v10 = vld [vmem:[%s678_s1 + $0x10] sm:$0xff] }
   0x4   :  { %v499_v7 = vld [vmem:[%s679_s2 + $0x20] sm:$0xff]  ;;  %v498_v9 = vld [vmem:[%s679_s2 + $0x18] sm:$0xff]  ;;  %v497_v11 = vld [vmem:[%s679_s2 + $0x10] sm:$0xff] }
   0x5   :  { %v488_v12 = vld [vmem:[%s678_s1 + $0x8] sm:$0xff]  ;;  %v487_v14 = vld [vmem:[%s678_s1] sm:$0xff]  ;;  %v510_v17 = vld [vmem:[%s682_s4 + $0x38] sm:$0xff] }
   0x6   :  { %95 = vmatpush.bf16.msra.mxu0 %v493_v1  ;;  %v496_v13 = vld [vmem:[%s679_s2 + $0x8] sm:$0xff]  ;;  %v29_v15 = vld [vmem:[%s680_s0] sm:$0xf]  ;;  %258 = vmatpush.bf16.msra.mxu2 %v510_v17  ;;  %v509_v18 = vld [vmem:[%s682_s4 + $0x30] sm:$0xff] }
   0x7   :  { %177 = vmatpush.bf16.msra.mxu1 %v501_v3  ;;  %v495_v16 = vld [vmem:[%s679_s2] sm:$0xff]  ;;  %v508_v19 = vld [vmem:[%s682_s4 + $0x28] sm:$0xff]  ;;  %v506_v21 = vld [vmem:[%s682_s4 + $0x18] sm:$0xff] }
   0x8   :  { %v507_v20 = vld [vmem:[%s682_s4 + $0x20] sm:$0xff]  ;;  %v505_v22 = vld [vmem:[%s682_s4 + $0x10] sm:$0xff]  ;;  %v504_v23 = vld [vmem:[%s682_s4 + $0x8] sm:$0xff] }
   0x9   :  { %v503_v27 = vld [vmem:[%s682_s4] sm:$0xff]  ;;  %v518_v28 = vld [vmem:[%s684_s6 + $0x38] sm:$0xff]  ;;  %v517_v29 = vld [vmem:[%s684_s6 + $0x30] sm:$0xff] }
   0xa   :  { %96 = vmatpush.bf16.msra.mxu0 %v492_v4  ;;  %259 = vmatpush.bf16.msra.mxu2 %v509_v18  ;;  %v516_v30 = vld [vmem:[%s684_s6 + $0x28] sm:$0xff]  ;;  %v515_v31 = vld [vmem:[%s684_s6 + $0x20] sm:$0xff]  ;;  %v514_v32 = vld [vmem:[%s684_s6 + $0x18] sm:$0xff] }
   0xb   :  { %178 = vmatpush.bf16.msra.mxu1 %v500_v5  ;;  %341 = vmatpush.bf16.msra.mxu3 %v518_v28  ;;  %v513_v33 = vld [vmem:[%s684_s6 + $0x10] sm:$0xff]  ;;  %v519_v34 = vld [vmem:[%s681_s3] ss:$0 sm:$0xff]  ;;  %v512_v39 = vld [vmem:[%s684_s6 + $0x8] sm:$0xff] }
   0xc   :  { %v511_v40 = vld [vmem:[%s684_s6] sm:$0xff] }
   0xd   :  { %v520_v41 = vld [vmem:[%s683_s5] ss:$0 sm:$0xff] }
   0xe   :  { %97 = vmatpush.bf16.msra.mxu0 %v491_v6  ;;  %260 = vmatpush.bf16.msra.mxu2 %v508_v19  ;;  %v521_v47 = vld [vmem:[%s685_s7] ss:$0 sm:$0xff] }
   0xf   :  { %179 = vmatpush.bf16.msra.mxu1 %v499_v7  ;;  %342 = vmatpush.bf16.msra.mxu3 %v517_v29 }
  0x12   :  { %98 = vmatpush.bf16.msra.mxu0 %v490_v8  ;;  %261 = vmatpush.bf16.msra.mxu2 %v507_v20 }
  0x13   :  { %180 = vmatpush.bf16.msra.mxu1 %v498_v9  ;;  %343 = vmatpush.bf16.msra.mxu3 %v516_v30 }
  0x16   :  { %99 = vmatpush.bf16.msra.mxu0 %v489_v10  ;;  %262 = vmatpush.bf16.msra.mxu2 %v506_v21 }
  0x17   :  { %181 = vmatpush.bf16.msra.mxu1 %v497_v11  ;;  %344 = vmatpush.bf16.msra.mxu3 %v515_v31 }
  0x1a   :  { %100 = vmatpush.bf16.msra.mxu0 %v488_v12  ;;  %263 = vmatpush.bf16.msra.mxu2 %v505_v22 }
  0x1b   :  { %182 = vmatpush.bf16.msra.mxu1 %v496_v13  ;;  %345 = vmatpush.bf16.msra.mxu3 %v514_v32 }
  0x1e   :  { %101 = vmatpush.bf16.msra.mxu0 %v487_v14  ;;  %264 = vmatpush.bf16.msra.mxu2 %v504_v23 }
  0x1f   :  { %183 = vmatpush.bf16.msra.mxu1 %v495_v16  ;;  %346 = vmatpush.bf16.msra.mxu3 %v513_v33 }
  0x21   :  { %102 = vmatmul.bf16.vlgmr.msra.gmra.mxu0 %v29_v15 }
  0x22   :  { %265 = vmatpush.bf16.msra.mxu2 %v503_v27 }
  0x23   :  { %347 = vmatpush.bf16.msra.mxu3 %v512_v39 }
  0x27   :  { %348 = vmatpush.bf16.msra.mxu3 %v511_v40 }
  0x9e   :  { %v103_v24 = vpop.f32.mrf.mxu0 }
  0x9f   :  { %v107_v25 = vpack.c.bf16 %v103_v24, %v103_v24 }
  0xa1   :  { %184 = vmatmul.bf16.vlgmr.msra.gmra.mxu1 %v107_v25 }
  0xa6   :  { %v105_v26 = vpop.f32.mrf.mxu0 }
 0x11e   :  { %v185_v35 = vpop.f32.mrf.mxu1 }
 0x11f   :  { %v186_v36 = vadd.f32 %v519_v34, %v185_v35 }
 0x121   :  { %v189_v37 = vpack.c.bf16 %v186_v36, %v186_v36 }
 0x123   :  { %266 = vmatmul.bf16.vlgmr.msra.gmra.mxu2 %v189_v37 }
 0x126   :  { %v187_v38 = vpop.f32.mrf.mxu1 }
 0x1a6   :  { %v267_v42 = vpop.f32.mrf.mxu2 }
 0x1a7   :  { %v268_v43 = vadd.f32 %v520_v41, %v267_v42 }
 0x1a9   :  { %v271_v44 = vmax.f32 %v268_v43, 0.0 }
 0x1ab   :  { %v272_v45 = vpack.c.bf16 %v271_v44, %v271_v44 }
 0x1ad   :  { %349 = vmatmul.bf16.vlgmr.msra.gmra.mxu3 %v272_v45 }
 0x1ae   :  { %v269_v46 = vpop.f32.mrf.mxu2 }
 0x230   :  { %v350_v48 = vpop.f32.mrf.mxu3 }
 0x231   :  { %v351_v49 = vadd.f32 %v521_v47, %v350_v48 }
 0x233   :  { %354 = vst [vmem:[%s686_s8] sm:$0xff] %v351_v49 }
 0x238   :  { %v352_v50 = vpop.f32.mrf.mxu3 }

// kernel: openai_clip_forward.8
= control target key start
LH: loop header
LB: loop body
LE: loop exit
PB: predicated region body
PF: predicated region fallthrough
CT: control target
= control target key end

     0   :  { %s2590_s12 = smov 0   ;;  %s3088_s0 = inlined_call_operand.vmem [shape: bf16[512,1152], index: 0, kind: input, shape index: {}]   ;;  %s3089_s1 = inlined_call_operand.vmem [shape: bf16[1152,128], index: 1, kind: input, shape index: {}]   ;;  %s3090_s2 = inlined_call_operand.vmem [shape: f32[1,128], index: 2, kind: input, shape index: {}]   ;;  %s3091_s3 = inlined_call_operand.vmem [shape: bf16[512,128], index: 3, kind: output, shape index: {}]  }
   0x1 LB: > { %s1750_s13 = sadd.s32 4294967295, %s2568_s12   ;;  %p1754_p0 = scmp.ge.s32.totalorder %s2568_s12, 1  ;;  %s2568_s12 = sphi %s2590_s12, %s13_s12  }
   0x2   : > { %p139_p1 = scmp.lt.s32.totalorder %s2568_s12, 5 }
   0x4   : > { %p140_p2 = pnand %p1754_p0, %p139_p1 }
   0x5   : > { %s1755_s20 = sshll.u32 (!%p140_p2), %s1750_s13, 4 }
   0x6   : > { %143 = sbr.rel (%p140_p2) target bundleno = 466 (0x1d2), region = 32  ;;  %p165_p3 = scmp.lt.s32.totalorder (!%p140_p2), %s1755_s20, 63 }
   0xb   : > { %v2416_v0 = vld [vmem:[%s3089_s1 + $0x38] sm:$0xff]  ;;  %v2415_v1 = vld [vmem:[%s3089_s1 + $0x30] sm:$0xff]  ;;  %v2414_v2 = vld [vmem:[%s3089_s1 + $0x28] sm:$0xff]  ;;  %s3093_s20 = smov (!%p165_p3, %s1755_s20), 63 }
   0xc   : > { %2528 = vmatpush.bf16.msra.mxu1 %v2416_v0  ;;  %2529 = vmatpush.bf16.msra.mxu2 %v2416_v0  ;;  %v2413_v3 = vld [vmem:[%s3089_s1 + $0x20] sm:$0xff]  ;;  %v2412_v4 = vld [vmem:[%s3089_s1 + $0x18] sm:$0xff]  ;;  %v2411_v5 = vld [vmem:[%s3089_s1 + $0x10] sm:$0xff]  ;;  %s2552_s27 = smul.u32 36, %s3093_s20 }
   0xd   : > { %2530 = vmatpush.bf16.msra.mxu3 %v2416_v0  ;;  %1205 = vmatpush.bf16.msra.mxu0 %v2416_v0  ;;  %v2410_v6 = vld [vmem:[%s3089_s1 + $0x8] sm:$0xff]  ;;  %v2409_v7 = vld [vmem:[%s3089_s1] sm:$0xff]  ;;  %v2432_v16 = vld [vmem:[%s3089_s1 + $0xb8] sm:$0xff] }
   0xe   : > { %s2625_s5 = scalar_lea.vmem %s3088_s0, %s2552_s27  ;;  %v2424_v17 = vld [vmem:[%s3089_s1 + $0x78] sm:$0xff]  ;;  %v2431_v24 = vld [vmem:[%s3089_s1 + $0xb0] sm:$0xff]  ;;  %v2430_v28 = vld [vmem:[%s3089_s1 + $0xa8] sm:$0xff] }
   0xf   : > { %v1833_v8 = vld [vmem:[%s2625_s5 + $0x90] sm:$0xf]  ;;  %v2359_v9 = vld [vmem:[%s2625_s5 + $0xb0] sm:$0xf0]  ;;  %v1905_v10 = vld [vmem:[%s2625_s5 + $0x120] sm:$0xf] }
  0x10   : > { %2531 = vmatpush.bf16.msra.mxu1 %v2415_v1  ;;  %2532 = vmatpush.bf16.msra.mxu2 %v2415_v1  ;;  %v2377_v11 = vld [vmem:[%s2625_s5 + $0x140] sm:$0xf0]  ;;  %v1977_v12 = vld [vmem:[%s2625_s5 + $0x1b0] sm:$0xf]  ;;  %v2395_v13 = vld [vmem:[%s2625_s5 + $0x1d0] sm:$0xf0]  ;;  %v1834_v18 = vor.u32 %v2359_v9, %v1833_v8 }
  0x11   : > { %2533 = vmatpush.bf16.msra.mxu3 %v2415_v1  ;;  %1206 = vmatpush.bf16.msra.mxu0 %v2415_v1  ;;  %v1761_v14 = vld [vmem:[%s2625_s5] sm:$0xf]  ;;  %v2341_v15 = vld [vmem:[%s2625_s5 + $0x20] sm:$0xf0]  ;;  %v1906_v19 = vor.u32 %v2377_v11, %v1905_v10  ;;  %v1978_v20 = vor.u32 %v2395_v13, %v1977_v12  ;;  %v2440_v22 = vld [vmem:[%s3089_s1 + $0xf8] sm:$0xff] }
  0x12   : > { %v1762_v21 = vor.u32 %v2341_v15, %v1761_v14  ;;  %v2448_v23 = vld [vmem:[%s3089_s1 + $0x138] sm:$0xff]  ;;  %v2423_v25 = vld [vmem:[%s3089_s1 + $0x70] sm:$0xff]  ;;  %v2422_v29 = vld [vmem:[%s3089_s1 + $0x68] sm:$0xff] }
  0x13   : > { %v2439_v26 = vld [vmem:[%s3089_s1 + $0xf0] sm:$0xff]  ;;  %v2438_v30 = vld [vmem:[%s3089_s1 + $0xe8] sm:$0xff]  ;;  %v2429_v32 = vld [vmem:[%s3089_s1 + $0xa0] sm:$0xff] }
  0x14   : > { %2534 = vmatpush.bf16.msra.mxu1 %v2414_v2  ;;  %2535 = vmatpush.bf16.msra.mxu2 %v2414_v2  ;;  %v2447_v27 = vld [vmem:[%s3089_s1 + $0x130] sm:$0xff]  ;;  %v2446_v31 = vld [vmem:[%s3089_s1 + $0x128] sm:$0xff]  ;;  %v2421_v33 = vld [vmem:[%s3089_s1 + $0x60] sm:$0xff] }
  0x15   : > { %2536 = vmatpush.bf16.msra.mxu3 %v2414_v2  ;;  %1207 = vmatpush.bf16.msra.mxu0 %v2414_v2  ;;  %v2437_v34 = vld [vmem:[%s3089_s1 + $0xe0] sm:$0xff]  ;;  %v1869_v36 = vld [vmem:[%s2625_s5 + $0xd8] sm:$0xf]  ;;  %v2368_v37 = vld [vmem:[%s2625_s5 + $0xf8] sm:$0xf0] }
  0x16   : > { %v2445_v35 = vld [vmem:[%s3089_s1 + $0x120] sm:$0xff]  ;;  %v1941_v38 = vld [vmem:[%s2625_s5 + $0x168] sm:$0xf]  ;;  %v2386_v39 = vld [vmem:[%s2625_s5 + $0x188] sm:$0xf0]  ;;  %v1870_v46 = vor.u32 %v2368_v37, %v1869_v36 }
  0x17   : > { %v2013_v40 = vld [vmem:[%s2625_s5 + $0x1f8] sm:$0xf]  ;;  %v2404_v41 = vld [vmem:[%s2625_s5 + $0x218] sm:$0xf0]  ;;  %v1797_v42 = vld [vmem:[%s2625_s5 + $0x48] sm:$0xf]  ;;  %v1942_v47 = vor.u32 %v2386_v39, %v1941_v38 }
  0x18   : > { %2537 = vmatpush.bf16.msra.mxu1 %v2413_v3  ;;  %2538 = vmatpush.bf16.msra.mxu2 %v2413_v3  ;;  %v2350_v43 = vld [vmem:[%s2625_s5 + $0x68] sm:$0xf0]  ;;  %v2428_v44 = vld [vmem:[%s3089_s1 + $0x98] sm:$0xff]  ;;  %v2014_v48 = vor.u32 %v2404_v41, %v2013_v40  ;;  %v2427_v52 = vld [vmem:[%s3089_s1 + $0x90] sm:$0xff] }
  0x19   : > { %2539 = vmatpush.bf16.msra.mxu3 %v2413_v3  ;;  %1208 = vmatpush.bf16.msra.mxu0 %v2413_v3  ;;  %v2420_v45 = vld [vmem:[%s3089_s1 + $0x58] sm:$0xff]  ;;  %v1798_v49 = vor.u32 %v2350_v43, %v1797_v42  ;;  %v2419_v53 = vld [vmem:[%s3089_s1 + $0x50] sm:$0xff]  ;;  %v2426_v56 = vld [vmem:[%s3089_s1 + $0x88] sm:$0xff] }
  0x1a   : > { %v2436_v50 = vld [vmem:[%s3089_s1 + $0xd8] sm:$0xff]  ;;  %v2435_v54 = vld [vmem:[%s3089_s1 + $0xd0] sm:$0xff]  ;;  %v2418_v57 = vld [vmem:[%s3089_s1 + $0x48] sm:$0xff] }
  0x1b   : > { %v2444_v51 = vld [vmem:[%s3089_s1 + $0x118] sm:$0xff]  ;;  %v2443_v55 = vld [vmem:[%s3089_s1 + $0x110] sm:$0xff]  ;;  %v2434_v58 = vld [vmem:[%s3089_s1 + $0xc8] sm:$0xff] }
  0x1c   : > { %2540 = vmatpush.bf16.msra.mxu1 %v2412_v4  ;;  %2541 = vmatpush.bf16.msra.mxu2 %v2412_v4  ;;  %v2442_v59 = vld [vmem:[%s3089_s1 + $0x108] sm:$0xff]  ;;  %v2425_v60 = vld [vmem:[%s3089_s1 + $0x80] sm:$0xff]  ;;  %v2464_v2 = vld [vmem:[%s3089_s1 + $0x1b8] sm:$0xff] }
  0x1d   : > { %2542 = vmatpush.bf16.msra.mxu3 %v2412_v4  ;;  %1209 = vmatpush.bf16.msra.mxu0 %v2412_v4  ;;  %v2417_v61 = vld [vmem:[%s3089_s1 + $0x40] sm:$0xff]  ;;  %v1763_v1 = vld [vmem:[%s2625_s5 + $0x24] sm:$0xf0]  ;;  %v2456_v3 = vld [vmem:[%s3089_s1 + $0x178] sm:$0xff] }
  0x1e   : > { %v2337_v62 = vld [vmem:[%s2625_s5 + $0x4] sm:$0xf]  ;;  %v1769_v4 = vld [vmem:[%s2625_s5 + $0x8] sm:$0xf]  ;;  %v1777_v8 = vld [vmem:[%s2625_s5 + $0x10] sm:$0xf] }
  0x1f   : > { %v2433_v63 = vld [vmem:[%s3089_s1 + $0xc0] sm:$0xff]  ;;  %v2343_v9 = vld [vmem:[%s2625_s5 + $0x30] sm:$0xf0]  ;;  %v2472_v10 = vld [vmem:[%s3089_s1 + $0x1f8] sm:$0xff]  ;;  %v1766_v12 = vor.u32 %v2337_v62, %v1763_v1 }
  0x20   : > { %2543 = vmatpush.bf16.msra.mxu1 %v2411_v5  ;;  %2544 = vmatpush.bf16.msra.mxu2 %v2411_v5  ;;  %v2441_v0 = vld [vmem:[%s3089_s1 + $0x100] sm:$0xff]  ;;  %v2480_v11 = vld [vmem:[%s3089_s1 + $0x238] sm:$0xff]  ;;  %v1778_v15 = vor.u32 %v2343_v9, %v1777_v8  ;;  %v2355_v40 = vld [vmem:[%s2625_s5 + $0x94] sm:$0xf] }
  0x21   : > { %2545 = vmatpush.bf16.msra.mxu3 %v2411_v5  ;;  %1210 = vmatpush.bf16.msra.mxu0 %v2411_v5  ;;  %v2342_v5 = vld [vmem:[%s2625_s5 + $0x28] sm:$0xf0]  ;;  %v2461_v36 = vld [vmem:[%s3089_s1 + $0x1a0] sm:$0xff]  ;;  %v1835_v41 = vld [vmem:[%s2625_s5 + $0xb4] sm:$0xf0] }
  0x22   : > { %v1770_v13 = vor.u32 %v2342_v5, %v1769_v4  ;;  %v2469_v37 = vld [vmem:[%s3089_s1 + $0x1e0] sm:$0xff]  ;;  %v1841_v42 = vld [vmem:[%s2625_s5 + $0x98] sm:$0xf]  ;;  %v2360_v43 = vld [vmem:[%s2625_s5 + $0xb8] sm:$0xf0] }
  0x23   : > { %v2453_v38 = vld [vmem:[%s3089_s1 + $0x160] sm:$0xff]  ;;  %v1885_v62 = vld [vmem:[%s2625_s5 + $0xe8] sm:$0xf]  ;;  %v2459_v4 = vld [vmem:[%s3089_s1 + $0x190] sm:$0xff] }
  0x24   : > { %2546 = vmatpush.bf16.msra.mxu1 %v2410_v6  ;;  %2547 = vmatpush.bf16.msra.mxu2 %v2410_v6  ;;  %v2477_v39 = vld [vmem:[%s3089_s1 + $0x220] sm:$0xff]  ;;  %v2467_v5 = vld [vmem:[%s3089_s1 + $0x1d0] sm:$0xff]  ;;  %v1907_v9 = vld [vmem:[%s2625_s5 + $0x144] sm:$0xf0] }
  0x25   : > { %2548 = vmatpush.bf16.msra.mxu3 %v2410_v6  ;;  %1211 = vmatpush.bf16.msra.mxu0 %v2410_v6  ;;  %v2338_v6 = vld [vmem:[%s2625_s5 + $0xc] sm:$0xf]  ;;  %v2373_v8 = vld [vmem:[%s2625_s5 + $0x124] sm:$0xf] }
  0x28   : > { %2549 = vmatpush.bf16.msra.mxu1 %v2409_v7  ;;  %2550 = vmatpush.bf16.msra.mxu2 %v2409_v7 }
  0x29   : > { %2551 = vmatpush.bf16.msra.mxu3 %v2409_v7  ;;  %1212 = vmatpush.bf16.msra.mxu0 %v2409_v7  ;;  %v1771_v7 = vld [vmem:[%s2625_s5 + $0x2c] sm:$0xf0] }
  0x2a   : > { %v1774_v14 = vor.u32 %v2338_v6, %v1771_v7  ;;  %v2451_v6 = vld [vmem:[%s3089_s1 + $0x150] sm:$0xff] }
  0x2b   : > { %1223 = vmatmul.bf16.vlgmr.msra.gmra.mxu1 %v1834_v18  ;;  %1233 = vmatmul.bf16.vlgmr.msra.gmra.mxu2 %v1906_v19  ;;  %v2471_v18 = vld [vmem:[%s3089_s1 + $0x1f0] sm:$0xff] }
  0x2c   : > { %1303 = vmatpush.bf16.msrb.mxu2 %v2432_v16  ;;  %1254 = vmatpush.bf16.msrb.mxu1 %v2424_v17  ;;  %v2463_v16 = vld [vmem:[%s3089_s1 + $0x1b0] sm:$0xff] }
  0x2d   : > { %1243 = vmatmul.bf16.vlgmr.msra.gmra.mxu3 %v1978_v20  ;;  %1213 = vmatmul.bf16.vlgmr.msra.gmra.mxu0 %v1762_v21  ;;  %v2455_v17 = vld [vmem:[%s3089_s1 + $0x170] sm:$0xff]  ;;  %v2462_v20 = vld [vmem:[%s3089_s1 + $0x1a8] sm:$0xff] }
  0x2e   : > { %1352 = vmatpush.bf16.msrb.mxu3 %v2440_v22  ;;  %1401 = vmatpush.bf16.msrb.mxu0 %v2448_v23  ;;  %v2479_v19 = vld [vmem:[%s3089_s1 + $0x230] sm:$0xff]  ;;  %v2454_v21 = vld [vmem:[%s3089_s1 + $0x168] sm:$0xff] }
  0x2f   : > { %v2470_v22 = vld [vmem:[%s3089_s1 + $0x1e8] sm:$0xff]  ;;  %v2475_v7 = vld [vmem:[%s3089_s1 + $0x210] sm:$0xff] }
  0x30   : > { %1304 = vmatpush.bf16.msrb.mxu2 %v2431_v24  ;;  %1255 = vmatpush.bf16.msrb.mxu1 %v2423_v25  ;;  %v2478_v23 = vld [vmem:[%s3089_s1 + $0x228] sm:$0xff]  ;;  %v1799_v25 = vld [vmem:[%s2625_s5 + $0x6c] sm:$0xf0] }
  0x31   : > { %v2346_v24 = vld [vmem:[%s2625_s5 + $0x4c] sm:$0xf] }
  0x32   : > { %1353 = vmatpush.bf16.msrb.mxu3 %v2439_v26  ;;  %1402 = vmatpush.bf16.msrb.mxu0 %v2447_v27  ;;  %v1805_v26 = vld [vmem:[%s2625_s5 + $0x50] sm:$0xf]  ;;  %v2351_v27 = vld [vmem:[%s2625_s5 + $0x70] sm:$0xf0] }
  0x34   : > { %1305 = vmatpush.bf16.msrb.mxu2 %v2430_v28  ;;  %1256 = vmatpush.bf16.msrb.mxu1 %v2422_v29  ;;  %v2347_v28 = vld [vmem:[%s2625_s5 + $0x54] sm:$0xf]  ;;  %v1807_v29 = vld [vmem:[%s2625_s5 + $0x74] sm:$0xf0] }
  0x36   : > { %1354 = vmatpush.bf16.msrb.mxu3 %v2438_v30  ;;  %1403 = vmatpush.bf16.msrb.mxu0 %v2446_v31  ;;  %v1813_v30 = vld [vmem:[%s2625_s5 + $0x58] sm:$0xf]  ;;  %v2352_v31 = vld [vmem:[%s2625_s5 + $0x78] sm:$0xf0] }
  0x38   : > { %1306 = vmatpush.bf16.msrb.mxu2 %v2429_v32  ;;  %1257 = vmatpush.bf16.msrb.mxu1 %v2421_v33  ;;  %v1802_v32 = vor.u32 %v2346_v24, %v1799_v25  ;;  %v1806_v33 = vor.u32 %v2351_v27, %v1805_v26  ;;  %v2382_v24 = vld [vmem:[%s2625_s5 + $0x16c] sm:$0xf]  ;;  %v1943_v25 = vld [vmem:[%s2625_s5 + $0x18c] sm:$0xf0]  ;;  %v2387_v27 = vld [vmem:[%s2625_s5 + $0x190] sm:$0xf0] }
  0x39   : > { %v1949_v26 = vld [vmem:[%s2625_s5 + $0x170] sm:$0xf] }
  0x3a   : > { %1355 = vmatpush.bf16.msrb.mxu3 %v2437_v34  ;;  %1404 = vmatpush.bf16.msrb.mxu0 %v2445_v35  ;;  %v1810_v34 = vor.u32 %v2347_v28, %v1807_v29  ;;  %v1814_v35 = vor.u32 %v2352_v31, %v1813_v30  ;;  %v2383_v28 = vld [vmem:[%s2625_s5 + $0x174] sm:$0xf]  ;;  %v1951_v29 = vld [vmem:[%s2625_s5 + $0x194] sm:$0xf0]  ;;  %v2388_v31 = vld [vmem:[%s2625_s5 + $0x198] sm:$0xf0] }
  0x3b   : > { %1228 = vmatmul.bf16.gmra.mxu1 %v1870_v46  ;;  %1238 = vmatmul.bf16.gmra.mxu2 %v1942_v47  ;;  %v1849_v46 = vld [vmem:[%s2625_s5 + $0xa0] sm:$0xf]  ;;  %v2361_v47 = vld [vmem:[%s2625_s5 + $0xc0] sm:$0xf0]  ;;  %v1957_v30 = vld [vmem:[%s2625_s5 + $0x178] sm:$0xf] }
  0x3c   : > { %1307 = vmatpush.bf16.msrb.mxu2 %v2428_v44  ;;  %1258 = vmatpush.bf16.msrb.mxu1 %v2420_v45  ;;  %v2356_v44 = vld [vmem:[%s2625_s5 + $0x9c] sm:$0xf]  ;;  %v1843_v45 = vld [vmem:[%s2625_s5 + $0xbc] sm:$0xf0] }
  0x3d   : > { %1248 = vmatmul.bf16.gmra.mxu3 %v2014_v48  ;;  %1218 = vmatmul.bf16.gmra.mxu0 %v1798_v49  ;;  %v1838_v48 = vor.u32 %v2355_v40, %v1835_v41  ;;  %v1842_v49 = vor.u32 %v2360_v43, %v1841_v42  ;;  %v2391_v40 = vld [vmem:[%s2625_s5 + $0x1b4] sm:$0xf]  ;;  %v1979_v41 = vld [vmem:[%s2625_s5 + $0x1d4] sm:$0xf0]  ;;  %v2396_v43 = vld [vmem:[%s2625_s5 + $0x1d8] sm:$0xf0] }
  0x3e   : > { %1356 = vmatpush.bf16.msrb.mxu3 %v2436_v50  ;;  %1405 = vmatpush.bf16.msrb.mxu0 %v2444_v51  ;;  %v1846_v50 = vor.u32 %v2356_v44, %v1843_v45  ;;  %v1850_v51 = vor.u32 %v2361_v47, %v1849_v46  ;;  %v1985_v42 = vld [vmem:[%s2625_s5 + $0x1b8] sm:$0xf]  ;;  %v2392_v44 = vld [vmem:[%s2625_s5 + $0x1bc] sm:$0xf]  ;;  %v1987_v45 = vld [vmem:[%s2625_s5 + $0x1dc] sm:$0xf0] }
  0x3f   : > { %v1993_v46 = vld [vmem:[%s2625_s5 + $0x1c0] sm:$0xf]  ;;  %v2397_v47 = vld [vmem:[%s2625_s5 + $0x1e0] sm:$0xf0] }
  0x40   : > { %1308 = vmatpush.bf16.msrb.mxu2 %v2427_v52  ;;  %1259 = vmatpush.bf16.msrb.mxu1 %v2419_v53  ;;  %v2460_v52 = vld [vmem:[%s3089_s1 + $0x198] sm:$0xff] }
  0x41   : > { %v2468_v53 = vld [vmem:[%s3089_s1 + $0x1d8] sm:$0xff] }
  0x42   : > { %1357 = vmatpush.bf16.msrb.mxu3 %v2435_v54  ;;  %1406 = vmatpush.bf16.msrb.mxu0 %v2443_v55  ;;  %v2452_v54 = vld [vmem:[%s3089_s1 + $0x158] sm:$0xff] }
  0x43   : > { %v2476_v55 = vld [vmem:[%s3089_s1 + $0x218] sm:$0xff] }
  0x44   : > { %1309 = vmatpush.bf16.msrb.mxu2 %v2426_v56  ;;  %1260 = vmatpush.bf16.msrb.mxu1 %v2418_v57  ;;  %v2364_v56 = vld [vmem:[%s2625_s5 + $0xdc] sm:$0xf]  ;;  %v1871_v57 = vld [vmem:[%s2625_s5 + $0xfc] sm:$0xf0] }
  0x46   : > { %1358 = vmatpush.bf16.msrb.mxu3 %v2434_v58  ;;  %1407 = vmatpush.bf16.msrb.mxu0 %v2442_v59  ;;  %v1877_v58 = vld [vmem:[%s2625_s5 + $0xe0] sm:$0xf]  ;;  %v2369_v59 = vld [vmem:[%s2625_s5 + $0x100] sm:$0xf0] }
  0x47   : > { %v1878_v1 = vor.u32 %v2369_v59, %v1877_v58 }
  0x48   : > { %1310 = vmatpush.bf16.msrb.mxu2 %v2425_v60  ;;  %1261 = vmatpush.bf16.msrb.mxu1 %v2417_v61  ;;  %v2365_v60 = vld [vmem:[%s2625_s5 + $0xe4] sm:$0xf]  ;;  %v1879_v61 = vld [vmem:[%s2625_s5 + $0x104] sm:$0xf0] }
  0x4a   : > { %1359 = vmatpush.bf16.msrb.mxu3 %v2433_v63  ;;  %1408 = vmatpush.bf16.msrb.mxu0 %v2441_v0  ;;  %v2370_v63 = vld [vmem:[%s2625_s5 + $0x108] sm:$0xf0]  ;;  %v1874_v0 = vor.u32 %v2364_v56, %v1871_v57 }
  0x4b   : > { %1262 = vmatmul.bf16.vlgmr.msrb.gmra.mxu1 %v1766_v12  ;;  %1311 = vmatmul.bf16.vlgmr.msrb.gmra.mxu2 %v1770_v13  ;;  %v2374_v12 = vld [vmem:[%s2625_s5 + $0x12c] sm:$0xf]  ;;  %v1915_v13 = vld [vmem:[%s2625_s5 + $0x14c] sm:$0xf0] }
  0x4c   : > { %1499 = vmatpush.bf16.msra.mxu2 %v2464_v2  ;;  %1450 = vmatpush.bf16.msra.mxu1 %v2456_v3  ;;  %v1882_v2 = vor.u32 %v2365_v60, %v1879_v61  ;;  %v1886_v3 = vor.u32 %v2370_v63, %v1885_v62  ;;  %v2400_v61 = vld [vmem:[%s2625_s5 + $0x1fc] sm:$0xf]  ;;  %v2015_v62 = vld [vmem:[%s2625_s5 + $0x21c] sm:$0xf0] }
  0x4d   : > { %1360 = vmatmul.bf16.vlgmr.msrb.gmra.mxu3 %v1774_v14  ;;  %1409 = vmatmul.bf16.vlgmr.msrb.gmra.mxu0 %v1778_v15  ;;  %v1921_v14 = vld [vmem:[%s2625_s5 + $0x130] sm:$0xf]  ;;  %v2379_v15 = vld [vmem:[%s2625_s5 + $0x150] sm:$0xf0]  ;;  %v2021_v63 = vld [vmem:[%s2625_s5 + $0x200] sm:$0xf] }
  0x4e   : > { %1548 = vmatpush.bf16.msra.mxu3 %v2472_v10  ;;  %1597 = vmatpush.bf16.msra.mxu0 %v2480_v11  ;;  %v1913_v10 = vld [vmem:[%s2625_s5 + $0x128] sm:$0xf]  ;;  %v2378_v11 = vld [vmem:[%s2625_s5 + $0x148] sm:$0xf0] }
  0x50   : > { %1500 = vmatpush.bf16.msra.mxu2 %v2463_v16  ;;  %1451 = vmatpush.bf16.msra.mxu1 %v2455_v17  ;;  %v1910_v16 = vor.u32 %v2373_v8, %v1907_v9  ;;  %v1914_v17 = vor.u32 %v2378_v11, %v1913_v10  ;;  %v2018_v8 = vor.u32 %v2400_v61, %v2015_v62  ;;  %v1823_v61 = vld [vmem:[%s2625_s5 + $0x84] sm:$0xf0] }
  0x51   : > { %v1829_v62 = vld [vmem:[%s2625_s5 + $0x68] sm:$0xf] }
  0x52   : > { %1549 = vmatpush.bf16.msra.mxu3 %v2471_v18  ;;  %1598 = vmatpush.bf16.msra.mxu0 %v2479_v19  ;;  %v1918_v18 = vor.u32 %v2374_v12, %v1915_v13  ;;  %v1922_v19 = vor.u32 %v2379_v15, %v1921_v14 }
  0x54   : > { %1501 = vmatpush.bf16.msra.mxu2 %v2462_v20  ;;  %1452 = vmatpush.bf16.msra.mxu1 %v2454_v21  ;;  %v2458_v20 = vld [vmem:[%s3089_s1 + $0x188] sm:$0xff] }
  0x55   : > { %v2466_v21 = vld [vmem:[%s3089_s1 + $0x1c8] sm:$0xff] }
  0x56   : > { %1550 = vmatpush.bf16.msra.mxu3 %v2470_v22  ;;  %1599 = vmatpush.bf16.msra.mxu0 %v2478_v23  ;;  %v2450_v22 = vld [vmem:[%s3089_s1 + $0x148] sm:$0xff] }
  0x57   : > { %v2474_v23 = vld [vmem:[%s3089_s1 + $0x208] sm:$0xff] }
  0x58   : > { %1502 = vmatpush.bf16.msra.mxu2 %v2461_v36  ;;  %1453 = vmatpush.bf16.msra.mxu1 %v2453_v38  ;;  %v2457_v36 = vld [vmem:[%s3089_s1 + $0x180] sm:$0xff] }
  0x59   : > { %v2449_v38 = vld [vmem:[%s3089_s1 + $0x140] sm:$0xff] }
  0x5a   : > { %1551 = vmatpush.bf16.msra.mxu3 %v2469_v37  ;;  %1600 = vmatpush.bf16.msra.mxu0 %v2477_v39  ;;  %v2465_v37 = vld [vmem:[%s3089_s1 + $0x1c0] sm:$0xff] }
  0x5b   : > { %1267 = vmatmul.bf16.gmra.mxu1 %v1802_v32  ;;  %1316 = vmatmul.bf16.gmra.mxu2 %v1806_v33  ;;  %v1946_v32 = vor.u32 %v2382_v24, %v1943_v25  ;;  %v1950_v33 = vor.u32 %v2387_v27, %v1949_v26  ;;  %v2473_v39 = vld [vmem:[%s3089_s1 + $0x200] sm:$0xff]  ;;  %v2344_v24 = vld [vmem:[%s2625_s5 + $0x38] sm:$0xf0] }
  0x5c   : > { %1503 = vmatpush.bf16.msra.mxu2 %v2460_v52  ;;  %1454 = vmatpush.bf16.msra.mxu1 %v2452_v54  ;;  %v1994_v52 = vor.u32 %v2397_v47, %v1993_v46  ;;  %v2899_v54 = vld [vmem:[%s3090_s2] ss:$0 sm:$0xff]  ;;  %v2340_v25 = vld [vmem:[%s2625_s5 + $0x1c] sm:$0xf] }
  0x5d   : > { %1365 = vmatmul.bf16.gmra.mxu3 %v1810_v34  ;;  %1414 = vmatmul.bf16.gmra.mxu0 %v1814_v35  ;;  %v1954_v34 = vor.u32 %v2383_v28, %v1951_v29  ;;  %v1958_v35 = vor.u32 %v2388_v31, %v1957_v30  ;;  %v1787_v26 = vld [vmem:[%s2625_s5 + $0x3c] sm:$0xf0]  ;;  %v2345_v28 = vld [vmem:[%s2625_s5 + $0x40] sm:$0xf0] }
  0x5e   : > { %1552 = vmatpush.bf16.msra.mxu3 %v2468_v53  ;;  %1601 = vmatpush.bf16.msra.mxu0 %v2476_v55  ;;  %v1793_v27 = vld [vmem:[%s2625_s5 + $0x20] sm:$0xf] }
  0x60   : > { %1504 = vmatpush.bf16.msra.mxu2 %v2459_v4  ;;  %1455 = vmatpush.bf16.msra.mxu1 %v2451_v6  ;;  %v2406_v4 = vld [vmem:[%s2625_s5 + $0x228] sm:$0xf0] }
  0x62   : > { %1553 = vmatpush.bf16.msra.mxu3 %v2467_v5  ;;  %1602 = vmatpush.bf16.msra.mxu0 %v2475_v7 }
  0x64   : > { %1505 = vmatpush.bf16.msra.mxu2 %v2458_v20  ;;  %1456 = vmatpush.bf16.msra.mxu1 %v2450_v22  ;;  %v1779_v22 = vld [vmem:[%s2625_s5 + $0x34] sm:$0xf0] }
  0x66   : > { %1554 = vmatpush.bf16.msra.mxu3 %v2466_v21  ;;  %1603 = vmatpush.bf16.msra.mxu0 %v2474_v23  ;;  %v2339_v21 = vld [vmem:[%s2625_s5 + $0x14] sm:$0xf]  ;;  %v1785_v23 = vld [vmem:[%s2625_s5 + $0x18] sm:$0xf] }
  0x68   : > { %1506 = vmatpush.bf16.msra.mxu2 %v2457_v36  ;;  %1457 = vmatpush.bf16.msra.mxu1 %v2449_v38  ;;  %v1794_v38 = vor.u32 %v2345_v28, %v1793_v27  ;;  %v2357_v27 = vld [vmem:[%s2625_s5 + $0xa4] sm:$0xf]  ;;  %v1851_v28 = vld [vmem:[%s2625_s5 + $0xc4] sm:$0xf0] }
  0x6a   : > { %1555 = vmatpush.bf16.msra.mxu3 %v2465_v37  ;;  %1604 = vmatpush.bf16.msra.mxu0 %v2473_v39  ;;  %v1790_v37 = vor.u32 %v2340_v25, %v1787_v26 }
  0x6b   : > { %1272 = vmatmul.bf16.gmra.mxu1 %v1838_v48  ;;  %1321 = vmatmul.bf16.gmra.mxu2 %v1842_v49  ;;  %v1982_v48 = vor.u32 %v2391_v40, %v1979_v41  ;;  %v1986_v49 = vor.u32 %v2396_v43, %v1985_v42 }
  0x6d   : > { %1370 = vmatmul.bf16.gmra.mxu3 %v1846_v50  ;;  %1419 = vmatmul.bf16.gmra.mxu0 %v1850_v51  ;;  %v1990_v51 = vor.u32 %v2392_v44, %v1987_v45 }
  0x7b   : > { %1277 = vmatmul.bf16.gmra.mxu1 %v1874_v0  ;;  %1326 = vmatmul.bf16.gmra.mxu2 %v1878_v1  ;;  %v2405_v0 = vld [vmem:[%s2625_s5 + $0x220] sm:$0xf0] }
  0x7c   : > { %v2401_v1 = vld [vmem:[%s2625_s5 + $0x204] sm:$0xf]  ;;  %v2022_v9 = vor.u32 %v2405_v0, %v2021_v63  ;;  %v2354_v63 = vld [vmem:[%s2625_s5 + $0x88] sm:$0xf0] }
  0x7d   : > { %1375 = vmatmul.bf16.gmra.mxu3 %v1882_v2  ;;  %1424 = vmatmul.bf16.gmra.mxu0 %v1886_v3  ;;  %v2023_v2 = vld [vmem:[%s2625_s5 + $0x224] sm:$0xf0] }
  0x7e   : > { %v2029_v3 = vld [vmem:[%s2625_s5 + $0x208] sm:$0xf]  ;;  %v2026_v12 = vor.u32 %v2401_v1, %v2023_v2 }
  0x7f   : > { %v2030_v13 = vor.u32 %v2406_v4, %v2029_v3 }
  0x8b   : > { %1282 = vmatmul.bf16.gmra.mxu1 %v1910_v16  ;;  %1331 = vmatmul.bf16.gmra.mxu2 %v1914_v17 }
  0x8d   : > { %1380 = vmatmul.bf16.gmra.mxu3 %v1918_v18  ;;  %1429 = vmatmul.bf16.gmra.mxu0 %v1922_v19 }
  0x9b   : > { %1287 = vmatmul.bf16.gmra.mxu1 %v1946_v32  ;;  %1336 = vmatmul.bf16.gmra.mxu2 %v1950_v33  ;;  %v1782_v33 = vor.u32 %v2339_v21, %v1779_v22 }
  0x9d   : > { %1385 = vmatmul.bf16.gmra.mxu3 %v1954_v34  ;;  %1434 = vmatmul.bf16.gmra.mxu0 %v1958_v35  ;;  %v1786_v34 = vor.u32 %v2344_v24, %v1785_v23 }
  0xa8   : > { %v2894_v50 = vpop.f32.mrf.mxu1 }
  0xaa   : > { %v1214_v53 = vpop.f32.mrf.mxu0 }
  0xab   : > { %1292 = vmatmul.bf16.gmra.mxu1 %v1982_v48  ;;  %1341 = vmatmul.bf16.gmra.mxu2 %v1986_v49  ;;  %v1215_v30 = vadd.f32 %v2899_v54, %v1214_v53  ;;  %v2348_v49 = vld [vmem:[%s2625_s5 + $0x5c] sm:$0xf]  ;;  %v1821_v53 = vld [vmem:[%s2625_s5 + $0x60] sm:$0xf] }
  0xad   : > { %1390 = vmatmul.bf16.gmra.mxu3 %v1990_v51  ;;  %1439 = vmatmul.bf16.gmra.mxu0 %v1994_v52  ;;  %v1815_v51 = vld [vmem:[%s2625_s5 + $0x7c] sm:$0xf0] }
  0xae   : > { %v1234_v55 = vpop.f32.mrf.mxu2  ;;  %v1818_v3 = vor.u32 %v2348_v49, %v1815_v51 }
  0xaf   : > { %v2902_v56 = vadd.f32 %v2899_v54, %v1234_v55  ;;  %v2353_v55 = vld [vmem:[%s2625_s5 + $0x80] sm:$0xf0] }
  0xb0   : > { %v1244_v57 = vpop.f32.mrf.mxu3  ;;  %v2907_v59 = vpop.f32.mrf.mxu1  ;;  %v1822_v4 = vor.u32 %v2353_v55, %v1821_v53 }
  0xb1   : > { %v2905_v58 = vadd.f32 %v2899_v54, %v1244_v57  ;;  %v2349_v57 = vld [vmem:[%s2625_s5 + $0x64] sm:$0xf]  ;;  %v1227_v51 = vadd.f32 %v2899_v54, %v2907_v59 }
  0xb2   : > { %v1216_v60 = vpop.f32.mrf.mxu0 }
  0xb3   : > { %v1217_v42 = vadd.f32 %v2899_v54, %v1216_v60 }
  0xb6   : > { %v1236_v5 = vpop.f32.mrf.mxu2 }
  0xb7   : > { %v2918_v6 = vadd.f32 %v2899_v54, %v1236_v5 }
  0xb8   : > { %v1246_v7 = vpop.f32.mrf.mxu3  ;;  %v2923_v11 = vpop.f32.mrf.mxu1 }
  0xb9   : > { %v2921_v10 = vadd.f32 %v2899_v54, %v1246_v7  ;;  %v1826_v7 = vor.u32 %v2349_v57, %v1823_v61  ;;  %v1230_v59 = vadd.f32 %v2899_v54, %v2923_v11 }
  0xba   : > { %v1219_v14 = vpop.f32.mrf.mxu0 }
  0xbb   : > { %1297 = vmatmul.bf16.gmra.mxu1 %v2018_v8  ;;  %1346 = vmatmul.bf16.gmra.mxu2 %v2022_v9  ;;  %v1220_v1 = vadd.f32 %v2899_v54, %v1219_v14  ;;  %v1830_v8 = vor.u32 %v2354_v63, %v1829_v62 }
  0xbd   : > { %1395 = vmatmul.bf16.gmra.mxu3 %v2026_v12  ;;  %1444 = vmatmul.bf16.gmra.mxu0 %v2030_v13 }
  0xbe   : > { %v1239_v15 = vpop.f32.mrf.mxu2 }
  0xbf   : > { %v2926_v16 = vadd.f32 %v2899_v54, %v1239_v15 }
  0xc0   : > { %v1249_v17 = vpop.f32.mrf.mxu3  ;;  %v2931_v19 = vpop.f32.mrf.mxu1 }
  0xc1   : > { %v2929_v18 = vadd.f32 %v2899_v54, %v1249_v17 }
  0xc2   : > { %v1221_v20 = vpop.f32.mrf.mxu0 }
  0xc3   : > { %v1222_v17 = vadd.f32 %v2899_v54, %v1221_v20  ;;  %v1225_v20 = vadd.f32 %v2899_v54, %v2894_v50 }
  0xc6   : > { %v1241_v29 = vpop.f32.mrf.mxu2 }
  0xc7   : > { %v2943_v31 = vadd.f32 %v2899_v54, %v1241_v29 }
  0xc8   : > { %v1251_v32 = vpop.f32.mrf.mxu3  ;;  %v1263_v36 = vpop.f32.mrf.mxu1 }
  0xc9   : > { %v2946_v35 = vadd.f32 %v2899_v54, %v1251_v32  ;;  %v1264_v39 = vadd.f32 %v1263_v36, %v1215_v30  ;;  %v1857_v30 = vld [vmem:[%s2625_s5 + $0xa8] sm:$0xf]  ;;  %v2362_v32 = vld [vmem:[%s2625_s5 + $0xc8] sm:$0xf0]  ;;  %v1865_v36 = vld [vmem:[%s2625_s5 + $0xb0] sm:$0xf] }
  0xca   : > { %v1410_v40 = vpop.f32.mrf.mxu0 }
  0xcb   : > { %1458 = vmatmul.bf16.vlgmr.msra.gmra.mxu1 %v1782_v33  ;;  %1507 = vmatmul.bf16.vlgmr.msra.gmra.mxu2 %v1786_v34  ;;  %v2358_v33 = vld [vmem:[%s2625_s5 + $0xac] sm:$0xf]  ;;  %v1859_v34 = vld [vmem:[%s2625_s5 + $0xcc] sm:$0xf0] }
  0xcd   : > { %1556 = vmatmul.bf16.vlgmr.msra.gmra.mxu3 %v1790_v37  ;;  %1605 = vmatmul.bf16.vlgmr.msra.gmra.mxu0 %v1794_v38  ;;  %v2363_v37 = vld [vmem:[%s2625_s5 + $0xd0] sm:$0xf0] }
  0xce   : > { %v1312_v41 = vpop.f32.mrf.mxu2 }
  0xcf   : > { %v1313_v43 = vadd.f32 %v1312_v41, %v1264_v39  ;;  %v1854_v41 = vor.u32 %v2357_v27, %v1851_v28  ;;  %v1232_v28 = vadd.f32 %v2899_v54, %v2931_v19 }
  0xd0   : > { %v1361_v44 = vpop.f32.mrf.mxu3  ;;  %v1265_v45 = vpop.f32.mrf.mxu1 }
  0xd1   : > { %v1362_v46 = vadd.f32 %v1361_v44, %v1313_v43  ;;  %v1266_v47 = vadd.f32 %v1265_v45, %v1217_v42  ;;  %v1858_v42 = vor.u32 %v2362_v32, %v1857_v30  ;;  %v1862_v44 = vor.u32 %v2358_v33, %v1859_v34 }
  0xd2   : > { %v1412_v48 = vpop.f32.mrf.mxu0  ;;  %v1866_v45 = vor.u32 %v2363_v37, %v1865_v36 }
  0xd3   : > { %v2951_v52 = vadd.f32 %v1410_v40, %v1362_v46 }
  0xd6   : > { %v1314_v0 = vpop.f32.mrf.mxu2 }
  0xd7   : > { %v1315_v60 = vadd.f32 %v1314_v0, %v1266_v47  ;;  %v2366_v0 = vld [vmem:[%s2625_s5 + $0xec] sm:$0xf] }
  0xd8   : > { %v1363_v2 = vpop.f32.mrf.mxu3  ;;  %v1268_v5 = vpop.f32.mrf.mxu1 }
  0xd9   : > { %v1364_v9 = vadd.f32 %v1363_v2, %v1315_v60  ;;  %v1269_v12 = vadd.f32 %v1268_v5, %v1220_v1  ;;  %v1887_v1 = vld [vmem:[%s2625_s5 + $0x10c] sm:$0xf0]  ;;  %v1895_v5 = vld [vmem:[%s2625_s5 + $0x114] sm:$0xf0] }
  0xda   : > { %v1415_v13 = vpop.f32.mrf.mxu0  ;;  %v1893_v2 = vld [vmem:[%s2625_s5 + $0xf0] sm:$0xf] }
  0xdb   : > { %1463 = vmatmul.bf16.gmra.mxu1 %v1818_v3  ;;  %1512 = vmatmul.bf16.gmra.mxu2 %v1822_v4  ;;  %v2960_v15 = vadd.f32 %v1412_v48, %v1364_v9  ;;  %v2371_v3 = vld [vmem:[%s2625_s5 + $0x110] sm:$0xf0] }
  0xdc   : > { %v2367_v4 = vld [vmem:[%s2625_s5 + $0xf4] sm:$0xf] }
  0xdd   : > { %1561 = vmatmul.bf16.gmra.mxu3 %v1826_v7  ;;  %1610 = vmatmul.bf16.gmra.mxu0 %v1830_v8  ;;  %v1901_v7 = vld [vmem:[%s2625_s5 + $0xf8] sm:$0xf]  ;;  %v2372_v8 = vld [vmem:[%s2625_s5 + $0x118] sm:$0xf0] }
  0xde   : > { %v1317_v14 = vpop.f32.mrf.mxu2 }
  0xdf   : > { %v1318_v21 = vadd.f32 %v1317_v14, %v1269_v12  ;;  %v1890_v14 = vor.u32 %v2366_v0, %v1887_v1 }
  0xe0   : > { %v1366_v22 = vpop.f32.mrf.mxu3  ;;  %v1270_v23 = vpop.f32.mrf.mxu1 }
  0xe1   : > { %v1367_v24 = vadd.f32 %v1366_v22, %v1318_v21  ;;  %v1271_v25 = vadd.f32 %v1270_v23, %v1222_v17  ;;  %v1894_v17 = vor.u32 %v2371_v3, %v1893_v2  ;;  %v1898_v22 = vor.u32 %v2367_v4, %v1895_v5  ;;  %v2384_v5 = vld [vmem:[%s2625_s5 + $0x17c] sm:$0xf] }
  0xe2   : > { %v1417_v26 = vpop.f32.mrf.mxu0  ;;  %v1902_v23 = vor.u32 %v2372_v8, %v1901_v7  ;;  %v1959_v7 = vld [vmem:[%s2625_s5 + $0x19c] sm:$0xf0] }
  0xe3   : > { %v2965_v29 = vadd.f32 %v1415_v13, %v1367_v24 }
  0xe6   : > { %v1319_v38 = vpop.f32.mrf.mxu2 }
  0xe7   : > { %v1320_v39 = vadd.f32 %v1319_v38, %v1271_v25  ;;  %v2375_v38 = vld [vmem:[%s2625_s5 + $0x134] sm:$0xf] }
  0xe8   : > { %v1368_v40 = vpop.f32.mrf.mxu3  ;;  %v1273_v43 = vpop.f32.mrf.mxu1 }
  0xe9   : > { %v1369_v46 = vadd.f32 %v1368_v40, %v1320_v39  ;;  %v1274_v47 = vadd.f32 %v1273_v43, %v1225_v20  ;;  %v1923_v20 = vld [vmem:[%s2625_s5 + $0x154] sm:$0xf0]  ;;  %v1931_v43 = vld [vmem:[%s2625_s5 + $0x15c] sm:$0xf0] }
  0xea   : > { %v1420_v48 = vpop.f32.mrf.mxu0  ;;  %v1929_v40 = vld [vmem:[%s2625_s5 + $0x138] sm:$0xf]  ;;  %v1926_v54 = vor.u32 %v2375_v38, %v1923_v20 }
  0xeb   : > { %1468 = vmatmul.bf16.gmra.mxu1 %v1854_v41  ;;  %1517 = vmatmul.bf16.gmra.mxu2 %v1858_v42  ;;  %v2975_v49 = vadd.f32 %v1417_v26, %v1369_v46  ;;  %v2380_v41 = vld [vmem:[%s2625_s5 + $0x158] sm:$0xf0] }
  0xec   : > { %v2376_v42 = vld [vmem:[%s2625_s5 + $0x13c] sm:$0xf]  ;;  %v1930_v19 = vor.u32 %v2380_v41, %v1929_v40  ;;  %v2393_v41 = vld [vmem:[%s2625_s5 + $0x1c4] sm:$0xf] }
  0xed   : > { %1566 = vmatmul.bf16.gmra.mxu3 %v1862_v44  ;;  %1615 = vmatmul.bf16.gmra.mxu0 %v1866_v45  ;;  %v1937_v44 = vld [vmem:[%s2625_s5 + $0x140] sm:$0xf]  ;;  %v2381_v45 = vld [vmem:[%s2625_s5 + $0x160] sm:$0xf0] }
  0xee   : > { %v1322_v50 = vpop.f32.mrf.mxu2 }
  0xef   : > { %v1323_v53 = vadd.f32 %v1322_v50, %v1274_v47 }
  0xf0   : > { %v1371_v55 = vpop.f32.mrf.mxu3  ;;  %v1275_v57 = vpop.f32.mrf.mxu1 }
  0xf1   : > { %v1372_v61 = vadd.f32 %v1371_v55, %v1323_v53  ;;  %v1276_v62 = vadd.f32 %v1275_v57, %v1227_v51  ;;  %v1934_v51 = vor.u32 %v2376_v42, %v1931_v43  ;;  %v1938_v53 = vor.u32 %v2381_v45, %v1937_v44  ;;  %v1995_v42 = vld [vmem:[%s2625_s5 + $0x1e4] sm:$0xf0]  ;;  %v2398_v45 = vld [vmem:[%s2625_s5 + $0x1e8] sm:$0xf0] }
  0xf2   : > { %v1422_v63 = vpop.f32.mrf.mxu0  ;;  %v2001_v44 = vld [vmem:[%s2625_s5 + $0x1c8] sm:$0xf] }
  0xf3   : > { %v2981_v60 = vadd.f32 %v1420_v48, %v1372_v61 }
  0xf6   : > { %v1324_v9 = vpop.f32.mrf.mxu2 }
  0xf7   : > { %v1325_v12 = vadd.f32 %v1324_v9, %v1276_v62  ;;  %v1965_v9 = vld [vmem:[%s2625_s5 + $0x180] sm:$0xf] }
  0xf8   : > { %v1373_v13 = vpop.f32.mrf.mxu3  ;;  %v1278_v21 = vpop.f32.mrf.mxu1 }
  0xf9   : > { %v1374_v24 = vadd.f32 %v1373_v13, %v1325_v12  ;;  %v1279_v25 = vadd.f32 %v1278_v21, %v1230_v59  ;;  %v2389_v59 = vld [vmem:[%s2625_s5 + $0x1a0] sm:$0xf0]  ;;  %v1967_v13 = vld [vmem:[%s2625_s5 + $0x1a4] sm:$0xf0] }
  0xfa   : > { %v1425_v26 = vpop.f32.mrf.mxu0  ;;  %v2385_v12 = vld [vmem:[%s2625_s5 + $0x184] sm:$0xf] }
  0xfb   : > { %1473 = vmatmul.bf16.gmra.mxu1 %v1890_v14  ;;  %1522 = vmatmul.bf16.gmra.mxu2 %v1894_v17  ;;  %v2991_v27 = vadd.f32 %v1422_v63, %v1374_v24  ;;  %v1973_v14 = vld [vmem:[%s2625_s5 + $0x188] sm:$0xf]  ;;  %v2390_v17 = vld [vmem:[%s2625_s5 + $0x1a8] sm:$0xf0]  ;;  %v1962_v24 = vor.u32 %v2384_v5, %v1959_v7 }
  0xfd   : > { %1571 = vmatmul.bf16.gmra.mxu3 %v1898_v22  ;;  %1620 = vmatmul.bf16.gmra.mxu0 %v1902_v23 }
  0xfe   : > { %v1327_v11 = vpop.f32.mrf.mxu2 }
  0xff   : > { %v1328_v30 = vadd.f32 %v1327_v11, %v1279_v25  ;;  %v1966_v25 = vor.u32 %v2389_v59, %v1965_v9  ;;  %v1970_v11 = vor.u32 %v2385_v12, %v1967_v13  ;;  %v2402_v59 = vld [vmem:[%s2625_s5 + $0x20c] sm:$0xf]  ;;  %v2031_v12 = vld [vmem:[%s2625_s5 + $0x22c] sm:$0xf0] }
 0x100   : > { %v1376_v32 = vpop.f32.mrf.mxu3  ;;  %v1280_v33 = vpop.f32.mrf.mxu1 }
 0x101   : > { %v1377_v34 = vadd.f32 %v1376_v32, %v1328_v30  ;;  %v1281_v36 = vadd.f32 %v1280_v33, %v1232_v28  ;;  %v1974_v28 = vor.u32 %v2390_v17, %v1973_v14  ;;  %v2037_v14 = vld [vmem:[%s2625_s5 + $0x210] sm:$0xf]  ;;  %v2407_v17 = vld [vmem:[%s2625_s5 + $0x230] sm:$0xf0] }
 0x102   : > { %v1427_v37 = vpop.f32.mrf.mxu0 }
 0x103   : > { %v2997_v39 = vadd.f32 %v1425_v26, %v1377_v34 }
 0x106   : > { %v1329_v46 = vpop.f32.mrf.mxu2 }
 0x107   : > { %v1330_v47 = vadd.f32 %v1329_v46, %v1281_v36  ;;  %v2394_v46 = vld [vmem:[%s2625_s5 + $0x1cc] sm:$0xf] }
 0x108   : > { %v1378_v48 = vpop.f32.mrf.mxu3  ;;  %v1283_v50 = vpop.f32.mrf.mxu1 }
 0x109   : > { %v1379_v55 = vadd.f32 %v1378_v48, %v1330_v47  ;;  %v1284_v57 = vadd.f32 %v1283_v50, %v2902_v56  ;;  %v2003_v47 = vld [vmem:[%s2625_s5 + $0x1ec] sm:$0xf0] }
 0x10a   : > { %v1430_v61 = vpop.f32.mrf.mxu0  ;;  %v2009_v48 = vld [vmem:[%s2625_s5 + $0x1d0] sm:$0xf] }
 0x10b   : > { %1478 = vmatmul.bf16.gmra.mxu1 %v1926_v54  ;;  %1527 = vmatmul.bf16.gmra.mxu2 %v1930_v19  ;;  %v3006_v62 = vadd.f32 %v1427_v37, %v1379_v55  ;;  %v2399_v54 = vld [vmem:[%s2625_s5 + $0x1f0] sm:$0xf0]  ;;  %v2002_v55 = vor.u32 %v2398_v45, %v2001_v44 }
 0x10d   : > { %1576 = vmatmul.bf16.gmra.mxu3 %v1934_v51  ;;  %1625 = vmatmul.bf16.gmra.mxu0 %v1938_v53  ;;  %v1998_v53 = vor.u32 %v2393_v41, %v1995_v42 }
 0x10e   : > { %v1332_v63 = vpop.f32.mrf.mxu2 }
 0x10f   : > { %v1333_v0 = vadd.f32 %v1332_v63, %v1284_v57  ;;  %v2010_v63 = vor.u32 %v2399_v54, %v2009_v48 }
 0x110   : > { %v1381_v1 = vpop.f32.mrf.mxu3  ;;  %v1285_v2 = vpop.f32.mrf.mxu1 }
 0x111   : > { %v1382_v3 = vadd.f32 %v1381_v1, %v1333_v0  ;;  %v1286_v56 = vadd.f32 %v1285_v2, %v2918_v6 }
 0x112   : > { %v1432_v4 = vpop.f32.mrf.mxu0 }
 0x113   : > { %v3011_v8 = vadd.f32 %v1430_v61, %v1382_v3  ;;  %v2006_v61 = vor.u32 %v2394_v46, %v2003_v47 }
 0x116   : > { %v1334_v21 = vpop.f32.mrf.mxu2 }
 0x117   : > { %v1335_v22 = vadd.f32 %v1334_v21, %v1286_v56  ;;  %v2403_v21 = vld [vmem:[%s2625_s5 + $0x214] sm:$0xf] }
 0x118   : > { %v1383_v23 = vpop.f32.mrf.mxu3  ;;  %v1288_v26 = vpop.f32.mrf.mxu1 }
 0x119   : > { %v1384_v6 = vadd.f32 %v1383_v23, %v1335_v22  ;;  %v1289_v30 = vadd.f32 %v1288_v26, %v2926_v16  ;;  %v2039_v22 = vld [vmem:[%s2625_s5 + $0x234] sm:$0xf0] }
 0x11a   : > { %v1435_v32 = vpop.f32.mrf.mxu0  ;;  %v2045_v23 = vld [vmem:[%s2625_s5 + $0x218] sm:$0xf] }
 0x11b   : > { %1483 = vmatmul.bf16.gmra.mxu1 %v1962_v24  ;;  %1532 = vmatmul.bf16.gmra.mxu2 %v1966_v25  ;;  %v3020_v33 = vadd.f32 %v1432_v4, %v1384_v6  ;;  %v2408_v24 = vld [vmem:[%s2625_s5 + $0x238] sm:$0xf0]  ;;  %v2038_v6 = vor.u32 %v2407_v17, %v2037_v14  ;;  %s1758_s5 = sshll.u32 %s3093_s20, 2 }
 0x11c   : > { %s3061_s22 = scalar_lea.vmem %s3091_s3, %s1758_s5 }
 0x11d   : > { %1581 = vmatmul.bf16.gmra.mxu3 %v1970_v11  ;;  %1630 = vmatmul.bf16.gmra.mxu0 %v1974_v28  ;;  %v2034_v28 = vor.u32 %v2402_v59, %v2031_v12 }
 0x11e   : > { %v1337_v34 = vpop.f32.mrf.mxu2 }
 0x11f   : > { %v1338_v36 = vadd.f32 %v1337_v34, %v1289_v30  ;;  %v2046_v34 = vor.u32 %v2408_v24, %v2045_v23 }
 0x120   : > { %v1386_v37 = vpop.f32.mrf.mxu3  ;;  %v1290_v38 = vpop.f32.mrf.mxu1 }
 0x121   : > { %v1387_v20 = vadd.f32 %v1386_v37, %v1338_v36  ;;  %v1291_v16 = vadd.f32 %v1290_v38, %v2943_v31 }
 0x122   : > { %v1437_v40 = vpop.f32.mrf.mxu0 }
 0x123   : > { %v3025_v43 = vadd.f32 %v1435_v32, %v1387_v20  ;;  %v2042_v32 = vor.u32 %v2403_v21, %v2039_v22 }
 0x126   : > { %v1339_v19 = vpop.f32.mrf.mxu2 }
 0x127   : > { %v1340_v50 = vadd.f32 %v1339_v19, %v1291_v16 }
 0x128   : > { %v1388_v51 = vpop.f32.mrf.mxu3  ;;  %v1293_v57 = vpop.f32.mrf.mxu1 }
 0x129   : > { %v1389_v31 = vadd.f32 %v1388_v51, %v1340_v50  ;;  %v1294_v0 = vadd.f32 %v1293_v57, %v2905_v58 }
 0x12a   : > { %v1440_v1 = vpop.f32.mrf.mxu0 }
 0x12b   : > { %1488 = vmatmul.bf16.gmra.mxu1 %v1998_v53  ;;  %1537 = vmatmul.bf16.gmra.mxu2 %v2002_v55  ;;  %v3034_v2 = vadd.f32 %v1437_v40, %v1389_v31 }
 0x12d   : > { %1586 = vmatmul.bf16.gmra.mxu3 %v2006_v61  ;;  %1635 = vmatmul.bf16.gmra.mxu0 %v2010_v63 }
 0x12e   : > { %v1342_v3 = vpop.f32.mrf.mxu2 }
 0x12f   : > { %v1343_v56 = vadd.f32 %v1342_v3, %v1294_v0 }
 0x130   : > { %v1391_v4 = vpop.f32.mrf.mxu3  ;;  %v1295_v5 = vpop.f32.mrf.mxu1 }
 0x131   : > { %v1392_v7 = vadd.f32 %v1391_v4, %v1343_v56  ;;  %v1296_v58 = vadd.f32 %v1295_v5, %v2921_v10 }
 0x132   : > { %v1442_v9 = vpop.f32.mrf.mxu0 }
 0x133   : > { %v3039_v13 = vadd.f32 %v1440_v1, %v1392_v7 }
 0x136   : > { %v1344_v25 = vpop.f32.mrf.mxu2 }
 0x137   : > { %v1345_v26 = vadd.f32 %v1344_v25, %v1296_v58 }
 0x138   : > { %v1393_v11 = vpop.f32.mrf.mxu3  ;;  %v1298_v30 = vpop.f32.mrf.mxu1 }
 0x139   : > { %v1394_v10 = vadd.f32 %v1393_v11, %v1345_v26  ;;  %v1299_v36 = vadd.f32 %v1298_v30, %v2929_v18 }
 0x13a   : > { %v1445_v37 = vpop.f32.mrf.mxu0 }
 0x13b   : > { %1493 = vmatmul.bf16.gmra.mxu1 %v2034_v28  ;;  %1542 = vmatmul.bf16.gmra.mxu2 %v2038_v6  ;;  %v3048_v38 = vadd.f32 %v1442_v9, %v1394_v10 }
 0x13d   : > { %1591 = vmatmul.bf16.gmra.mxu3 %v2042_v32  ;;  %1640 = vmatmul.bf16.gmra.mxu0 %v2046_v34 }
 0x13e   : > { %v1347_v20 = vpop.f32.mrf.mxu2 }
 0x13f   : > { %v1348_v16 = vadd.f32 %v1347_v20, %v1299_v36 }
 0x140   : > { %v1396_v40 = vpop.f32.mrf.mxu3  ;;  %v1300_v41 = vpop.f32.mrf.mxu1 }
 0x141   : > { %v1397_v42 = vadd.f32 %v1396_v40, %v1348_v16  ;;  %v1301_v44 = vadd.f32 %v1300_v41, %v2946_v35 }
 0x142   : > { %v1447_v45 = vpop.f32.mrf.mxu0 }
 0x143   : > { %v3051_v46 = vadd.f32 %v1445_v37, %v1397_v42 }
 0x146   : > { %v1349_v47 = vpop.f32.mrf.mxu2 }
 0x147   : > { %v1350_v48 = vadd.f32 %v1349_v47, %v1301_v44 }
 0x148   : > { %v1398_v18 = vpop.f32.mrf.mxu3  ;;  %v1459_v54 = vpop.f32.mrf.mxu1 }
 0x149   : > { %v1399_v19 = vadd.f32 %v1398_v18, %v1350_v48  ;;  %v1460_v55 = vadd.f32 %v1459_v54, %v2951_v52 }
 0x14a   : > { %v1606_v50 = vpop.f32.mrf.mxu0 }
 0x14b   : > { %v3053_v51 = vadd.f32 %v1447_v45, %v1399_v19 }
 0x14e   : > { %v1508_v53 = vpop.f32.mrf.mxu2 }
 0x14f   : > { %v1509_v63 = vadd.f32 %v1508_v53, %v1460_v55 }
 0x150   : > { %v1557_v57 = vpop.f32.mrf.mxu3  ;;  %v1461_v61 = vpop.f32.mrf.mxu1 }
 0x151   : > { %v1558_v35 = vadd.f32 %v1557_v57, %v1509_v63  ;;  %v1462_v0 = vadd.f32 %v1461_v61, %v2960_v15 }
 0x152   : > { %v1608_v31 = vpop.f32.mrf.mxu0 }
 0x153   : > { %v1607_v5 = vadd.f32 %v1606_v50, %v1558_v35 }
 0x155   : > { %v1646_v59 = vmax.f32 %v1607_v5, 0.0 }
 0x156   : > { %v1510_v1 = vpop.f32.mrf.mxu2 }
 0x157   : > { %v1511_v3 = vadd.f32 %v1510_v1, %v1462_v0 }
 0x158   : > { %v1559_v56 = vpop.f32.mrf.mxu3  ;;  %v1464_v4 = vpop.f32.mrf.mxu1 }
 0x159   : > { %v1560_v7 = vadd.f32 %v1559_v56, %v1511_v3  ;;  %v1465_v15 = vadd.f32 %v1464_v4, %v2965_v29 }
 0x15a   : > { %v1611_v58 = vpop.f32.mrf.mxu0 }
 0x15b   : > { %v1609_v9 = vadd.f32 %v1608_v31, %v1560_v7 }
 0x15d   : > { %v1647_v12 = vmax.f32 %v1609_v9, 0.0 }
 0x15e   : > { %v1513_v52 = vpop.f32.mrf.mxu2 }
 0x15f   : > { %v2484_v14 = vpack.c.bf16 %v1647_v12, %v1646_v59  ;;  %v1514_v22 = vadd.f32 %v1513_v52, %v1465_v15 }
 0x160   : > { %v1562_v17 = vpop.f32.mrf.mxu3  ;;  %v1466_v21 = vpop.f32.mrf.mxu1 }
 0x161   : > { %2485 = vst [vmem:[%s3061_s22] sm:$0xff] %v2484_v14   ;;  %v1563_v24 = vadd.f32 %v1562_v17, %v1514_v22  ;;  %v1467_v25 = vadd.f32 %v1466_v21, %v2975_v49 }
 0x162   : > { %v1613_v23 = vpop.f32.mrf.mxu0 }
 0x163   : > { %v1612_v30 = vadd.f32 %v1611_v58, %v1563_v24 }
 0x165   : > { %v1648_v36 = vmax.f32 %v1612_v30, 0.0 }
 0x166   : > { %v1515_v26 = vpop.f32.mrf.mxu2 }
 0x167   : > { %v1516_v11 = vadd.f32 %v1515_v26, %v1467_v25 }
 0x168   : > { %v1564_v28 = vpop.f32.mrf.mxu3  ;;  %v1469_v6 = vpop.f32.mrf.mxu1 }
 0x169   : > { %v1565_v32 = vadd.f32 %v1564_v28, %v1516_v11  ;;  %v1470_v16 = vadd.f32 %v1469_v6, %v2981_v60 }
 0x16a   : > { %v1616_v34 = vpop.f32.mrf.mxu0 }
 0x16b   : > { %v1614_v10 = vadd.f32 %v1613_v23, %v1565_v32 }
 0x16d   : > { %v1649_v37 = vmax.f32 %v1614_v10, 0.0 }
 0x16e   : > { %v1518_v29 = vpop.f32.mrf.mxu2 }
 0x16f   : > { %v2489_v20 = vpack.c.bf16 %v1649_v37, %v1648_v36  ;;  %v1519_v42 = vadd.f32 %v1518_v29, %v1470_v16 }
 0x170   : > { %v1567_v40 = vpop.f32.mrf.mxu3  ;;  %v1471_v41 = vpop.f32.mrf.mxu1 }
 0x171   : > { %2521 = vst [vmem:[%s3061_s22 + $0x8] sm:$0xff] %v2489_v20   ;;  %v1568_v44 = vadd.f32 %v1567_v40, %v1519_v42  ;;  %v1472_v45 = vadd.f32 %v1471_v41, %v2991_v27 }
 0x172   : > { %v1618_v49 = vpop.f32.mrf.mxu0 }
 0x173   : > { %v1617_v19 = vadd.f32 %v1616_v34, %v1568_v44 }
 0x175   : > { %v1650_v57 = vmax.f32 %v1617_v19, 0.0 }
 0x176   : > { %v1520_v47 = vpop.f32.mrf.mxu2 }
 0x177   : > { %v1521_v48 = vadd.f32 %v1520_v47, %v1472_v45 }
 0x178   : > { %v1569_v18 = vpop.f32.mrf.mxu3  ;;  %v1474_v54 = vpop.f32.mrf.mxu1 }
 0x179   : > { %v1570_v50 = vadd.f32 %v1569_v18, %v1521_v48  ;;  %v1475_v31 = vadd.f32 %v1474_v54, %v2997_v39 }
 0x17a   : > { %v1621_v53 = vpop.f32.mrf.mxu0 }
 0x17b   : > { %v1619_v55 = vadd.f32 %v1618_v49, %v1570_v50 }
 0x17d   : > { %v1651_v61 = vmax.f32 %v1619_v55, 0.0 }
 0x17e   : > { %v1523_v60 = vpop.f32.mrf.mxu2 }
 0x17f   : > { %v2494_v63 = vpack.c.bf16 %v1651_v61, %v1650_v57  ;;  %v1524_v1 = vadd.f32 %v1523_v60, %v1475_v31 }
 0x180   : > { %v1572_v35 = vpop.f32.mrf.mxu3  ;;  %v1476_v0 = vpop.f32.mrf.mxu1 }
 0x181   : > { %2522 = vst [vmem:[%s3061_s22 + $0x10] sm:$0xff] %v2494_v63   ;;  %v1573_v3 = vadd.f32 %v1572_v35, %v1524_v1  ;;  %v1477_v56 = vadd.f32 %v1476_v0, %v3006_v62 }
 0x182   : > { %v1623_v27 = vpop.f32.mrf.mxu0 }
 0x183   : > { %v1622_v9 = vadd.f32 %v1621_v53, %v1573_v3 }
 0x185   : > { %v1652_v14 = vmax.f32 %v1622_v9, 0.0 }
 0x186   : > { %v1525_v4 = vpop.f32.mrf.mxu2 }
 0x187   : > { %v1526_v5 = vadd.f32 %v1525_v4, %v1477_v56 }
 0x188   : > { %v1574_v7 = vpop.f32.mrf.mxu3  ;;  %v1479_v58 = vpop.f32.mrf.mxu1 }
 0x189   : > { %v1575_v59 = vadd.f32 %v1574_v7, %v1526_v5  ;;  %v1480_v21 = vadd.f32 %v1479_v58, %v3011_v8 }
 0x18a   : > { %v1626_v12 = vpop.f32.mrf.mxu0 }
 0x18b   : > { %v1624_v52 = vadd.f32 %v1623_v27, %v1575_v59 }
 0x18d   : > { %v1653_v15 = vmax.f32 %v1624_v52, 0.0 }
 0x18e   : > { %v1528_v39 = vpop.f32.mrf.mxu2 }
 0x18f   : > { %v2499_v17 = vpack.c.bf16 %v1653_v15, %v1652_v14  ;;  %v1529_v24 = vadd.f32 %v1528_v39, %v1480_v21 }
 0x190   : > { %v1577_v22 = vpop.f32.mrf.mxu3  ;;  %v1481_v23 = vpop.f32.mrf.mxu1 }
 0x191   : > { %2523 = vst [vmem:[%s3061_s22 + $0x18] sm:$0xff] %v2499_v17   ;;  %v1578_v25 = vadd.f32 %v1577_v22, %v1529_v24  ;;  %v1482_v26 = vadd.f32 %v1481_v23, %v3020_v33 }
 0x192   : > { %v1628_v62 = vpop.f32.mrf.mxu0 }
 0x193   : > { %v1627_v32 = vadd.f32 %v1626_v12, %v1578_v25 }
 0x195   : > { %v1654_v37 = vmax.f32 %v1627_v32, 0.0 }
 0x196   : > { %v1530_v11 = vpop.f32.mrf.mxu2 }
 0x197   : > { %v1531_v28 = vadd.f32 %v1530_v11, %v1482_v26 }
 0x198   : > { %v1579_v6 = vpop.f32.mrf.mxu3  ;;  %v1484_v30 = vpop.f32.mrf.mxu1 }
 0x199   : > { %v1580_v34 = vadd.f32 %v1579_v6, %v1531_v28  ;;  %v1485_v16 = vadd.f32 %v1484_v30, %v3025_v43 }
 0x19a   : > { %v1631_v10 = vpop.f32.mrf.mxu0 }
 0x19b   : > { %v1629_v36 = vadd.f32 %v1628_v62, %v1580_v34 }
 0x19d   : > { %v1655_v29 = vmax.f32 %v1629_v36, 0.0 }
 0x19e   : > { %v1533_v8 = vpop.f32.mrf.mxu2 }
 0x19f   : > { %v2504_v20 = vpack.c.bf16 %v1655_v29, %v1654_v37  ;;  %v1534_v42 = vadd.f32 %v1533_v8, %v1485_v16 }
 0x1a0   : > { %v1582_v40 = vpop.f32.mrf.mxu3  ;;  %v1486_v41 = vpop.f32.mrf.mxu1 }
 0x1a1   : > { %2524 = vst [vmem:[%s3061_s22 + $0x20] sm:$0xff] %v2504_v20   ;;  %v1583_v49 = vadd.f32 %v1582_v40, %v1534_v42  ;;  %v1487_v44 = vadd.f32 %v1486_v41, %v3034_v2 }
 0x1a2   : > { %v1633_v33 = vpop.f32.mrf.mxu0 }
 0x1a3   : > { %v1632_v54 = vadd.f32 %v1631_v10, %v1583_v49 }
 0x1a5   : > { %v1656_v55 = vmax.f32 %v1632_v54, 0.0 }
 0x1a6   : > { %v1535_v45 = vpop.f32.mrf.mxu2 }
 0x1a7   : > { %v1536_v47 = vadd.f32 %v1535_v45, %v1487_v44 }
 0x1a8   : > { %v1584_v48 = vpop.f32.mrf.mxu3  ;;  %v1489_v18 = vpop.f32.mrf.mxu1 }
 0x1a9   : > { %v1585_v19 = vadd.f32 %v1584_v48, %v1536_v47  ;;  %v1490_v60 = vadd.f32 %v1489_v18, %v3039_v13 }
 0x1aa   : > { %v1636_v53 = vpop.f32.mrf.mxu0 }
 0x1ab   : > { %v1634_v50 = vadd.f32 %v1633_v33, %v1585_v19 }
 0x1ad   : > { %v1657_v57 = vmax.f32 %v1634_v50, 0.0 }
 0x1ae   : > { %v1538_v43 = vpop.f32.mrf.mxu2 }
 0x1af   : > { %v2509_v61 = vpack.c.bf16 %v1657_v57, %v1656_v55  ;;  %v1539_v35 = vadd.f32 %v1538_v43, %v1490_v60 }
 0x1b0   : > { %v1587_v63 = vpop.f32.mrf.mxu3  ;;  %v1491_v31 = vpop.f32.mrf.mxu1 }
 0x1b1   : > { %2525 = vst [vmem:[%s3061_s22 + $0x28] sm:$0xff] %v2509_v61   ;;  %v1588_v2 = vadd.f32 %v1587_v63, %v1539_v35  ;;  %v1492_v0 = vadd.f32 %v1491_v31, %v3048_v38 }
 0x1b2   : > { %v1638_v1 = vpop.f32.mrf.mxu0 }
 0x1b3   : > { %v1637_v5 = vadd.f32 %v1636_v53, %v1588_v2 }
 0x1b5   : > { %v1658_v9 = vmax.f32 %v1637_v5, 0.0 }
 0x1b6   : > { %v1540_v27 = vpop.f32.mrf.mxu2 }
 0x1b7   : > { %v1541_v3 = vadd.f32 %v1540_v27, %v1492_v0 }
 0x1b8   : > { %v1589_v56 = vpop.f32.mrf.mxu3  ;;  %v1494_v4 = vpop.f32.mrf.mxu1 }
 0x1b9   : > { %v1590_v7 = vadd.f32 %v1589_v56, %v1541_v3  ;;  %v1495_v52 = vadd.f32 %v1494_v4, %v3051_v46 }
 0x1ba   : > { %v1641_v15 = vpop.f32.mrf.mxu0 }
 0x1bb   : > { %v1639_v58 = vadd.f32 %v1638_v1, %v1590_v7 }
 0x1bd   : > { %v1659_v59 = vmax.f32 %v1639_v58, 0.0 }
 0x1be   : > { %v1543_v12 = vpop.f32.mrf.mxu2 }
 0x1bf   : > { %v2514_v13 = vpack.c.bf16 %v1659_v59, %v1658_v9  ;;  %v1544_v38 = vadd.f32 %v1543_v12, %v1495_v52 }
 0x1c0   : > { %v1592_v14 = vpop.f32.mrf.mxu3  ;;  %v1496_v39 = vpop.f32.mrf.mxu1 }
 0x1c1   : > { %2526 = vst [vmem:[%s3061_s22 + $0x30] sm:$0xff] %v2514_v13   ;;  %v1593_v17 = vadd.f32 %v1592_v14, %v1544_v38  ;;  %v1497_v21 = vadd.f32 %v1496_v39, %v3053_v51 }
 0x1c2   : > { %v1643_v26 = vpop.f32.mrf.mxu0 }
 0x1c3   : > { %v1642_v62 = vadd.f32 %v1641_v15, %v1593_v17 }
 0x1c5   : > { %v1660_v28 = vmax.f32 %v1642_v62, 0.0 }
 0x1c6   : > { %v1545_v22 = vpop.f32.mrf.mxu2 }
 0x1c7   : > { %v1546_v23 = vadd.f32 %v1545_v22, %v1497_v21 }
 0x1c8   : > { %v1594_v24 = vpop.f32.mrf.mxu3 }
 0x1c9   : > { %v1595_v25 = vadd.f32 %v1594_v24, %v1546_v23 }
 0x1cb   : > { %v1644_v11 = vadd.f32 %v1643_v26, %v1595_v25 }
 0x1cd   : > { %v1661_v6 = vmax.f32 %v1644_v11, 0.0 }
 0x1cf   : > { %v2519_v30 = vpack.c.bf16 %v1661_v6, %v1660_v28 }
 0x1d1   : > { %2527 = vst [vmem:[%s3061_s22 + $0x38] sm:$0xff] %v2519_v30  }
 0x1d2 PF: > { %s13_s12 = sadd.s32 1, %s2568_s12  }
 0x1d3   : > { %p10_p4 = scmp.ge.s32.totalorder %s13_s12, 6  }
 0x1d5   :  { %12 = sbr.rel (!%p10_p4) target bundleno = 1 (0x1), region = 62 }

// kernel: openai_clip_forward.12
= control target key start
LH: loop header
LB: loop body
LE: loop exit
PB: predicated region body
PF: predicated region fallthrough
CT: control target
= control target key end

     0   :  { %s631_s1 = inlined_call_operand.vmem [shape: bf16[128,128], index: 1, kind: input, shape index: {}]   ;;  %s632_s2 = inlined_call_operand.vmem [shape: f32[1,128], index: 2, kind: input, shape index: {}]   ;;  %s633_s0 = inlined_call_operand.vmem [shape: bf16[128,128], index: 0, kind: input, shape index: {}]   ;;  %s634_s3 = inlined_call_operand.vmem [shape: bf16[128,128], index: 3, kind: input, shape index: {}]   ;;  %s635_s4 = inlined_call_operand.vmem [shape: bf16[128,128], index: 4, kind: output, shape index: {}]  }
   0x1   :  { %v377_v0 = vld [vmem:[%s631_s1 + $0x38] sm:$0xff]  ;;  %v376_v1 = vld [vmem:[%s631_s1 + $0x30] sm:$0xff]  ;;  %v375_v2 = vld [vmem:[%s631_s1 + $0x28] sm:$0xff] }
   0x2   :  { %149 = vmatpush.bf16.msra.mxu0 %v377_v0  ;;  %464 = vmatpush.bf16.msra.mxu1 %v377_v0  ;;  %v374_v3 = vld [vmem:[%s631_s1 + $0x20] sm:$0xff]  ;;  %v373_v4 = vld [vmem:[%s631_s1 + $0x18] sm:$0xff]  ;;  %v372_v5 = vld [vmem:[%s631_s1 + $0x10] sm:$0xff] }
   0x3   :  { %465 = vmatpush.bf16.msra.mxu2 %v377_v0  ;;  %466 = vmatpush.bf16.msra.mxu3 %v377_v0  ;;  %v371_v6 = vld [vmem:[%s631_s1 + $0x8] sm:$0xff]  ;;  %v370_v7 = vld [vmem:[%s631_s1] sm:$0xff]  ;;  %v364_v9 = vld [vmem:[%s633_s0 + $0x10] sm:$0xff] }
   0x4   :  { %v362_v8 = vld [vmem:[%s633_s0] sm:$0xff]  ;;  %v368_v11 = vld [vmem:[%s633_s0 + $0x30] sm:$0xff]  ;;  %v363_v12 = vld [vmem:[%s633_s0 + $0x8] sm:$0xff] }
   0x5   :  { %v366_v10 = vld [vmem:[%s633_s0 + $0x20] sm:$0xff]  ;;  %v365_v13 = vld [vmem:[%s633_s0 + $0x18] sm:$0xff]  ;;  %v367_v14 = vld [vmem:[%s633_s0 + $0x28] sm:$0xff] }
   0x6   :  { %150 = vmatpush.bf16.msra.mxu0 %v376_v1  ;;  %467 = vmatpush.bf16.msra.mxu1 %v376_v1  ;;  %v369_v15 = vld [vmem:[%s633_s0 + $0x38] sm:$0xff]  ;;  %v565_v18 = vld [vmem:[%s632_s2] ss:$0 sm:$0xff]  ;;  %v451_v20 = vld [vmem:[%s634_s3 + $0x10] sm:$0xff]  }
   0x7   :  { %468 = vmatpush.bf16.msra.mxu2 %v376_v1  ;;  %469 = vmatpush.bf16.msra.mxu3 %v376_v1  ;;  %v379_v19 = vld [vmem:[%s634_s3] sm:$0xff]   ;;  %v388_v24 = vunpack.c.l.bf16 %v451_v20  ;;  %v389_v28 = vunpack.c.h.bf16 %v451_v20  ;;  %v455_v34 = vld [vmem:[%s634_s3 + $0x30] sm:$0xff]   ;;  %v450_v61 = vld [vmem:[%s634_s3 + $0x8] sm:$0xff]  }
   0x8   :  { %v380_v22 = vunpack.c.l.bf16 %v379_v19  ;;  %v381_v27 = vunpack.c.h.bf16 %v379_v19  ;;  %v453_v33 = vld [vmem:[%s634_s3 + $0x20] sm:$0xff]   ;;  %v404_v42 = vunpack.c.l.bf16 %v455_v34  ;;  %v405_v48 = vunpack.c.h.bf16 %v455_v34  ;;  %v452_v62 = vld [vmem:[%s634_s3 + $0x18] sm:$0xff]  }
   0x9   :  { %v396_v40 = vunpack.c.l.bf16 %v453_v33  ;;  %v397_v47 = vunpack.c.h.bf16 %v453_v33  ;;  %v456_v19 = vld [vmem:[%s634_s3 + $0x38] sm:$0xff]  }
   0xa   :  { %151 = vmatpush.bf16.msra.mxu0 %v375_v2  ;;  %470 = vmatpush.bf16.msra.mxu1 %v375_v2  ;;  %v409_v33 = vunpack.c.h.bf16 %v456_v19 }
   0xb   :  { %471 = vmatpush.bf16.msra.mxu2 %v375_v2  ;;  %472 = vmatpush.bf16.msra.mxu3 %v375_v2 }
   0xe   :  { %152 = vmatpush.bf16.msra.mxu0 %v374_v3  ;;  %473 = vmatpush.bf16.msra.mxu1 %v374_v3 }
   0xf   :  { %474 = vmatpush.bf16.msra.mxu2 %v374_v3  ;;  %475 = vmatpush.bf16.msra.mxu3 %v374_v3 }
  0x12   :  { %153 = vmatpush.bf16.msra.mxu0 %v373_v4  ;;  %476 = vmatpush.bf16.msra.mxu1 %v373_v4 }
  0x13   :  { %477 = vmatpush.bf16.msra.mxu2 %v373_v4  ;;  %478 = vmatpush.bf16.msra.mxu3 %v373_v4  ;;  %v384_v4 = vunpack.c.l.bf16 %v450_v61 }
  0x16   :  { %154 = vmatpush.bf16.msra.mxu0 %v372_v5  ;;  %479 = vmatpush.bf16.msra.mxu1 %v372_v5 }
  0x17   :  { %480 = vmatpush.bf16.msra.mxu2 %v372_v5  ;;  %481 = vmatpush.bf16.msra.mxu3 %v372_v5 }
  0x1a   :  { %155 = vmatpush.bf16.msra.mxu0 %v371_v6  ;;  %482 = vmatpush.bf16.msra.mxu1 %v371_v6 }
  0x1b   :  { %483 = vmatpush.bf16.msra.mxu2 %v371_v6  ;;  %484 = vmatpush.bf16.msra.mxu3 %v371_v6  ;;  %v392_v6 = vunpack.c.l.bf16 %v452_v62 }
  0x1e   :  { %156 = vmatpush.bf16.msra.mxu0 %v370_v7  ;;  %485 = vmatpush.bf16.msra.mxu1 %v370_v7 }
  0x1f   :  { %486 = vmatpush.bf16.msra.mxu2 %v370_v7  ;;  %487 = vmatpush.bf16.msra.mxu3 %v370_v7 }
  0x21   :  { %157 = vmatmul.bf16.vlgmr.msra.gmra.mxu0 %v362_v8  ;;  %167 = vmatmul.bf16.vlgmr.msra.gmra.mxu1 %v364_v9 }
  0x22   :  { %177 = vmatmul.bf16.vlgmr.msra.gmra.mxu2 %v366_v10  ;;  %187 = vmatmul.bf16.vlgmr.msra.gmra.mxu3 %v368_v11  ;;  %v385_v11 = vunpack.c.h.bf16 %v450_v61 }
  0x31   :  { %162 = vmatmul.bf16.gmra.mxu0 %v363_v12  ;;  %172 = vmatmul.bf16.gmra.mxu1 %v365_v13  ;;  %v393_v12 = vunpack.c.h.bf16 %v452_v62 }
  0x32   :  { %182 = vmatmul.bf16.gmra.mxu2 %v367_v14  ;;  %192 = vmatmul.bf16.gmra.mxu3 %v369_v15 }
  0x9e   :  { %v158_v16 = vpop.f32.mrf.mxu0  ;;  %v168_v17 = vpop.f32.mrf.mxu1 }
  0x9f   :  { %v159_v21 = vadd.f32 %v565_v18, %v158_v16  ;;  %v169_v23 = vadd.f32 %v565_v18, %v168_v17  ;;  %v454_v17 = vld [vmem:[%s634_s3 + $0x28] sm:$0xff]  }
  0xa1   :  { %v230_v31 = vadd.f32 %v380_v22, %v159_v21  ;;  %v234_v32 = vadd.f32 %v388_v24, %v169_v23 }
  0xa3   :  { %v246_v43 = vmax.f32 %v230_v31, 0.0  ;;  %v250_v44 = vmax.f32 %v234_v32, 0.0  ;;  %v401_v32 = vunpack.c.h.bf16 %v454_v17 }
  0xa5   :  { %v178_v25 = vpop.f32.mrf.mxu2  ;;  %v188_v26 = vpop.f32.mrf.mxu3 }
  0xa6   :  { %v160_v29 = vpop.f32.mrf.mxu0  ;;  %v170_v30 = vpop.f32.mrf.mxu1  ;;  %v179_v39 = vadd.f32 %v565_v18, %v178_v25  ;;  %v189_v41 = vadd.f32 %v565_v18, %v188_v26  ;;  %v400_v25 = vunpack.c.l.bf16 %v454_v17 }
  0xa7   :  { %v161_v35 = vadd.f32 %v565_v18, %v160_v29  ;;  %v171_v36 = vadd.f32 %v565_v18, %v170_v30 }
  0xa8   :  { %v238_v53 = vadd.f32 %v396_v40, %v179_v39  ;;  %v242_v54 = vadd.f32 %v404_v42, %v189_v41 }
  0xa9   :  { %v231_v37 = vadd.f32 %v381_v27, %v161_v35  ;;  %v235_v38 = vadd.f32 %v389_v28, %v171_v36  ;;  %v408_v27 = vunpack.c.l.bf16 %v456_v19 }
  0xaa   :  { %v254_v63 = vmax.f32 %v238_v53, 0.0  ;;  %v258_v0 = vmax.f32 %v242_v54, 0.0 }
  0xab   :  { %v247_v45 = vmax.f32 %v231_v37, 0.0  ;;  %v251_v46 = vmax.f32 %v235_v38, 0.0 }
  0xad   :  { %v413_v49 = vpack.c.bf16 %v247_v45, %v246_v43  ;;  %v423_v50 = vpack.c.bf16 %v251_v46, %v250_v44  ;;  %v180_v51 = vpop.f32.mrf.mxu2  ;;  %v190_v52 = vpop.f32.mrf.mxu3 }
  0xae   :  { %v181_v55 = vadd.f32 %v565_v18, %v180_v51  ;;  %v191_v56 = vadd.f32 %v565_v18, %v190_v52  ;;  %v163_v57 = vpop.f32.mrf.mxu0  ;;  %v173_v58 = vpop.f32.mrf.mxu1 }
  0xaf   :  { %414 = vst [vmem:[%s635_s4] sm:$0xff] %v413_v49   ;;  %v164_v3 = vadd.f32 %v565_v18, %v163_v57  ;;  %v174_v5 = vadd.f32 %v565_v18, %v173_v58 }
  0xb0   :  { %458 = vst [vmem:[%s635_s4 + $0x10] sm:$0xff] %v423_v50   ;;  %v239_v59 = vadd.f32 %v397_v47, %v181_v55  ;;  %v243_v60 = vadd.f32 %v405_v48, %v191_v56 }
  0xb1   :  { %v232_v15 = vadd.f32 %v384_v4, %v164_v3  ;;  %v236_v16 = vadd.f32 %v392_v6, %v174_v5 }
  0xb2   :  { %v255_v1 = vmax.f32 %v239_v59, 0.0  ;;  %v259_v2 = vmax.f32 %v243_v60, 0.0 }
  0xb3   :  { %v248_v28 = vmax.f32 %v232_v15, 0.0  ;;  %v252_v29 = vmax.f32 %v236_v16, 0.0 }
  0xb4   :  { %v433_v7 = vpack.c.bf16 %v255_v1, %v254_v63  ;;  %v443_v8 = vpack.c.bf16 %v259_v2, %v258_v0 }
  0xb5   :  { %v183_v9 = vpop.f32.mrf.mxu2  ;;  %v193_v10 = vpop.f32.mrf.mxu3 }
  0xb6   :  { %460 = vst [vmem:[%s635_s4 + $0x20] sm:$0xff] %v433_v7   ;;  %v165_v13 = vpop.f32.mrf.mxu0  ;;  %v175_v14 = vpop.f32.mrf.mxu1  ;;  %v184_v24 = vadd.f32 %v565_v18, %v183_v9  ;;  %v194_v26 = vadd.f32 %v565_v18, %v193_v10 }
  0xb7   :  { %462 = vst [vmem:[%s635_s4 + $0x30] sm:$0xff] %v443_v8   ;;  %v166_v20 = vadd.f32 %v565_v18, %v165_v13  ;;  %v176_v21 = vadd.f32 %v565_v18, %v175_v14 }
  0xb8   :  { %v240_v38 = vadd.f32 %v400_v25, %v184_v24  ;;  %v244_v39 = vadd.f32 %v408_v27, %v194_v26 }
  0xb9   :  { %v233_v22 = vadd.f32 %v385_v11, %v166_v20  ;;  %v237_v23 = vadd.f32 %v393_v12, %v176_v21 }
  0xba   :  { %v256_v44 = vmax.f32 %v240_v38, 0.0  ;;  %v260_v45 = vmax.f32 %v244_v39, 0.0 }
  0xbb   :  { %v249_v30 = vmax.f32 %v233_v22, 0.0  ;;  %v253_v31 = vmax.f32 %v237_v23, 0.0 }
  0xbd   :  { %v418_v34 = vpack.c.bf16 %v249_v30, %v248_v28  ;;  %v428_v35 = vpack.c.bf16 %v253_v31, %v252_v29  ;;  %v185_v36 = vpop.f32.mrf.mxu2  ;;  %v195_v37 = vpop.f32.mrf.mxu3 }
  0xbe   :  { %v186_v40 = vadd.f32 %v565_v18, %v185_v36  ;;  %v196_v41 = vadd.f32 %v565_v18, %v195_v37 }
  0xbf   :  { %457 = vst [vmem:[%s635_s4 + $0x8] sm:$0xff] %v418_v34  }
  0xc0   :  { %459 = vst [vmem:[%s635_s4 + $0x18] sm:$0xff] %v428_v35   ;;  %v241_v42 = vadd.f32 %v401_v32, %v186_v40  ;;  %v245_v43 = vadd.f32 %v409_v33, %v196_v41 }
  0xc2   :  { %v257_v46 = vmax.f32 %v241_v42, 0.0  ;;  %v261_v47 = vmax.f32 %v245_v43, 0.0 }
  0xc4   :  { %v438_v48 = vpack.c.bf16 %v257_v46, %v256_v44  ;;  %v448_v49 = vpack.c.bf16 %v261_v47, %v260_v45 }
  0xc6   :  { %461 = vst [vmem:[%s635_s4 + $0x28] sm:$0xff] %v438_v48  }
  0xc7   :  { %463 = vst [vmem:[%s635_s4 + $0x38] sm:$0xff] %v448_v49  }

// kernel: openai_clip_forward.11
= control target key start
LH: loop header
LB: loop body
LE: loop exit
PB: predicated region body
PF: predicated region fallthrough
CT: control target
= control target key end

     0   :  { %s3124_s1 = inlined_call_operand.vmem [shape: bf16[1152,128], index: 1, kind: input, shape index: {}]   ;;  %s3125_s2 = inlined_call_operand.vmem [shape: f32[1,128], index: 2, kind: input, shape index: {}]   ;;  %s3126_s0 = inlined_call_operand.vmem [shape: bf16[128,1152], index: 0, kind: input, shape index: {}]   ;;  %s3127_s3 = inlined_call_operand.vmem [shape: bf16[128,128], index: 3, kind: output, shape index: {}]  }
   0x1   :  { %v2190_v0 = vld [vmem:[%s3124_s1 + $0x38] sm:$0xff]  ;;  %v2189_v1 = vld [vmem:[%s3124_s1 + $0x30] sm:$0xff]  ;;  %v2188_v2 = vld [vmem:[%s3124_s1 + $0x28] sm:$0xff] }
   0x2   :  { %2302 = vmatpush.bf16.msra.mxu1 %v2190_v0  ;;  %2303 = vmatpush.bf16.msra.mxu2 %v2190_v0  ;;  %v2187_v3 = vld [vmem:[%s3124_s1 + $0x20] sm:$0xff]  ;;  %v2186_v4 = vld [vmem:[%s3124_s1 + $0x18] sm:$0xff]  ;;  %v2185_v5 = vld [vmem:[%s3124_s1 + $0x10] sm:$0xff] }
   0x3   :  { %2304 = vmatpush.bf16.msra.mxu3 %v2190_v0  ;;  %1042 = vmatpush.bf16.msra.mxu0 %v2190_v0  ;;  %v2184_v6 = vld [vmem:[%s3124_s1 + $0x8] sm:$0xff]  ;;  %v2183_v7 = vld [vmem:[%s3124_s1] sm:$0xff]  ;;  %v1609_v8 = vld [vmem:[%s3126_s0 + $0x90] sm:$0xf] }
   0x4   :  { %v2133_v9 = vld [vmem:[%s3126_s0 + $0xb0] sm:$0xf0]  ;;  %v1681_v10 = vld [vmem:[%s3126_s0 + $0x120] sm:$0xf]  ;;  %v2151_v11 = vld [vmem:[%s3126_s0 + $0x140] sm:$0xf0] }
   0x5   :  { %v1753_v12 = vld [vmem:[%s3126_s0 + $0x1b0] sm:$0xf]  ;;  %v2169_v13 = vld [vmem:[%s3126_s0 + $0x1d0] sm:$0xf0]  ;;  %v1537_v14 = vld [vmem:[%s3126_s0] sm:$0xf]  ;;  %v1610_v18 = vor.u32 %v2133_v9, %v1609_v8  ;;  %v1682_v19 = vor.u32 %v2151_v11, %v1681_v10 }
   0x6   :  { %2305 = vmatpush.bf16.msra.mxu1 %v2189_v1  ;;  %2306 = vmatpush.bf16.msra.mxu2 %v2189_v1  ;;  %v2115_v15 = vld [vmem:[%s3126_s0 + $0x20] sm:$0xf0]  ;;  %v2206_v16 = vld [vmem:[%s3124_s1 + $0xb8] sm:$0xff]  ;;  %v1754_v20 = vor.u32 %v2169_v13, %v1753_v12  ;;  %v2205_v24 = vld [vmem:[%s3124_s1 + $0xb0] sm:$0xff] }
   0x7   :  { %2307 = vmatpush.bf16.msra.mxu3 %v2189_v1  ;;  %1043 = vmatpush.bf16.msra.mxu0 %v2189_v1  ;;  %v2198_v17 = vld [vmem:[%s3124_s1 + $0x78] sm:$0xff]  ;;  %v1538_v21 = vor.u32 %v2115_v15, %v1537_v14  ;;  %v2197_v25 = vld [vmem:[%s3124_s1 + $0x70] sm:$0xff]  ;;  %v2204_v28 = vld [vmem:[%s3124_s1 + $0xa8] sm:$0xff] }
   0x8   :  { %v2214_v22 = vld [vmem:[%s3124_s1 + $0xf8] sm:$0xff]  ;;  %v2213_v26 = vld [vmem:[%s3124_s1 + $0xf0] sm:$0xff]  ;;  %v2196_v29 = vld [vmem:[%s3124_s1 + $0x68] sm:$0xff] }
   0x9   :  { %v2222_v23 = vld [vmem:[%s3124_s1 + $0x138] sm:$0xff]  ;;  %v2221_v27 = vld [vmem:[%s3124_s1 + $0x130] sm:$0xff]  ;;  %v2212_v30 = vld [vmem:[%s3124_s1 + $0xe8] sm:$0xff] }
   0xa   :  { %2308 = vmatpush.bf16.msra.mxu1 %v2188_v2  ;;  %2309 = vmatpush.bf16.msra.mxu2 %v2188_v2  ;;  %v2220_v31 = vld [vmem:[%s3124_s1 + $0x128] sm:$0xff]  ;;  %v2203_v32 = vld [vmem:[%s3124_s1 + $0xa0] sm:$0xff]  ;;  %v1645_v36 = vld [vmem:[%s3126_s0 + $0xd8] sm:$0xf] }
   0xb   :  { %2310 = vmatpush.bf16.msra.mxu3 %v2188_v2  ;;  %1044 = vmatpush.bf16.msra.mxu0 %v2188_v2  ;;  %v2195_v33 = vld [vmem:[%s3124_s1 + $0x60] sm:$0xff]  ;;  %v2142_v37 = vld [vmem:[%s3126_s0 + $0xf8] sm:$0xf0]  ;;  %v1717_v38 = vld [vmem:[%s3126_s0 + $0x168] sm:$0xf] }
   0xc   :  { %v2211_v34 = vld [vmem:[%s3124_s1 + $0xe0] sm:$0xff]  ;;  %v2160_v39 = vld [vmem:[%s3126_s0 + $0x188] sm:$0xf0]  ;;  %v1789_v40 = vld [vmem:[%s3126_s0 + $0x1f8] sm:$0xf]  ;;  %v1646_v46 = vor.u32 %v2142_v37, %v1645_v36 }
   0xd   :  { %v2219_v35 = vld [vmem:[%s3124_s1 + $0x120] sm:$0xff]  ;;  %v2178_v41 = vld [vmem:[%s3126_s0 + $0x218] sm:$0xf0]  ;;  %v1573_v42 = vld [vmem:[%s3126_s0 + $0x48] sm:$0xf]  ;;  %v1718_v47 = vor.u32 %v2160_v39, %v1717_v38 }
   0xe   :  { %2311 = vmatpush.bf16.msra.mxu1 %v2187_v3  ;;  %2312 = vmatpush.bf16.msra.mxu2 %v2187_v3  ;;  %v2124_v43 = vld [vmem:[%s3126_s0 + $0x68] sm:$0xf0]  ;;  %v2202_v44 = vld [vmem:[%s3124_s1 + $0x98] sm:$0xff]  ;;  %v1790_v48 = vor.u32 %v2178_v41, %v1789_v40  ;;  %v2201_v52 = vld [vmem:[%s3124_s1 + $0x90] sm:$0xff] }
   0xf   :  { %2313 = vmatpush.bf16.msra.mxu3 %v2187_v3  ;;  %1045 = vmatpush.bf16.msra.mxu0 %v2187_v3  ;;  %v2194_v45 = vld [vmem:[%s3124_s1 + $0x58] sm:$0xff]  ;;  %v1574_v49 = vor.u32 %v2124_v43, %v1573_v42  ;;  %v2193_v53 = vld [vmem:[%s3124_s1 + $0x50] sm:$0xff]  ;;  %v2200_v56 = vld [vmem:[%s3124_s1 + $0x88] sm:$0xff] }
  0x10   :  { %v2210_v50 = vld [vmem:[%s3124_s1 + $0xd8] sm:$0xff]  ;;  %v2209_v54 = vld [vmem:[%s3124_s1 + $0xd0] sm:$0xff]  ;;  %v2192_v57 = vld [vmem:[%s3124_s1 + $0x48] sm:$0xff] }
  0x11   :  { %v2218_v51 = vld [vmem:[%s3124_s1 + $0x118] sm:$0xff]  ;;  %v2217_v55 = vld [vmem:[%s3124_s1 + $0x110] sm:$0xff]  ;;  %v2208_v58 = vld [vmem:[%s3124_s1 + $0xc8] sm:$0xff] }
  0x12   :  { %2314 = vmatpush.bf16.msra.mxu1 %v2186_v4  ;;  %2315 = vmatpush.bf16.msra.mxu2 %v2186_v4  ;;  %v2216_v59 = vld [vmem:[%s3124_s1 + $0x108] sm:$0xff]  ;;  %v2199_v60 = vld [vmem:[%s3124_s1 + $0x80] sm:$0xff]  ;;  %v2238_v2 = vld [vmem:[%s3124_s1 + $0x1b8] sm:$0xff] }
  0x13   :  { %2316 = vmatpush.bf16.msra.mxu3 %v2186_v4  ;;  %1046 = vmatpush.bf16.msra.mxu0 %v2186_v4  ;;  %v2191_v61 = vld [vmem:[%s3124_s1 + $0x40] sm:$0xff]  ;;  %v1539_v1 = vld [vmem:[%s3126_s0 + $0x24] sm:$0xf0]  ;;  %v2230_v3 = vld [vmem:[%s3124_s1 + $0x178] sm:$0xff] }
  0x14   :  { %v2111_v62 = vld [vmem:[%s3126_s0 + $0x4] sm:$0xf]  ;;  %v1545_v4 = vld [vmem:[%s3126_s0 + $0x8] sm:$0xf]  ;;  %v1553_v8 = vld [vmem:[%s3126_s0 + $0x10] sm:$0xf] }
  0x15   :  { %v2207_v63 = vld [vmem:[%s3124_s1 + $0xc0] sm:$0xff]  ;;  %v2117_v9 = vld [vmem:[%s3126_s0 + $0x30] sm:$0xf0]  ;;  %v2246_v10 = vld [vmem:[%s3124_s1 + $0x1f8] sm:$0xff]  ;;  %v1542_v12 = vor.u32 %v2111_v62, %v1539_v1 }
  0x16   :  { %2317 = vmatpush.bf16.msra.mxu1 %v2185_v5  ;;  %2318 = vmatpush.bf16.msra.mxu2 %v2185_v5  ;;  %v2215_v0 = vld [vmem:[%s3124_s1 + $0x100] sm:$0xff]  ;;  %v2254_v11 = vld [vmem:[%s3124_s1 + $0x238] sm:$0xff]  ;;  %v1554_v15 = vor.u32 %v2117_v9, %v1553_v8  ;;  %v2129_v40 = vld [vmem:[%s3126_s0 + $0x94] sm:$0xf] }
  0x17   :  { %2319 = vmatpush.bf16.msra.mxu3 %v2185_v5  ;;  %1047 = vmatpush.bf16.msra.mxu0 %v2185_v5  ;;  %v2116_v5 = vld [vmem:[%s3126_s0 + $0x28] sm:$0xf0]  ;;  %v2235_v36 = vld [vmem:[%s3124_s1 + $0x1a0] sm:$0xff]  ;;  %v1611_v41 = vld [vmem:[%s3126_s0 + $0xb4] sm:$0xf0] }
  0x18   :  { %v1546_v13 = vor.u32 %v2116_v5, %v1545_v4  ;;  %v2243_v37 = vld [vmem:[%s3124_s1 + $0x1e0] sm:$0xff]  ;;  %v1617_v42 = vld [vmem:[%s3126_s0 + $0x98] sm:$0xf]  ;;  %v2134_v43 = vld [vmem:[%s3126_s0 + $0xb8] sm:$0xf0] }
  0x19   :  { %v2227_v38 = vld [vmem:[%s3124_s1 + $0x160] sm:$0xff]  ;;  %v1661_v62 = vld [vmem:[%s3126_s0 + $0xe8] sm:$0xf]  ;;  %v2233_v4 = vld [vmem:[%s3124_s1 + $0x190] sm:$0xff] }
  0x1a   :  { %2320 = vmatpush.bf16.msra.mxu1 %v2184_v6  ;;  %2321 = vmatpush.bf16.msra.mxu2 %v2184_v6  ;;  %v2251_v39 = vld [vmem:[%s3124_s1 + $0x220] sm:$0xff]  ;;  %v2241_v5 = vld [vmem:[%s3124_s1 + $0x1d0] sm:$0xff]  ;;  %v1683_v9 = vld [vmem:[%s3126_s0 + $0x144] sm:$0xf0] }
  0x1b   :  { %2322 = vmatpush.bf16.msra.mxu3 %v2184_v6  ;;  %1048 = vmatpush.bf16.msra.mxu0 %v2184_v6  ;;  %v2112_v6 = vld [vmem:[%s3126_s0 + $0xc] sm:$0xf]  ;;  %v2147_v8 = vld [vmem:[%s3126_s0 + $0x124] sm:$0xf] }
  0x1e   :  { %2323 = vmatpush.bf16.msra.mxu1 %v2183_v7  ;;  %2324 = vmatpush.bf16.msra.mxu2 %v2183_v7 }
  0x1f   :  { %2325 = vmatpush.bf16.msra.mxu3 %v2183_v7  ;;  %1049 = vmatpush.bf16.msra.mxu0 %v2183_v7  ;;  %v1547_v7 = vld [vmem:[%s3126_s0 + $0x2c] sm:$0xf0] }
  0x20   :  { %v1550_v14 = vor.u32 %v2112_v6, %v1547_v7  ;;  %v2225_v6 = vld [vmem:[%s3124_s1 + $0x150] sm:$0xff] }
  0x21   :  { %1060 = vmatmul.bf16.vlgmr.msra.gmra.mxu1 %v1610_v18  ;;  %1070 = vmatmul.bf16.vlgmr.msra.gmra.mxu2 %v1682_v19  ;;  %v2245_v18 = vld [vmem:[%s3124_s1 + $0x1f0] sm:$0xff] }
  0x22   :  { %1140 = vmatpush.bf16.msrb.mxu2 %v2206_v16  ;;  %1091 = vmatpush.bf16.msrb.mxu1 %v2198_v17  ;;  %v2237_v16 = vld [vmem:[%s3124_s1 + $0x1b0] sm:$0xff] }
  0x23   :  { %1080 = vmatmul.bf16.vlgmr.msra.gmra.mxu3 %v1754_v20  ;;  %1050 = vmatmul.bf16.vlgmr.msra.gmra.mxu0 %v1538_v21  ;;  %v2229_v17 = vld [vmem:[%s3124_s1 + $0x170] sm:$0xff]  ;;  %v2236_v20 = vld [vmem:[%s3124_s1 + $0x1a8] sm:$0xff] }
  0x24   :  { %1189 = vmatpush.bf16.msrb.mxu3 %v2214_v22  ;;  %1238 = vmatpush.bf16.msrb.mxu0 %v2222_v23  ;;  %v2253_v19 = vld [vmem:[%s3124_s1 + $0x230] sm:$0xff]  ;;  %v2228_v21 = vld [vmem:[%s3124_s1 + $0x168] sm:$0xff] }
  0x25   :  { %v2244_v22 = vld [vmem:[%s3124_s1 + $0x1e8] sm:$0xff]  ;;  %v2249_v7 = vld [vmem:[%s3124_s1 + $0x210] sm:$0xff] }
  0x26   :  { %1141 = vmatpush.bf16.msrb.mxu2 %v2205_v24  ;;  %1092 = vmatpush.bf16.msrb.mxu1 %v2197_v25  ;;  %v2252_v23 = vld [vmem:[%s3124_s1 + $0x228] sm:$0xff]  ;;  %v1575_v25 = vld [vmem:[%s3126_s0 + $0x6c] sm:$0xf0] }
  0x27   :  { %v2120_v24 = vld [vmem:[%s3126_s0 + $0x4c] sm:$0xf] }
  0x28   :  { %1190 = vmatpush.bf16.msrb.mxu3 %v2213_v26  ;;  %1239 = vmatpush.bf16.msrb.mxu0 %v2221_v27  ;;  %v1581_v26 = vld [vmem:[%s3126_s0 + $0x50] sm:$0xf]  ;;  %v2125_v27 = vld [vmem:[%s3126_s0 + $0x70] sm:$0xf0] }
  0x2a   :  { %1142 = vmatpush.bf16.msrb.mxu2 %v2204_v28  ;;  %1093 = vmatpush.bf16.msrb.mxu1 %v2196_v29  ;;  %v2121_v28 = vld [vmem:[%s3126_s0 + $0x54] sm:$0xf]  ;;  %v1583_v29 = vld [vmem:[%s3126_s0 + $0x74] sm:$0xf0] }
  0x2c   :  { %1191 = vmatpush.bf16.msrb.mxu3 %v2212_v30  ;;  %1240 = vmatpush.bf16.msrb.mxu0 %v2220_v31  ;;  %v1589_v30 = vld [vmem:[%s3126_s0 + $0x58] sm:$0xf]  ;;  %v2126_v31 = vld [vmem:[%s3126_s0 + $0x78] sm:$0xf0] }
  0x2e   :  { %1143 = vmatpush.bf16.msrb.mxu2 %v2203_v32  ;;  %1094 = vmatpush.bf16.msrb.mxu1 %v2195_v33  ;;  %v1578_v32 = vor.u32 %v2120_v24, %v1575_v25  ;;  %v1582_v33 = vor.u32 %v2125_v27, %v1581_v26  ;;  %v2156_v24 = vld [vmem:[%s3126_s0 + $0x16c] sm:$0xf]  ;;  %v1719_v25 = vld [vmem:[%s3126_s0 + $0x18c] sm:$0xf0]  ;;  %v2161_v27 = vld [vmem:[%s3126_s0 + $0x190] sm:$0xf0] }
  0x2f   :  { %v1725_v26 = vld [vmem:[%s3126_s0 + $0x170] sm:$0xf] }
  0x30   :  { %1192 = vmatpush.bf16.msrb.mxu3 %v2211_v34  ;;  %1241 = vmatpush.bf16.msrb.mxu0 %v2219_v35  ;;  %v1586_v34 = vor.u32 %v2121_v28, %v1583_v29  ;;  %v1590_v35 = vor.u32 %v2126_v31, %v1589_v30  ;;  %v2157_v28 = vld [vmem:[%s3126_s0 + $0x174] sm:$0xf]  ;;  %v1727_v29 = vld [vmem:[%s3126_s0 + $0x194] sm:$0xf0]  ;;  %v2162_v31 = vld [vmem:[%s3126_s0 + $0x198] sm:$0xf0] }
  0x31   :  { %1065 = vmatmul.bf16.gmra.mxu1 %v1646_v46  ;;  %1075 = vmatmul.bf16.gmra.mxu2 %v1718_v47  ;;  %v1625_v46 = vld [vmem:[%s3126_s0 + $0xa0] sm:$0xf]  ;;  %v2135_v47 = vld [vmem:[%s3126_s0 + $0xc0] sm:$0xf0]  ;;  %v1733_v30 = vld [vmem:[%s3126_s0 + $0x178] sm:$0xf] }
  0x32   :  { %1144 = vmatpush.bf16.msrb.mxu2 %v2202_v44  ;;  %1095 = vmatpush.bf16.msrb.mxu1 %v2194_v45  ;;  %v2130_v44 = vld [vmem:[%s3126_s0 + $0x9c] sm:$0xf]  ;;  %v1619_v45 = vld [vmem:[%s3126_s0 + $0xbc] sm:$0xf0] }
  0x33   :  { %1085 = vmatmul.bf16.gmra.mxu3 %v1790_v48  ;;  %1055 = vmatmul.bf16.gmra.mxu0 %v1574_v49  ;;  %v1614_v48 = vor.u32 %v2129_v40, %v1611_v41  ;;  %v1618_v49 = vor.u32 %v2134_v43, %v1617_v42  ;;  %v2165_v40 = vld [vmem:[%s3126_s0 + $0x1b4] sm:$0xf]  ;;  %v1755_v41 = vld [vmem:[%s3126_s0 + $0x1d4] sm:$0xf0]  ;;  %v2170_v43 = vld [vmem:[%s3126_s0 + $0x1d8] sm:$0xf0] }
  0x34   :  { %1193 = vmatpush.bf16.msrb.mxu3 %v2210_v50  ;;  %1242 = vmatpush.bf16.msrb.mxu0 %v2218_v51  ;;  %v1622_v50 = vor.u32 %v2130_v44, %v1619_v45  ;;  %v1626_v51 = vor.u32 %v2135_v47, %v1625_v46  ;;  %v1761_v42 = vld [vmem:[%s3126_s0 + $0x1b8] sm:$0xf]  ;;  %v2166_v44 = vld [vmem:[%s3126_s0 + $0x1bc] sm:$0xf]  ;;  %v1763_v45 = vld [vmem:[%s3126_s0 + $0x1dc] sm:$0xf0] }
  0x35   :  { %v1769_v46 = vld [vmem:[%s3126_s0 + $0x1c0] sm:$0xf]  ;;  %v2171_v47 = vld [vmem:[%s3126_s0 + $0x1e0] sm:$0xf0] }
  0x36   :  { %1145 = vmatpush.bf16.msrb.mxu2 %v2201_v52  ;;  %1096 = vmatpush.bf16.msrb.mxu1 %v2193_v53  ;;  %v2234_v52 = vld [vmem:[%s3124_s1 + $0x198] sm:$0xff] }
  0x37   :  { %v2242_v53 = vld [vmem:[%s3124_s1 + $0x1d8] sm:$0xff] }
  0x38   :  { %1194 = vmatpush.bf16.msrb.mxu3 %v2209_v54  ;;  %1243 = vmatpush.bf16.msrb.mxu0 %v2217_v55  ;;  %v2226_v54 = vld [vmem:[%s3124_s1 + $0x158] sm:$0xff] }
  0x39   :  { %v2250_v55 = vld [vmem:[%s3124_s1 + $0x218] sm:$0xff] }
  0x3a   :  { %1146 = vmatpush.bf16.msrb.mxu2 %v2200_v56  ;;  %1097 = vmatpush.bf16.msrb.mxu1 %v2192_v57  ;;  %v2138_v56 = vld [vmem:[%s3126_s0 + $0xdc] sm:$0xf]  ;;  %v1647_v57 = vld [vmem:[%s3126_s0 + $0xfc] sm:$0xf0] }
  0x3c   :  { %1195 = vmatpush.bf16.msrb.mxu3 %v2208_v58  ;;  %1244 = vmatpush.bf16.msrb.mxu0 %v2216_v59  ;;  %v1653_v58 = vld [vmem:[%s3126_s0 + $0xe0] sm:$0xf]  ;;  %v2143_v59 = vld [vmem:[%s3126_s0 + $0x100] sm:$0xf0] }
  0x3d   :  { %v1654_v1 = vor.u32 %v2143_v59, %v1653_v58 }
  0x3e   :  { %1147 = vmatpush.bf16.msrb.mxu2 %v2199_v60  ;;  %1098 = vmatpush.bf16.msrb.mxu1 %v2191_v61  ;;  %v2139_v60 = vld [vmem:[%s3126_s0 + $0xe4] sm:$0xf]  ;;  %v1655_v61 = vld [vmem:[%s3126_s0 + $0x104] sm:$0xf0] }
  0x40   :  { %1196 = vmatpush.bf16.msrb.mxu3 %v2207_v63  ;;  %1245 = vmatpush.bf16.msrb.mxu0 %v2215_v0  ;;  %v2144_v63 = vld [vmem:[%s3126_s0 + $0x108] sm:$0xf0]  ;;  %v1650_v0 = vor.u32 %v2138_v56, %v1647_v57 }
  0x41   :  { %1099 = vmatmul.bf16.vlgmr.msrb.gmra.mxu1 %v1542_v12  ;;  %1148 = vmatmul.bf16.vlgmr.msrb.gmra.mxu2 %v1546_v13  ;;  %v2148_v12 = vld [vmem:[%s3126_s0 + $0x12c] sm:$0xf]  ;;  %v1691_v13 = vld [vmem:[%s3126_s0 + $0x14c] sm:$0xf0] }
  0x42   :  { %1336 = vmatpush.bf16.msra.mxu2 %v2238_v2  ;;  %1287 = vmatpush.bf16.msra.mxu1 %v2230_v3  ;;  %v1658_v2 = vor.u32 %v2139_v60, %v1655_v61  ;;  %v1662_v3 = vor.u32 %v2144_v63, %v1661_v62  ;;  %v2174_v61 = vld [vmem:[%s3126_s0 + $0x1fc] sm:$0xf]  ;;  %v1791_v62 = vld [vmem:[%s3126_s0 + $0x21c] sm:$0xf0] }
  0x43   :  { %1197 = vmatmul.bf16.vlgmr.msrb.gmra.mxu3 %v1550_v14  ;;  %1246 = vmatmul.bf16.vlgmr.msrb.gmra.mxu0 %v1554_v15  ;;  %v1697_v14 = vld [vmem:[%s3126_s0 + $0x130] sm:$0xf]  ;;  %v2153_v15 = vld [vmem:[%s3126_s0 + $0x150] sm:$0xf0]  ;;  %v1797_v63 = vld [vmem:[%s3126_s0 + $0x200] sm:$0xf] }
  0x44   :  { %1385 = vmatpush.bf16.msra.mxu3 %v2246_v10  ;;  %1434 = vmatpush.bf16.msra.mxu0 %v2254_v11  ;;  %v1689_v10 = vld [vmem:[%s3126_s0 + $0x128] sm:$0xf]  ;;  %v2152_v11 = vld [vmem:[%s3126_s0 + $0x148] sm:$0xf0] }
  0x46   :  { %1337 = vmatpush.bf16.msra.mxu2 %v2237_v16  ;;  %1288 = vmatpush.bf16.msra.mxu1 %v2229_v17  ;;  %v1686_v16 = vor.u32 %v2147_v8, %v1683_v9  ;;  %v1690_v17 = vor.u32 %v2152_v11, %v1689_v10  ;;  %v1794_v8 = vor.u32 %v2174_v61, %v1791_v62  ;;  %v1605_v61 = vld [vmem:[%s3126_s0 + $0x68] sm:$0xf]  ;;  %v2128_v62 = vld [vmem:[%s3126_s0 + $0x88] sm:$0xf0] }
  0x48   :  { %1386 = vmatpush.bf16.msra.mxu3 %v2245_v18  ;;  %1435 = vmatpush.bf16.msra.mxu0 %v2253_v19  ;;  %v1694_v18 = vor.u32 %v2148_v12, %v1691_v13  ;;  %v1698_v19 = vor.u32 %v2153_v15, %v1697_v14 }
  0x4a   :  { %1338 = vmatpush.bf16.msra.mxu2 %v2236_v20  ;;  %1289 = vmatpush.bf16.msra.mxu1 %v2228_v21  ;;  %v2232_v20 = vld [vmem:[%s3124_s1 + $0x188] sm:$0xff] }
  0x4b   :  { %v2240_v21 = vld [vmem:[%s3124_s1 + $0x1c8] sm:$0xff] }
  0x4c   :  { %1387 = vmatpush.bf16.msra.mxu3 %v2244_v22  ;;  %1436 = vmatpush.bf16.msra.mxu0 %v2252_v23  ;;  %v2224_v22 = vld [vmem:[%s3124_s1 + $0x148] sm:$0xff] }
  0x4d   :  { %v2248_v23 = vld [vmem:[%s3124_s1 + $0x208] sm:$0xff] }
  0x4e   :  { %1339 = vmatpush.bf16.msra.mxu2 %v2235_v36  ;;  %1290 = vmatpush.bf16.msra.mxu1 %v2227_v38  ;;  %v2231_v36 = vld [vmem:[%s3124_s1 + $0x180] sm:$0xff] }
  0x4f   :  { %v2223_v38 = vld [vmem:[%s3124_s1 + $0x140] sm:$0xff] }
  0x50   :  { %1388 = vmatpush.bf16.msra.mxu3 %v2243_v37  ;;  %1437 = vmatpush.bf16.msra.mxu0 %v2251_v39  ;;  %v2239_v37 = vld [vmem:[%s3124_s1 + $0x1c0] sm:$0xff] }
  0x51   :  { %1104 = vmatmul.bf16.gmra.mxu1 %v1578_v32  ;;  %1153 = vmatmul.bf16.gmra.mxu2 %v1582_v33  ;;  %v1722_v32 = vor.u32 %v2156_v24, %v1719_v25  ;;  %v1726_v33 = vor.u32 %v2161_v27, %v1725_v26  ;;  %v2247_v39 = vld [vmem:[%s3124_s1 + $0x200] sm:$0xff]  ;;  %v2118_v24 = vld [vmem:[%s3126_s0 + $0x38] sm:$0xf0] }
  0x52   :  { %1340 = vmatpush.bf16.msra.mxu2 %v2234_v52  ;;  %1291 = vmatpush.bf16.msra.mxu1 %v2226_v54  ;;  %v1770_v52 = vor.u32 %v2171_v47, %v1769_v46  ;;  %v2784_v54 = vld [vmem:[%s3125_s2] ss:$0 sm:$0xff]  ;;  %v2114_v25 = vld [vmem:[%s3126_s0 + $0x1c] sm:$0xf] }
  0x53   :  { %1202 = vmatmul.bf16.gmra.mxu3 %v1586_v34  ;;  %1251 = vmatmul.bf16.gmra.mxu0 %v1590_v35  ;;  %v1730_v34 = vor.u32 %v2157_v28, %v1727_v29  ;;  %v1734_v35 = vor.u32 %v2162_v31, %v1733_v30  ;;  %v1563_v26 = vld [vmem:[%s3126_s0 + $0x3c] sm:$0xf0]  ;;  %v2119_v28 = vld [vmem:[%s3126_s0 + $0x40] sm:$0xf0] }
  0x54   :  { %1389 = vmatpush.bf16.msra.mxu3 %v2242_v53  ;;  %1438 = vmatpush.bf16.msra.mxu0 %v2250_v55  ;;  %v1569_v27 = vld [vmem:[%s3126_s0 + $0x20] sm:$0xf] }
  0x56   :  { %1341 = vmatpush.bf16.msra.mxu2 %v2233_v4  ;;  %1292 = vmatpush.bf16.msra.mxu1 %v2225_v6  ;;  %v2180_v4 = vld [vmem:[%s3126_s0 + $0x228] sm:$0xf0] }
  0x58   :  { %1390 = vmatpush.bf16.msra.mxu3 %v2241_v5  ;;  %1439 = vmatpush.bf16.msra.mxu0 %v2249_v7 }
  0x5a   :  { %1342 = vmatpush.bf16.msra.mxu2 %v2232_v20  ;;  %1293 = vmatpush.bf16.msra.mxu1 %v2224_v22  ;;  %v1555_v22 = vld [vmem:[%s3126_s0 + $0x34] sm:$0xf0] }
  0x5c   :  { %1391 = vmatpush.bf16.msra.mxu3 %v2240_v21  ;;  %1440 = vmatpush.bf16.msra.mxu0 %v2248_v23  ;;  %v2113_v21 = vld [vmem:[%s3126_s0 + $0x14] sm:$0xf]  ;;  %v1561_v23 = vld [vmem:[%s3126_s0 + $0x18] sm:$0xf] }
  0x5e   :  { %1343 = vmatpush.bf16.msra.mxu2 %v2231_v36  ;;  %1294 = vmatpush.bf16.msra.mxu1 %v2223_v38  ;;  %v1570_v38 = vor.u32 %v2119_v28, %v1569_v27  ;;  %v2131_v27 = vld [vmem:[%s3126_s0 + $0xa4] sm:$0xf]  ;;  %v1627_v28 = vld [vmem:[%s3126_s0 + $0xc4] sm:$0xf0] }
  0x60   :  { %1392 = vmatpush.bf16.msra.mxu3 %v2239_v37  ;;  %1441 = vmatpush.bf16.msra.mxu0 %v2247_v39  ;;  %v1566_v37 = vor.u32 %v2114_v25, %v1563_v26 }
  0x61   :  { %1109 = vmatmul.bf16.gmra.mxu1 %v1614_v48  ;;  %1158 = vmatmul.bf16.gmra.mxu2 %v1618_v49  ;;  %v1758_v48 = vor.u32 %v2165_v40, %v1755_v41  ;;  %v1762_v49 = vor.u32 %v2170_v43, %v1761_v42 }
  0x63   :  { %1207 = vmatmul.bf16.gmra.mxu3 %v1622_v50  ;;  %1256 = vmatmul.bf16.gmra.mxu0 %v1626_v51  ;;  %v1766_v51 = vor.u32 %v2166_v44, %v1763_v45 }
  0x71   :  { %1114 = vmatmul.bf16.gmra.mxu1 %v1650_v0  ;;  %1163 = vmatmul.bf16.gmra.mxu2 %v1654_v1  ;;  %v2179_v0 = vld [vmem:[%s3126_s0 + $0x220] sm:$0xf0] }
  0x72   :  { %v2175_v1 = vld [vmem:[%s3126_s0 + $0x204] sm:$0xf]  ;;  %v1798_v9 = vor.u32 %v2179_v0, %v1797_v63 }
  0x73   :  { %1212 = vmatmul.bf16.gmra.mxu3 %v1658_v2  ;;  %1261 = vmatmul.bf16.gmra.mxu0 %v1662_v3  ;;  %v1799_v2 = vld [vmem:[%s3126_s0 + $0x224] sm:$0xf0] }
  0x74   :  { %v1805_v3 = vld [vmem:[%s3126_s0 + $0x208] sm:$0xf]  ;;  %v1802_v12 = vor.u32 %v2175_v1, %v1799_v2 }
  0x75   :  { %v1806_v13 = vor.u32 %v2180_v4, %v1805_v3 }
  0x81   :  { %1119 = vmatmul.bf16.gmra.mxu1 %v1686_v16  ;;  %1168 = vmatmul.bf16.gmra.mxu2 %v1690_v17 }
  0x83   :  { %1217 = vmatmul.bf16.gmra.mxu3 %v1694_v18  ;;  %1266 = vmatmul.bf16.gmra.mxu0 %v1698_v19 }
  0x91   :  { %1124 = vmatmul.bf16.gmra.mxu1 %v1722_v32  ;;  %1173 = vmatmul.bf16.gmra.mxu2 %v1726_v33  ;;  %v1558_v33 = vor.u32 %v2113_v21, %v1555_v22 }
  0x93   :  { %1222 = vmatmul.bf16.gmra.mxu3 %v1730_v34  ;;  %1271 = vmatmul.bf16.gmra.mxu0 %v1734_v35  ;;  %v1562_v34 = vor.u32 %v2118_v24, %v1561_v23 }
  0x9e   :  { %v2779_v50 = vpop.f32.mrf.mxu1 }
  0xa0   :  { %v1051_v53 = vpop.f32.mrf.mxu0 }
  0xa1   :  { %1129 = vmatmul.bf16.gmra.mxu1 %v1758_v48  ;;  %1178 = vmatmul.bf16.gmra.mxu2 %v1762_v49  ;;  %v1052_v30 = vadd.f32 %v2784_v54, %v1051_v53  ;;  %v2122_v49 = vld [vmem:[%s3126_s0 + $0x5c] sm:$0xf]  ;;  %v1597_v53 = vld [vmem:[%s3126_s0 + $0x60] sm:$0xf] }
  0xa3   :  { %1227 = vmatmul.bf16.gmra.mxu3 %v1766_v51  ;;  %1276 = vmatmul.bf16.gmra.mxu0 %v1770_v52  ;;  %v1591_v51 = vld [vmem:[%s3126_s0 + $0x7c] sm:$0xf0] }
  0xa4   :  { %v1071_v55 = vpop.f32.mrf.mxu2  ;;  %v1594_v3 = vor.u32 %v2122_v49, %v1591_v51 }
  0xa5   :  { %v2787_v56 = vadd.f32 %v2784_v54, %v1071_v55  ;;  %v2127_v55 = vld [vmem:[%s3126_s0 + $0x80] sm:$0xf0] }
  0xa6   :  { %v1081_v57 = vpop.f32.mrf.mxu3  ;;  %v2792_v59 = vpop.f32.mrf.mxu1  ;;  %v1598_v4 = vor.u32 %v2127_v55, %v1597_v53 }
  0xa7   :  { %v2790_v58 = vadd.f32 %v2784_v54, %v1081_v57  ;;  %v2123_v57 = vld [vmem:[%s3126_s0 + $0x64] sm:$0xf] }
  0xa8   :  { %v1053_v60 = vpop.f32.mrf.mxu0 }
  0xa9   :  { %v1054_v42 = vadd.f32 %v2784_v54, %v1053_v60  ;;  %v1599_v60 = vld [vmem:[%s3126_s0 + $0x84] sm:$0xf0] }
  0xac   :  { %v1073_v5 = vpop.f32.mrf.mxu2 }
  0xad   :  { %v2819_v6 = vadd.f32 %v2784_v54, %v1073_v5 }
  0xae   :  { %v1083_v7 = vpop.f32.mrf.mxu3  ;;  %v2824_v11 = vpop.f32.mrf.mxu1 }
  0xaf   :  { %v2822_v10 = vadd.f32 %v2784_v54, %v1083_v7  ;;  %v1602_v7 = vor.u32 %v2123_v57, %v1599_v60 }
  0xb0   :  { %v1056_v14 = vpop.f32.mrf.mxu0 }
  0xb1   :  { %1134 = vmatmul.bf16.gmra.mxu1 %v1794_v8  ;;  %1183 = vmatmul.bf16.gmra.mxu2 %v1798_v9  ;;  %v1057_v0 = vadd.f32 %v2784_v54, %v1056_v14  ;;  %v1606_v8 = vor.u32 %v2128_v62, %v1605_v61 }
  0xb3   :  { %1232 = vmatmul.bf16.gmra.mxu3 %v1802_v12  ;;  %1281 = vmatmul.bf16.gmra.mxu0 %v1806_v13 }
  0xb4   :  { %v1076_v15 = vpop.f32.mrf.mxu2 }
  0xb5   :  { %v2827_v16 = vadd.f32 %v2784_v54, %v1076_v15 }
  0xb6   :  { %v1086_v17 = vpop.f32.mrf.mxu3  ;;  %v2832_v19 = vpop.f32.mrf.mxu1 }
  0xb7   :  { %v2830_v18 = vadd.f32 %v2784_v54, %v1086_v17 }
  0xb8   :  { %v1058_v20 = vpop.f32.mrf.mxu0 }
  0xb9   :  { %v1059_v21 = vadd.f32 %v2784_v54, %v1058_v20  ;;  %v1633_v20 = vld [vmem:[%s3126_s0 + $0xa8] sm:$0xf] }
  0xbc   :  { %v1078_v29 = vpop.f32.mrf.mxu2 }
  0xbd   :  { %v2860_v31 = vadd.f32 %v2784_v54, %v1078_v29 }
  0xbe   :  { %v1088_v32 = vpop.f32.mrf.mxu3  ;;  %v1100_v36 = vpop.f32.mrf.mxu1 }
  0xbf   :  { %v2863_v35 = vadd.f32 %v2784_v54, %v1088_v32  ;;  %v1101_v39 = vadd.f32 %v1100_v36, %v1052_v30  ;;  %v2136_v30 = vld [vmem:[%s3126_s0 + $0xc8] sm:$0xf0]  ;;  %v2137_v36 = vld [vmem:[%s3126_s0 + $0xd0] sm:$0xf0] }
  0xc0   :  { %v1247_v40 = vpop.f32.mrf.mxu0  ;;  %v2132_v32 = vld [vmem:[%s3126_s0 + $0xac] sm:$0xf] }
  0xc1   :  { %1295 = vmatmul.bf16.vlgmr.msra.gmra.mxu1 %v1558_v33  ;;  %1344 = vmatmul.bf16.vlgmr.msra.gmra.mxu2 %v1562_v34  ;;  %v1635_v33 = vld [vmem:[%s3126_s0 + $0xcc] sm:$0xf0] }
  0xc2   :  { %v1641_v34 = vld [vmem:[%s3126_s0 + $0xb0] sm:$0xf] }
  0xc3   :  { %1393 = vmatmul.bf16.vlgmr.msra.gmra.mxu3 %v1566_v37  ;;  %1442 = vmatmul.bf16.vlgmr.msra.gmra.mxu0 %v1570_v38  ;;  %v1062_v38 = vadd.f32 %v2784_v54, %v2779_v50  ;;  %v1064_v50 = vadd.f32 %v2784_v54, %v2792_v59  ;;  %v1669_v59 = vld [vmem:[%s3126_s0 + $0xf0] sm:$0xf] }
  0xc4   :  { %v1149_v41 = vpop.f32.mrf.mxu2 }
  0xc5   :  { %v1150_v43 = vadd.f32 %v1149_v41, %v1101_v39  ;;  %v1630_v41 = vor.u32 %v2131_v27, %v1627_v28 }
  0xc6   :  { %v1198_v44 = vpop.f32.mrf.mxu3  ;;  %v1102_v45 = vpop.f32.mrf.mxu1 }
  0xc7   :  { %v1199_v46 = vadd.f32 %v1198_v44, %v1150_v43  ;;  %v1103_v47 = vadd.f32 %v1102_v45, %v1054_v42  ;;  %v1634_v42 = vor.u32 %v2136_v30, %v1633_v20  ;;  %v1638_v44 = vor.u32 %v2132_v32, %v1635_v33 }
  0xc8   :  { %v1249_v48 = vpop.f32.mrf.mxu0  ;;  %v1642_v45 = vor.u32 %v2137_v36, %v1641_v34 }
  0xc9   :  { %v2872_v52 = vadd.f32 %v1247_v40, %v1199_v46 }
  0xcc   :  { %v1151_v63 = vpop.f32.mrf.mxu2 }
  0xcd   :  { %v1152_v1 = vadd.f32 %v1151_v63, %v1103_v47  ;;  %v2140_v63 = vld [vmem:[%s3126_s0 + $0xec] sm:$0xf] }
  0xce   :  { %v1200_v2 = vpop.f32.mrf.mxu3  ;;  %v1105_v5 = vpop.f32.mrf.mxu1 }
  0xcf   :  { %v1201_v9 = vadd.f32 %v1200_v2, %v1152_v1  ;;  %v1106_v12 = vadd.f32 %v1105_v5, %v1057_v0  ;;  %v1663_v0 = vld [vmem:[%s3126_s0 + $0x10c] sm:$0xf0]  ;;  %v2145_v2 = vld [vmem:[%s3126_s0 + $0x110] sm:$0xf0]  ;;  %v1677_v5 = vld [vmem:[%s3126_s0 + $0xf8] sm:$0xf] }
  0xd0   :  { %v1252_v13 = vpop.f32.mrf.mxu0 }
  0xd1   :  { %1300 = vmatmul.bf16.gmra.mxu1 %v1594_v3  ;;  %1349 = vmatmul.bf16.gmra.mxu2 %v1598_v4  ;;  %v2893_v15 = vadd.f32 %v1249_v48, %v1201_v9  ;;  %v2141_v3 = vld [vmem:[%s3126_s0 + $0xf4] sm:$0xf]  ;;  %v1671_v4 = vld [vmem:[%s3126_s0 + $0x114] sm:$0xf0]  ;;  %v1067_v9 = vadd.f32 %v2784_v54, %v2824_v11  ;;  %v1069_v11 = vadd.f32 %v2784_v54, %v2832_v19  ;;  %v2154_v19 = vld [vmem:[%s3126_s0 + $0x158] sm:$0xf0] }
  0xd2   :  { %v1705_v54 = vld [vmem:[%s3126_s0 + $0x138] sm:$0xf] }
  0xd3   :  { %1398 = vmatmul.bf16.gmra.mxu3 %v1602_v7  ;;  %1447 = vmatmul.bf16.gmra.mxu0 %v1606_v8  ;;  %v2146_v7 = vld [vmem:[%s3126_s0 + $0x118] sm:$0xf0] }
  0xd4   :  { %v1154_v17 = vpop.f32.mrf.mxu2 }
  0xd5   :  { %v1155_v14 = vadd.f32 %v1154_v17, %v1106_v12  ;;  %v1666_v17 = vor.u32 %v2140_v63, %v1663_v0 }
  0xd6   :  { %v1203_v22 = vpop.f32.mrf.mxu3  ;;  %v1107_v23 = vpop.f32.mrf.mxu1 }
  0xd7   :  { %v1204_v24 = vadd.f32 %v1203_v22, %v1155_v14  ;;  %v1108_v25 = vadd.f32 %v1107_v23, %v1059_v21  ;;  %v1670_v21 = vor.u32 %v2145_v2, %v1669_v59  ;;  %v1674_v22 = vor.u32 %v2141_v3, %v1671_v4 }
  0xd8   :  { %v1254_v26 = vpop.f32.mrf.mxu0  ;;  %v1678_v23 = vor.u32 %v2146_v7, %v1677_v5  ;;  %v2158_v5 = vld [vmem:[%s3126_s0 + $0x17c] sm:$0xf] }
  0xd9   :  { %v2902_v29 = vadd.f32 %v1252_v13, %v1204_v24 }
  0xdc   :  { %v1156_v37 = vpop.f32.mrf.mxu2 }
  0xdd   :  { %v1157_v39 = vadd.f32 %v1156_v37, %v1108_v25  ;;  %v2149_v37 = vld [vmem:[%s3126_s0 + $0x134] sm:$0xf] }
  0xde   :  { %v1205_v40 = vpop.f32.mrf.mxu3  ;;  %v1110_v43 = vpop.f32.mrf.mxu1 }
  0xdf   :  { %v1206_v46 = vadd.f32 %v1205_v40, %v1157_v39  ;;  %v1111_v47 = vadd.f32 %v1110_v43, %v1062_v38  ;;  %v1699_v38 = vld [vmem:[%s3126_s0 + $0x154] sm:$0xf0]  ;;  %v2150_v40 = vld [vmem:[%s3126_s0 + $0x13c] sm:$0xf]  ;;  %v2155_v43 = vld [vmem:[%s3126_s0 + $0x160] sm:$0xf0] }
  0xe0   :  { %v1257_v48 = vpop.f32.mrf.mxu0 }
  0xe1   :  { %1305 = vmatmul.bf16.gmra.mxu1 %v1630_v41  ;;  %1354 = vmatmul.bf16.gmra.mxu2 %v1634_v42  ;;  %v2924_v49 = vadd.f32 %v1254_v26, %v1206_v46  ;;  %v1707_v41 = vld [vmem:[%s3126_s0 + $0x15c] sm:$0xf0] }
  0xe2   :  { %v1713_v42 = vld [vmem:[%s3126_s0 + $0x140] sm:$0xf] }
  0xe3   :  { %1403 = vmatmul.bf16.gmra.mxu3 %v1638_v44  ;;  %1452 = vmatmul.bf16.gmra.mxu0 %v1642_v45 }
  0xe4   :  { %v1159_v51 = vpop.f32.mrf.mxu2 }
  0xe5   :  { %v1160_v53 = vadd.f32 %v1159_v51, %v1111_v47  ;;  %v1702_v47 = vor.u32 %v2149_v37, %v1699_v38 }
  0xe6   :  { %v1208_v55 = vpop.f32.mrf.mxu3  ;;  %v1112_v57 = vpop.f32.mrf.mxu1 }
  0xe7   :  { %v1209_v60 = vadd.f32 %v1208_v55, %v1160_v53  ;;  %v1113_v61 = vadd.f32 %v1112_v57, %v1064_v50  ;;  %v1710_v50 = vor.u32 %v2150_v40, %v1707_v41  ;;  %v1714_v53 = vor.u32 %v2155_v43, %v1713_v42  ;;  %v2167_v40 = vld [vmem:[%s3126_s0 + $0x1c4] sm:$0xf]  ;;  %v1777_v42 = vld [vmem:[%s3126_s0 + $0x1c8] sm:$0xf]  ;;  %v2172_v43 = vld [vmem:[%s3126_s0 + $0x1e8] sm:$0xf0] }
  0xe8   :  { %v1259_v62 = vpop.f32.mrf.mxu0 }
  0xe9   :  { %v2934_v1 = vadd.f32 %v1257_v48, %v1209_v60  ;;  %v1706_v48 = vor.u32 %v2154_v19, %v1705_v54 }
  0xec   :  { %v1161_v8 = vpop.f32.mrf.mxu2 }
  0xed   :  { %v1162_v12 = vadd.f32 %v1161_v8, %v1113_v61  ;;  %v1741_v8 = vld [vmem:[%s3126_s0 + $0x180] sm:$0xf] }
  0xee   :  { %v1210_v13 = vpop.f32.mrf.mxu3  ;;  %v1115_v14 = vpop.f32.mrf.mxu1 }
  0xef   :  { %v1211_v24 = vadd.f32 %v1210_v13, %v1162_v12  ;;  %v1116_v25 = vadd.f32 %v1115_v14, %v1067_v9  ;;  %v2163_v9 = vld [vmem:[%s3126_s0 + $0x1a0] sm:$0xf0]  ;;  %v1743_v12 = vld [vmem:[%s3126_s0 + $0x1a4] sm:$0xf0] }
  0xf0   :  { %v1262_v26 = vpop.f32.mrf.mxu0  ;;  %v1749_v13 = vld [vmem:[%s3126_s0 + $0x188] sm:$0xf] }
  0xf1   :  { %1310 = vmatmul.bf16.gmra.mxu1 %v1666_v17  ;;  %1359 = vmatmul.bf16.gmra.mxu2 %v1670_v21  ;;  %v2956_v27 = vadd.f32 %v1259_v62, %v1211_v24  ;;  %v2164_v17 = vld [vmem:[%s3126_s0 + $0x1a8] sm:$0xf0]  ;;  %v1742_v24 = vor.u32 %v2163_v9, %v1741_v8 }
  0xf3   :  { %1408 = vmatmul.bf16.gmra.mxu3 %v1674_v22  ;;  %1457 = vmatmul.bf16.gmra.mxu0 %v1678_v23 }
  0xf4   :  { %v1164_v28 = vpop.f32.mrf.mxu2 }
  0xf5   :  { %v1165_v20 = vadd.f32 %v1164_v28, %v1116_v25  ;;  %v1750_v28 = vor.u32 %v2164_v17, %v1749_v13  ;;  %v1813_v13 = vld [vmem:[%s3126_s0 + $0x210] sm:$0xf]  ;;  %v2181_v17 = vld [vmem:[%s3126_s0 + $0x230] sm:$0xf0] }
  0xf6   :  { %v1213_v30 = vpop.f32.mrf.mxu3  ;;  %v1117_v32 = vpop.f32.mrf.mxu1 }
  0xf7   :  { %v1214_v33 = vadd.f32 %v1213_v30, %v1165_v20  ;;  %v1118_v34 = vadd.f32 %v1117_v32, %v1069_v11 }
  0xf8   :  { %v1264_v36 = vpop.f32.mrf.mxu0 }
  0xf9   :  { %v2966_v39 = vadd.f32 %v1262_v26, %v1214_v33 }
  0xfc   :  { %v1166_v44 = vpop.f32.mrf.mxu2 }
  0xfd   :  { %v1167_v45 = vadd.f32 %v1166_v44, %v1118_v34  ;;  %v1779_v44 = vld [vmem:[%s3126_s0 + $0x1ec] sm:$0xf0] }
  0xfe   :  { %v1215_v46 = vpop.f32.mrf.mxu3  ;;  %v1120_v51 = vpop.f32.mrf.mxu1 }
  0xff   :  { %v1216_v55 = vadd.f32 %v1215_v46, %v1167_v45  ;;  %v1121_v57 = vadd.f32 %v1120_v51, %v2787_v56  ;;  %v1735_v56 = vld [vmem:[%s3126_s0 + $0x19c] sm:$0xf0]  ;;  %v1785_v45 = vld [vmem:[%s3126_s0 + $0x1d0] sm:$0xf]  ;;  %v2173_v46 = vld [vmem:[%s3126_s0 + $0x1f0] sm:$0xf0] }
 0x100   :  { %v1267_v60 = vpop.f32.mrf.mxu0  ;;  %v1738_v23 = vor.u32 %v2158_v5, %v1735_v56 }
 0x101   :  { %1315 = vmatmul.bf16.gmra.mxu1 %v1702_v47  ;;  %1364 = vmatmul.bf16.gmra.mxu2 %v1706_v48  ;;  %v2987_v61 = vadd.f32 %v1264_v36, %v1216_v55 }
 0x103   :  { %1413 = vmatmul.bf16.gmra.mxu3 %v1710_v50  ;;  %1462 = vmatmul.bf16.gmra.mxu0 %v1714_v53  ;;  %v1778_v53 = vor.u32 %v2172_v43, %v1777_v42 }
 0x104   :  { %v1169_v62 = vpop.f32.mrf.mxu2 }
 0x105   :  { %v1170_v63 = vadd.f32 %v1169_v62, %v1121_v57 }
 0x106   :  { %v1218_v0 = vpop.f32.mrf.mxu3  ;;  %v1122_v59 = vpop.f32.mrf.mxu1 }
 0x107   :  { %v1219_v2 = vadd.f32 %v1218_v0, %v1170_v63  ;;  %v1123_v3 = vadd.f32 %v1122_v59, %v2819_v6  ;;  %v2159_v6 = vld [vmem:[%s3126_s0 + $0x184] sm:$0xf] }
 0x108   :  { %v1269_v4 = vpop.f32.mrf.mxu0  ;;  %v1746_v26 = vor.u32 %v2159_v6, %v1743_v12  ;;  %v2176_v6 = vld [vmem:[%s3126_s0 + $0x20c] sm:$0xf] }
 0x109   :  { %v2996_v7 = vadd.f32 %v1267_v60, %v1219_v2  ;;  %v1786_v60 = vor.u32 %v2173_v46, %v1785_v45 }
 0x10c   :  { %v1171_v21 = vpop.f32.mrf.mxu2 }
 0x10d   :  { %v1172_v14 = vadd.f32 %v1171_v21, %v1123_v3  ;;  %v1815_v21 = vld [vmem:[%s3126_s0 + $0x234] sm:$0xf0] }
 0x10e   :  { %v1220_v22 = vpop.f32.mrf.mxu3  ;;  %v1125_v25 = vpop.f32.mrf.mxu1 }
 0x10f   :  { %v1221_v11 = vadd.f32 %v1220_v22, %v1172_v14  ;;  %v1126_v20 = vadd.f32 %v1125_v25, %v2827_v16  ;;  %v1771_v16 = vld [vmem:[%s3126_s0 + $0x1e4] sm:$0xf0]  ;;  %v1821_v14 = vld [vmem:[%s3126_s0 + $0x218] sm:$0xf]  ;;  %v2182_v22 = vld [vmem:[%s3126_s0 + $0x238] sm:$0xf0] }
 0x110   :  { %v1272_v30 = vpop.f32.mrf.mxu0  ;;  %v1774_v50 = vor.u32 %v2167_v40, %v1771_v16 }
 0x111   :  { %1320 = vmatmul.bf16.gmra.mxu1 %v1738_v23  ;;  %1369 = vmatmul.bf16.gmra.mxu2 %v1742_v24  ;;  %v3017_v32 = vadd.f32 %v1269_v4, %v1221_v11 }
 0x113   :  { %1418 = vmatmul.bf16.gmra.mxu3 %v1746_v26  ;;  %1467 = vmatmul.bf16.gmra.mxu0 %v1750_v28  ;;  %v1814_v28 = vor.u32 %v2181_v17, %v1813_v13 }
 0x114   :  { %v1174_v33 = vpop.f32.mrf.mxu2 }
 0x115   :  { %v1175_v34 = vadd.f32 %v1174_v33, %v1126_v20 }
 0x116   :  { %v1223_v36 = vpop.f32.mrf.mxu3  ;;  %v1127_v37 = vpop.f32.mrf.mxu1 }
 0x117   :  { %v1224_v38 = vadd.f32 %v1223_v36, %v1175_v34  ;;  %v1128_v54 = vadd.f32 %v1127_v37, %v2860_v31  ;;  %v2168_v31 = vld [vmem:[%s3126_s0 + $0x1cc] sm:$0xf] }
 0x118   :  { %v1274_v19 = vpop.f32.mrf.mxu0  ;;  %v1782_v57 = vor.u32 %v2168_v31, %v1779_v44 }
 0x119   :  { %v3026_v41 = vadd.f32 %v1272_v30, %v1224_v38  ;;  %v1822_v30 = vor.u32 %v2182_v22, %v1821_v14 }
 0x11c   :  { %v1176_v47 = vpop.f32.mrf.mxu2 }
 0x11d   :  { %v1177_v48 = vadd.f32 %v1176_v47, %v1128_v54 }
 0x11e   :  { %v1225_v51 = vpop.f32.mrf.mxu3  ;;  %v1130_v55 = vpop.f32.mrf.mxu1 }
 0x11f   :  { %v1226_v62 = vadd.f32 %v1225_v51, %v1177_v48  ;;  %v1131_v63 = vadd.f32 %v1130_v55, %v2790_v58  ;;  %v1807_v58 = vld [vmem:[%s3126_s0 + $0x22c] sm:$0xf0] }
 0x120   :  { %v1277_v0 = vpop.f32.mrf.mxu0  ;;  %v1810_v26 = vor.u32 %v2176_v6, %v1807_v58 }
 0x121   :  { %1325 = vmatmul.bf16.gmra.mxu1 %v1774_v50  ;;  %1374 = vmatmul.bf16.gmra.mxu2 %v1778_v53  ;;  %v3047_v59 = vadd.f32 %v1274_v19, %v1226_v62 }
 0x123   :  { %1423 = vmatmul.bf16.gmra.mxu3 %v1782_v57  ;;  %1472 = vmatmul.bf16.gmra.mxu0 %v1786_v60 }
 0x124   :  { %v1179_v2 = vpop.f32.mrf.mxu2 }
 0x125   :  { %v1180_v3 = vadd.f32 %v1179_v2, %v1131_v63 }
 0x126   :  { %v1228_v4 = vpop.f32.mrf.mxu3  ;;  %v1132_v5 = vpop.f32.mrf.mxu1 }
 0x127   :  { %v1229_v56 = vadd.f32 %v1228_v4, %v1180_v3  ;;  %v1133_v8 = vadd.f32 %v1132_v5, %v2822_v10  ;;  %v2177_v10 = vld [vmem:[%s3126_s0 + $0x214] sm:$0xf] }
 0x128   :  { %v1279_v9 = vpop.f32.mrf.mxu0  ;;  %v1818_v20 = vor.u32 %v2177_v10, %v1815_v21 }
 0x129   :  { %v3056_v12 = vadd.f32 %v1277_v0, %v1229_v56 }
 0x12c   :  { %v1181_v23 = vpop.f32.mrf.mxu2 }
 0x12d   :  { %v1182_v24 = vadd.f32 %v1181_v23, %v1133_v8 }
 0x12e   :  { %v1230_v25 = vpop.f32.mrf.mxu3  ;;  %v1135_v11 = vpop.f32.mrf.mxu1 }
 0x12f   :  { %v1231_v33 = vadd.f32 %v1230_v25, %v1182_v24  ;;  %v1136_v34 = vadd.f32 %v1135_v11, %v2830_v18 }
 0x130   :  { %v1282_v36 = vpop.f32.mrf.mxu0 }
 0x131   :  { %1330 = vmatmul.bf16.gmra.mxu1 %v1810_v26  ;;  %1379 = vmatmul.bf16.gmra.mxu2 %v1814_v28  ;;  %v3077_v37 = vadd.f32 %v1279_v9, %v1231_v33 }
 0x133   :  { %1428 = vmatmul.bf16.gmra.mxu3 %v1818_v20  ;;  %1477 = vmatmul.bf16.gmra.mxu0 %v1822_v30 }
 0x134   :  { %v1184_v38 = vpop.f32.mrf.mxu2 }
 0x135   :  { %v1185_v54 = vadd.f32 %v1184_v38, %v1136_v34 }
 0x136   :  { %v1233_v19 = vpop.f32.mrf.mxu3  ;;  %v1137_v40 = vpop.f32.mrf.mxu1 }
 0x137   :  { %v1234_v16 = vadd.f32 %v1233_v19, %v1185_v54  ;;  %v1138_v42 = vadd.f32 %v1137_v40, %v2863_v35 }
 0x138   :  { %v1284_v43 = vpop.f32.mrf.mxu0 }
 0x139   :  { %v3080_v31 = vadd.f32 %v1282_v36, %v1234_v16 }
 0x13c   :  { %v1186_v44 = vpop.f32.mrf.mxu2 }
 0x13d   :  { %v1187_v45 = vadd.f32 %v1186_v44, %v1138_v42 }
 0x13e   :  { %v1235_v18 = vpop.f32.mrf.mxu3  ;;  %v1296_v46 = vpop.f32.mrf.mxu1 }
 0x13f   :  { %v1236_v47 = vadd.f32 %v1235_v18, %v1187_v45  ;;  %v1297_v53 = vadd.f32 %v1296_v46, %v2872_v52 }
 0x140   :  { %v1443_v48 = vpop.f32.mrf.mxu0 }
 0x141   :  { %v3082_v51 = vadd.f32 %v1284_v43, %v1236_v47 }
 0x144   :  { %v1345_v50 = vpop.f32.mrf.mxu2 }
 0x145   :  { %v1346_v60 = vadd.f32 %v1345_v50, %v1297_v53 }
 0x146   :  { %v1394_v55 = vpop.f32.mrf.mxu3  ;;  %v1298_v57 = vpop.f32.mrf.mxu1 }
 0x147   :  { %v1395_v63 = vadd.f32 %v1394_v55, %v1346_v60  ;;  %v1299_v35 = vadd.f32 %v1298_v57, %v2893_v15 }
 0x148   :  { %v1445_v62 = vpop.f32.mrf.mxu0 }
 0x149   :  { %v1444_v5 = vadd.f32 %v1443_v48, %v1395_v63 }
 0x14b   :  { %v1483_v6 = vmax.f32 %v1444_v5, 0.0 }
 0x14c   :  { %v1347_v0 = vpop.f32.mrf.mxu2 }
 0x14d   :  { %v1348_v2 = vadd.f32 %v1347_v0, %v1299_v35 }
 0x14e   :  { %v1396_v3 = vpop.f32.mrf.mxu3  ;;  %v1301_v4 = vpop.f32.mrf.mxu1 }
 0x14f   :  { %v1397_v56 = vadd.f32 %v1396_v3, %v1348_v2  ;;  %v1302_v52 = vadd.f32 %v1301_v4, %v2902_v29 }
 0x150   :  { %v1448_v8 = vpop.f32.mrf.mxu0 }
 0x151   :  { %v1446_v9 = vadd.f32 %v1445_v62, %v1397_v56 }
 0x153   :  { %v1484_v58 = vmax.f32 %v1446_v9, 0.0 }
 0x154   :  { %v1350_v13 = vpop.f32.mrf.mxu2 }
 0x155   :  { %v2258_v17 = vpack.c.bf16 %v1484_v58, %v1483_v6  ;;  %v1351_v15 = vadd.f32 %v1350_v13, %v1302_v52 }
 0x156   :  { %v1399_v10 = vpop.f32.mrf.mxu3  ;;  %v1303_v21 = vpop.f32.mrf.mxu1 }
 0x157   :  { %2259 = vst [vmem:[%s3127_s3] sm:$0xff] %v2258_v17   ;;  %v1400_v22 = vadd.f32 %v1399_v10, %v1351_v15  ;;  %v1304_v23 = vadd.f32 %v1303_v21, %v2924_v49 }
 0x158   :  { %v1450_v14 = vpop.f32.mrf.mxu0 }
 0x159   :  { %v1449_v11 = vadd.f32 %v1448_v8, %v1400_v22 }
 0x15b   :  { %v1485_v29 = vmax.f32 %v1449_v11, 0.0 }
 0x15c   :  { %v1352_v24 = vpop.f32.mrf.mxu2 }
 0x15d   :  { %v1353_v25 = vadd.f32 %v1352_v24, %v1304_v23 }
 0x15e   :  { %v1401_v26 = vpop.f32.mrf.mxu3  ;;  %v1306_v28 = vpop.f32.mrf.mxu1 }
 0x15f   :  { %v1402_v20 = vadd.f32 %v1401_v26, %v1353_v25  ;;  %v1307_v54 = vadd.f32 %v1306_v28, %v2934_v1 }
 0x160   :  { %v1453_v30 = vpop.f32.mrf.mxu0 }
 0x161   :  { %v1451_v33 = vadd.f32 %v1450_v14, %v1402_v20 }
 0x163   :  { %v1486_v34 = vmax.f32 %v1451_v33, 0.0 }
 0x164   :  { %v1355_v36 = vpop.f32.mrf.mxu2 }
 0x165   :  { %v2263_v38 = vpack.c.bf16 %v1486_v34, %v1485_v29  ;;  %v1356_v49 = vadd.f32 %v1355_v36, %v1307_v54 }
 0x166   :  { %v1404_v19 = vpop.f32.mrf.mxu3  ;;  %v1308_v40 = vpop.f32.mrf.mxu1 }
 0x167   :  { %2295 = vst [vmem:[%s3127_s3 + $0x8] sm:$0xff] %v2263_v38   ;;  %v1405_v42 = vadd.f32 %v1404_v19, %v1356_v49  ;;  %v1309_v43 = vadd.f32 %v1308_v40, %v2956_v27 }
 0x168   :  { %v1455_v16 = vpop.f32.mrf.mxu0 }
 0x169   :  { %v1454_v47 = vadd.f32 %v1453_v30, %v1405_v42 }
 0x16b   :  { %v1487_v1 = vmax.f32 %v1454_v47, 0.0 }
 0x16c   :  { %v1357_v44 = vpop.f32.mrf.mxu2 }
 0x16d   :  { %v1358_v45 = vadd.f32 %v1357_v44, %v1309_v43 }
 0x16e   :  { %v1406_v18 = vpop.f32.mrf.mxu3  ;;  %v1311_v46 = vpop.f32.mrf.mxu1 }
 0x16f   :  { %v1407_v48 = vadd.f32 %v1406_v18, %v1358_v45  ;;  %v1312_v62 = vadd.f32 %v1311_v46, %v2966_v39 }
 0x170   :  { %v1458_v50 = vpop.f32.mrf.mxu0 }
 0x171   :  { %v1456_v53 = vadd.f32 %v1455_v16, %v1407_v48 }
 0x173   :  { %v1488_v55 = vmax.f32 %v1456_v53, 0.0 }
 0x174   :  { %v1360_v57 = vpop.f32.mrf.mxu2 }
 0x175   :  { %v2268_v60 = vpack.c.bf16 %v1488_v55, %v1487_v1  ;;  %v1361_v27 = vadd.f32 %v1360_v57, %v1312_v62 }
 0x176   :  { %v1409_v63 = vpop.f32.mrf.mxu3  ;;  %v1313_v35 = vpop.f32.mrf.mxu1 }
 0x177   :  { %2296 = vst [vmem:[%s3127_s3 + $0x10] sm:$0xff] %v2268_v60   ;;  %v1410_v2 = vadd.f32 %v1409_v63, %v1361_v27  ;;  %v1314_v3 = vadd.f32 %v1313_v35, %v2987_v61 }
 0x178   :  { %v1460_v0 = vpop.f32.mrf.mxu0 }
 0x179   :  { %v1459_v9 = vadd.f32 %v1458_v50, %v1410_v2 }
 0x17b   :  { %v1489_v39 = vmax.f32 %v1459_v9, 0.0 }
 0x17c   :  { %v1362_v4 = vpop.f32.mrf.mxu2 }
 0x17d   :  { %v1363_v5 = vadd.f32 %v1362_v4, %v1314_v3 }
 0x17e   :  { %v1411_v56 = vpop.f32.mrf.mxu3  ;;  %v1316_v8 = vpop.f32.mrf.mxu1 }
 0x17f   :  { %v1412_v6 = vadd.f32 %v1411_v56, %v1363_v5  ;;  %v1317_v21 = vadd.f32 %v1316_v8, %v2996_v7 }
 0x180   :  { %v1463_v58 = vpop.f32.mrf.mxu0 }
 0x181   :  { %v1461_v13 = vadd.f32 %v1460_v0, %v1412_v6 }
 0x183   :  { %v1490_v17 = vmax.f32 %v1461_v13, 0.0 }
 0x184   :  { %v1365_v52 = vpop.f32.mrf.mxu2 }
 0x185   :  { %v2273_v10 = vpack.c.bf16 %v1490_v17, %v1489_v39  ;;  %v1366_v61 = vadd.f32 %v1365_v52, %v1317_v21 }
 0x186   :  { %v1414_v15 = vpop.f32.mrf.mxu3  ;;  %v1318_v14 = vpop.f32.mrf.mxu1 }
 0x187   :  { %2297 = vst [vmem:[%s3127_s3 + $0x18] sm:$0xff] %v2273_v10   ;;  %v1415_v23 = vadd.f32 %v1414_v15, %v1366_v61  ;;  %v1319_v24 = vadd.f32 %v1318_v14, %v3017_v32 }
 0x188   :  { %v1465_v22 = vpop.f32.mrf.mxu0 }
 0x189   :  { %v1464_v20 = vadd.f32 %v1463_v58, %v1415_v23 }
 0x18b   :  { %v1491_v7 = vmax.f32 %v1464_v20, 0.0 }
 0x18c   :  { %v1367_v25 = vpop.f32.mrf.mxu2 }
 0x18d   :  { %v1368_v26 = vadd.f32 %v1367_v25, %v1319_v24 }
 0x18e   :  { %v1416_v28 = vpop.f32.mrf.mxu3  ;;  %v1321_v11 = vpop.f32.mrf.mxu1 }
 0x18f   :  { %v1417_v30 = vadd.f32 %v1416_v28, %v1368_v26  ;;  %v1322_v54 = vadd.f32 %v1321_v11, %v3026_v41 }
 0x190   :  { %v1468_v33 = vpop.f32.mrf.mxu0 }
 0x191   :  { %v1466_v29 = vadd.f32 %v1465_v22, %v1417_v30 }
 0x193   :  { %v1492_v34 = vmax.f32 %v1466_v29, 0.0 }
 0x194   :  { %v1370_v36 = vpop.f32.mrf.mxu2 }
 0x195   :  { %v2278_v38 = vpack.c.bf16 %v1492_v34, %v1491_v7  ;;  %v1371_v32 = vadd.f32 %v1370_v36, %v1322_v54 }
 0x196   :  { %v1419_v19 = vpop.f32.mrf.mxu3  ;;  %v1323_v40 = vpop.f32.mrf.mxu1 }
 0x197   :  { %2298 = vst [vmem:[%s3127_s3 + $0x20] sm:$0xff] %v2278_v38   ;;  %v1420_v16 = vadd.f32 %v1419_v19, %v1371_v32  ;;  %v1324_v42 = vadd.f32 %v1323_v40, %v3047_v59 }
 0x198   :  { %v1470_v49 = vpop.f32.mrf.mxu0 }
 0x199   :  { %v1469_v46 = vadd.f32 %v1468_v33, %v1420_v16 }
 0x19b   :  { %v1493_v41 = vmax.f32 %v1469_v46, 0.0 }
 0x19c   :  { %v1372_v43 = vpop.f32.mrf.mxu2 }
 0x19d   :  { %v1373_v44 = vadd.f32 %v1372_v43, %v1324_v42 }
 0x19e   :  { %v1421_v45 = vpop.f32.mrf.mxu3  ;;  %v1326_v18 = vpop.f32.mrf.mxu1 }
 0x19f   :  { %v1422_v47 = vadd.f32 %v1421_v45, %v1373_v44  ;;  %v1327_v57 = vadd.f32 %v1326_v18, %v3056_v12 }
 0x1a0   :  { %v1473_v50 = vpop.f32.mrf.mxu0 }
 0x1a1   :  { %v1471_v48 = vadd.f32 %v1470_v49, %v1422_v47 }
 0x1a3   :  { %v1494_v53 = vmax.f32 %v1471_v48, 0.0 }
 0x1a4   :  { %v1375_v1 = vpop.f32.mrf.mxu2 }
 0x1a5   :  { %v2283_v55 = vpack.c.bf16 %v1494_v53, %v1493_v41  ;;  %v1376_v59 = vadd.f32 %v1375_v1, %v1327_v57 }
 0x1a6   :  { %v1424_v60 = vpop.f32.mrf.mxu3  ;;  %v1328_v62 = vpop.f32.mrf.mxu1 }
 0x1a7   :  { %2299 = vst [vmem:[%s3127_s3 + $0x28] sm:$0xff] %v2283_v55   ;;  %v1425_v63 = vadd.f32 %v1424_v60, %v1376_v59  ;;  %v1329_v35 = vadd.f32 %v1328_v62, %v3077_v37 }
 0x1a8   :  { %v1475_v27 = vpop.f32.mrf.mxu0 }
 0x1a9   :  { %v1474_v5 = vadd.f32 %v1473_v50, %v1425_v63 }
 0x1ab   :  { %v1495_v9 = vmax.f32 %v1474_v5, 0.0 }
 0x1ac   :  { %v1377_v0 = vpop.f32.mrf.mxu2 }
 0x1ad   :  { %v1378_v2 = vadd.f32 %v1377_v0, %v1329_v35 }
 0x1ae   :  { %v1426_v3 = vpop.f32.mrf.mxu3  ;;  %v1331_v4 = vpop.f32.mrf.mxu1 }
 0x1af   :  { %v1427_v56 = vadd.f32 %v1426_v3, %v1378_v2  ;;  %v1332_v13 = vadd.f32 %v1331_v4, %v3080_v31 }
 0x1b0   :  { %v1478_v17 = vpop.f32.mrf.mxu0 }
 0x1b1   :  { %v1476_v8 = vadd.f32 %v1475_v27, %v1427_v56 }
 0x1b3   :  { %v1496_v12 = vmax.f32 %v1476_v8, 0.0 }
 0x1b4   :  { %v1380_v6 = vpop.f32.mrf.mxu2 }
 0x1b5   :  { %v2288_v58 = vpack.c.bf16 %v1496_v12, %v1495_v9  ;;  %v1381_v37 = vadd.f32 %v1380_v6, %v1332_v13 }
 0x1b6   :  { %v1429_v39 = vpop.f32.mrf.mxu3  ;;  %v1333_v52 = vpop.f32.mrf.mxu1 }
 0x1b7   :  { %2300 = vst [vmem:[%s3127_s3 + $0x30] sm:$0xff] %v2288_v58   ;;  %v1430_v10 = vadd.f32 %v1429_v39, %v1381_v37  ;;  %v1334_v21 = vadd.f32 %v1333_v52, %v3082_v51 }
 0x1b8   :  { %v1480_v24 = vpop.f32.mrf.mxu0 }
 0x1b9   :  { %v1479_v22 = vadd.f32 %v1478_v17, %v1430_v10 }
 0x1bb   :  { %v1497_v26 = vmax.f32 %v1479_v22, 0.0 }
 0x1bc   :  { %v1382_v15 = vpop.f32.mrf.mxu2 }
 0x1bd   :  { %v1383_v14 = vadd.f32 %v1382_v15, %v1334_v21 }
 0x1be   :  { %v1431_v61 = vpop.f32.mrf.mxu3 }
 0x1bf   :  { %v1432_v23 = vadd.f32 %v1431_v61, %v1383_v14 }
 0x1c1   :  { %v1481_v25 = vadd.f32 %v1480_v24, %v1432_v23 }
 0x1c3   :  { %v1498_v31 = vmax.f32 %v1481_v25, 0.0 }
 0x1c5   :  { %v2293_v28 = vpack.c.bf16 %v1498_v31, %v1497_v26 }
 0x1c7   :  { %2301 = vst [vmem:[%s3127_s3 + $0x38] sm:$0xff] %v2293_v28  }

</bundles_post_ra>
